<compile_context>
chip_gen: v7x
topology: tpu7x:2x2x1
jax: 0.10.0
libtpu: 0.0.40
codegen_flags: <defaults>
</compile_context>

<pallas_src>
import functools

import jax
import jax.numpy as jnp
import numpy as np
from jax import lax
from jax.experimental import pallas as pl
from jax.experimental.pallas import tpu as pltpu

LANE = 128      # lane width; all feature dims are zero-padded to this
SUBLANE = 8     # sublane width; batch is zero-padded to a multiple of this


def _chunk_timesteps(seq_len, bp, cap_rows=512):
    """Largest divisor of seq_len with t*bp <= cap_rows, preferring chunks whose
    row count is a multiple of 16 (safe for sub-32-bit packed activations)."""
    cap = max(1, min(seq_len, cap_rows // max(bp, 1)))
    aligned, any_d = 1, 1
    for d in range(1, cap + 1):
        if seq_len % d == 0:
            any_d = d
            if (d * bp) % 16 == 0:
                aligned = d
    return aligned if (aligned * bp) % 16 == 0 else any_d


# ------------------------------ Pallas kernel ------------------------------ #

def _fused_lstm_kernel(x_ref, wih_ref, whh_ref, b_ref, h0_ref, c0_ref,
                       wfc_ref, bfc_ref, out_ref, xw_sc, hseq_sc):
    """Whole model in one kernel: L LSTM layers over time + final Linear.

    x_ref    : (S*Bp, LANE)          time-major flattened input (row = t*Bp + b)
    wih_ref  : (L, LANE, 4*LANE)     gate-packed input weights (transposed, padded)
    whh_ref  : (L, LANE, 4*LANE)     gate-packed recurrent weights (transposed, padded)
    b_ref    : (L, 1, 4*LANE)  f32   gate-packed fused bias (b_ih + b_hh, padded)
    h0_ref   : (L, Bp, LANE)   f32   initial hidden (padded)
    c0_ref   : (L, Bp, LANE)   f32   initial cell (padded)
    wfc_ref  : (LANE, LANE)          FC weight (transposed, padded)
    bfc_ref  : (1, LANE)       f32   FC bias (padded)
    out_ref  : (Bp, LANE)      f32   FC(h_last); caller slices [:B, :O]
    xw_sc    : (S*Bp, 4*LANE)  f32   hoisted gate-packed input projections
    hseq_sc  : (S*Bp, LANE)    f32   current layer's hidden outputs over time
    """
    num_layers = wih_ref.shape[0]
    bp = h0_ref.shape[1]
    lane = h0_ref.shape[2]
    n_rows = x_ref.shape[0]
    seq_len = n_rows // bp
    mxu_dtype = wih_ref.dtype                       # bf16 or f32 MXU operands

    # Static chunking for the hoisted input projection (~512 rows per chunk).
    t_chunk = _chunk_timesteps(seq_len, bp)
    rows_per_chunk = t_chunk * bp
    n_chunks = seq_len // t_chunk

    h_last = None
    for layer in range(num_layers):                 # static unroll over layers
        # --- hoisted input projection (+ bias): ONE packed matmul per chunk - #
        def proj_chunk(ci, _, layer=layer):
            r0 = pl.multiple_of(ci * rows_per_chunk, rows_per_chunk)
            rows = pl.ds(r0, rows_per_chunk)
            src = x_ref[rows, :] if layer == 0 else hseq_sc[rows, :]
            xw_sc[rows, :] = (
                jnp.dot(src.astype(mxu_dtype), wih_ref[layer],
                        preferred_element_type=jnp.float32)
                + b_ref[layer])                     # f32 gate preactivations
            return 0

        lax.fori_loop(0, n_chunks, proj_chunk, 0, unroll=min(n_chunks, 2))

        # --- serial recurrence: ONE packed h_prev @ W_hh matmul per step ---- #
        def step(t, carry, layer=layer):
            h_prev, c_prev = carry                  # f32 (Bp, LANE)
            r0 = pl.multiple_of(t * bp, bp)
            rows = pl.ds(r0, bp)
            pre = (jnp.dot(h_prev.astype(mxu_dtype), whh_ref[layer],
                           preferred_element_type=jnp.float32)
                   + xw_sc[rows, :])                # (Bp, 4*LANE) f32
            # 128-lane-aligned static gate slices (PyTorch order i, f, g, o).
            i_g = jax.nn.sigmoid(pre[:, 0 * lane:1 * lane])
            f_g = jax.nn.sigmoid(pre[:, 1 * lane:2 * lane])
            g_g = jnp.tanh(pre[:, 2 * lane:3 * lane])
            o_g = jax.nn.sigmoid(pre[:, 3 * lane:4 * lane])
            c_new = f_g * c_prev + i_g * g_g
            h_new = o_g * jnp.tanh(c_new)
            if layer < num_layers - 1:              # last layer's hseq unused
                hseq_sc[rows, :] = h_new
            return (h_new, c_new)

        h_last, _ = lax.fori_loop(
            0, seq_len, step, (h0_ref[layer], c0_ref[layer]),
            unroll=min(seq_len, 8))

    # --- FC head on the last hidden state, written lane-dense -------------- #
    out_ref[...] = (jnp.dot(h_last.astype(wfc_ref.dtype), wfc_ref[...],
                            preferred_element_type=jnp.float32)
                    + bfc_ref[...]).astype(out_ref.dtype)


# ------------------------------ JAX wrapper --------------------------------- #

@functools.partial(jax.jit, static_argnames=("output_size",))
def lstm_forward(x, kparams, h0, c0, *, output_size):
    """x: (B, S, I) batch-first. Returns (1, B, output_size) in f32."""
    B, S, I = x.shape
    L, lane, four_lane = kparams["wih"].shape
    cdt = kparams["wih"].dtype
    H = h0.shape[-1]
    Bp = ((B + SUBLANE - 1) // SUBLANE) * SUBLANE

    # time-major, zero-padded to (S*Bp, LANE)
    x_tm = jnp.transpose(x.astype(jnp.float32), (1, 0, 2))            # (S, B, I)
    x_flat = (jnp.zeros((S, Bp, lane), cdt)
              .at[:, :B, :I].set(x_tm.astype(cdt))
              .reshape(S * Bp, lane))
    h0_pad = jnp.zeros((L, Bp, lane), jnp.float32).at[:, :B, :H].set(
        h0.astype(jnp.float32))
    c0_pad = jnp.zeros((L, Bp, lane), jnp.float32).at[:, :B, :H].set(
        c0.astype(jnp.float32))

    # VMEM budget from actual slab sizes (inputs are double-buffered by default).
    wb = jnp.dtype(cdt).itemsize
    est = (2 * S * Bp * lane * wb                       # x
           + 2 * 2 * L * lane * four_lane * wb          # W_ih + W_hh
           + 2 * L * four_lane * 4                      # bias
           + 2 * 2 * L * Bp * lane * 4                  # h0 + c0
           + 2 * (lane * lane * wb + lane * 4)          # FC weight + bias
           + 2 * Bp * lane * 4                          # out
           + S * Bp * four_lane * 4                     # xw scratch
           + S * Bp * lane * 4)                         # hseq scratch
    vmem_limit = int(min(max(est + (4 << 20), 32 << 20), 64 << 20))

    grid_spec = pltpu.PrefetchScalarGridSpec(
        num_scalar_prefetch=0,
        grid=(1,),                                   # whole model in one step
        in_specs=[
            pl.BlockSpec((S * Bp, lane), lambda i: (0, 0)),             # x
            pl.BlockSpec((L, lane, four_lane), lambda i: (0, 0, 0)),    # W_ih
            pl.BlockSpec((L, lane, four_lane), lambda i: (0, 0, 0)),    # W_hh
            pl.BlockSpec((L, 1, four_lane), lambda i: (0, 0, 0)),       # bias
            pl.BlockSpec((L, Bp, lane), lambda i: (0, 0, 0)),           # h0
            pl.BlockSpec((L, Bp, lane), lambda i: (0, 0, 0)),           # c0
            pl.BlockSpec((lane, lane), lambda i: (0, 0)),               # W_fc
            pl.BlockSpec((1, lane), lambda i: (0, 0)),                  # b_fc
        ],
        out_specs=pl.BlockSpec((Bp, lane), lambda i: (0, 0)),
        scratch_shapes=[
            pltpu.VMEM((S * Bp, four_lane), jnp.float32),   # xw (gate-packed)
            pltpu.VMEM((S * Bp, lane), jnp.float32),        # hseq
        ],
    )

    out_pad = pl.pallas_call(
        _fused_lstm_kernel,
        out_shape=jax.ShapeDtypeStruct((Bp, lane), jnp.float32),
        grid_spec=grid_spec,
        compiler_params=pltpu.CompilerParams(
            dimension_semantics=("arbitrary",),
            vmem_limit_bytes=vmem_limit),
    )(x_flat, kparams["wih"], kparams["whh"], kparams["bias"],
      h0_pad, c0_pad, kparams["wfc"], kparams["bfc"])

    pred = out_pad[:B, :output_size]                  # (B, O)
    return pred[None, ...]                            # stack([pred], dim=0)


# --------------------------- parameter construction ------------------------- #

def init_params(key, input_size, hidden_size, num_layers, output_size):
    """PyTorch-shaped params: nn.LSTM / nn.Linear uniform(-k, k) init."""
    k = 1.0 / np.sqrt(hidden_size)
    w_ih, w_hh, b_ih, b_hh = [], [], [], []
    for layer in range(num_layers):
        in_dim = input_size if layer == 0 else hidden_size
        key, k1, k2, k3, k4 = jax.random.split(key, 5)
        w_ih.append(jax.random.uniform(k1, (4 * hidden_size, in_dim),
                                       jnp.float32, -k, k))
        w_hh.append(jax.random.uniform(k2, (4 * hidden_size, hidden_size),
                                       jnp.float32, -k, k))
        b_ih.append(jax.random.uniform(k3, (4 * hidden_size,), jnp.float32, -k, k))
        b_hh.append(jax.random.uniform(k4, (4 * hidden_size,), jnp.float32, -k, k))
    key, k5, k6 = jax.random.split(key, 3)
    w_fc = jax.random.uniform(k5, (output_size, hidden_size), jnp.float32, -k, k)
    b_fc = jax.random.uniform(k6, (output_size,), jnp.float32, -k, k)
    return {"w_ih": w_ih, "w_hh": w_hh, "b_ih": b_ih, "b_hh": b_hh,
            "w_fc": w_fc, "b_fc": b_fc}


def pack_params(params, input_size, hidden_size, lane=LANE,
                compute_dtype=jnp.float32):
    """Gate-packed (PyTorch order i,f,g,o along the lane axis), transposed,
    zero-padded weights.  compute_dtype is the MXU-operand dtype (weights);
    biases stay f32 so all gate math remains f32."""
    assert input_size <= lane and hidden_size <= lane, \
        "TODO(synk): tile the padded feature/gate axis for hidden_size > 128"
    L = len(params["w_ih"])
    H = hidden_size
    wih = np.zeros((L, lane, 4 * lane), np.float32)
    whh = np.zeros((L, lane, 4 * lane), np.float32)
    bias = np.zeros((L, 1, 4 * lane), np.float32)
    for l in range(L):
        in_dim = params["w_ih"][l].shape[1]
        for g in range(4):
            wih[l, :in_dim, g * lane:g * lane + H] = np.asarray(
                params["w_ih"][l][g * H:(g + 1) * H, :]).T
            whh[l, :H, g * lane:g * lane + H] = np.asarray(
                params["w_hh"][l][g * H:(g + 1) * H, :]).T
            bias[l, 0, g * lane:g * lane + H] = np.asarray(
                params["b_ih"][l][g * H:(g + 1) * H]
                + params["b_hh"][l][g * H:(g + 1) * H])
    O = params["w_fc"].shape[0]
    wfc = np.zeros((lane, lane), np.float32)
    wfc[:H, :O] = np.asarray(params["w_fc"]).T
    bfc = np.zeros((1, lane), np.float32)
    bfc[0, :O] = np.asarray(params["b_fc"])
    return {"wih": jnp.asarray(wih, compute_dtype),
            "whh": jnp.asarray(whh, compute_dtype),
            "bias": jnp.asarray(bias, jnp.float32),
            "wfc": jnp.asarray(wfc, compute_dtype),
            "bfc": jnp.asarray(bfc, jnp.float32)}


# ----------------------------- pure-JAX reference --------------------------- #

def lstm_forward_ref(x, params, h0, c0):
    x_tm = jnp.transpose(x.astype(jnp.float32), (1, 0, 2))
    L = len(params["w_ih"])
    H = params["w_hh"][0].shape[1]
    layer_in = x_tm
    for l in range(L):
        w_ih_t = params["w_ih"][l].T
        w_hh_t = params["w_hh"][l].T
        b = (params["b_ih"][l] + params["b_hh"][l])[None, :]

        def step(carry, x_t, w_ih_t=w_ih_t, w_hh_t=w_hh_t, b=b):
            h, c = carry
            gates = x_t @ w_ih_t + h @ w_hh_t + b
            i = jax.nn.sigmoid(gates[:, 0 * H:1 * H])
            f = jax.nn.sigmoid(gates[:, 1 * H:2 * H])
            g = jnp.tanh(gates[:, 2 * H:3 * H])
            o = jax.nn.sigmoid(gates[:, 3 * H:4 * H])
            c_new = f * c + i * g
            h_new = o * jnp.tanh(c_new)
            return (h_new, c_new), h_new

        (_, _), outs = jax.lax.scan(step, (h0[l], c0[l]), layer_in)
        layer_in = outs
    h_last = layer_in[-1]
    pred = h_last @ params["w_fc"].T + params["b_fc"][None, :]
    return pred[None, ...]


# ----------------------------------- main ----------------------------------- #

if __name__ == "__main__":
    batch, seq_len = 2, 8
    input_size, hidden_size, num_layers, output_size = 4, 32, 2, 1

    root = jax.random.PRNGKey(0)
    k_params, k_x, k_h0, k_c0 = jax.random.split(root, 4)

    params = init_params(k_params, input_size, hidden_size, num_layers,
                         output_size)

    x = jax.random.normal(k_x, (batch, seq_len, input_size), jnp.float32)
    # h_0 / c_0: the PyTorch forward draws randn each call; deterministic here.
    h0 = jax.random.normal(k_h0, (num_layers, batch, hidden_size), jnp.float32)
    c0 = jax.random.normal(k_c0, (num_layers, batch, hidden_size), jnp.float32)

    ref = jax.block_until_ready(lstm_forward_ref(x, params, h0, c0))

    # --- f32 path: exact module semantics, strict tolerance ---------------- #
    kparams_f32 = pack_params(params, input_size, hidden_size,
                              compute_dtype=jnp.float32)
    pred = jax.block_until_ready(
        lstm_forward(x, kparams_f32, h0, c0, output_size=output_size))
    assert pred.shape == (1, batch, output_size), pred.shape
    np.testing.assert_allclose(np.asarray(pred), np.asarray(ref),
                               rtol=1e-3, atol=1e-3)

    # --- bf16 MXU-operand path (gate/cell math stays f32): loose check ----- #
    kparams_bf16 = pack_params(params, input_size, hidden_size,
                               compute_dtype=jnp.bfloat16)
    pred_bf16 = jax.block_until_ready(
        lstm_forward(x, kparams_bf16, h0, c0, output_size=output_size))
    np.testing.assert_allclose(np.asarray(pred_bf16), np.asarray(ref),
                               rtol=1e-1, atol=1e-1)

    print("KERNEL_OK")
</pallas_src>

<mosaic_0001>
module attributes {stable_mosaic.version = 11 : i64} {
  func.func @_fused_lstm_kernel(%arg0: i32, %arg1: memref<64x128xf32, #tpu.memory_space<vmem>>, %arg2: memref<2x128x512xf32, #tpu.memory_space<vmem>>, %arg3: memref<2x128x512xf32, #tpu.memory_space<vmem>>, %arg4: memref<2x1x512xf32, #tpu.memory_space<vmem>>, %arg5: memref<2x8x128xf32, #tpu.memory_space<vmem>>, %arg6: memref<2x8x128xf32, #tpu.memory_space<vmem>>, %arg7: memref<128x128xf32, #tpu.memory_space<vmem>>, %arg8: memref<1x128xf32, #tpu.memory_space<vmem>>, %arg9: memref<8x128xf32, #tpu.memory_space<vmem>>, %arg10: memref<64x512xf32, #tpu.memory_space<vmem>>, %arg11: memref<64x128xf32, #tpu.memory_space<vmem>>) attributes {dimension_semantics = [#tpu.dimension_semantics<arbitrary>], iteration_bounds = array<i64: 1>, scalar_prefetch = 0 : i64, scratch_operands = 2 : i64, tpu.core_type = #tpu.core_type<tc>, window_params = [{pipeline_mode = #tpu.pipeline_mode<synchronous>, transform_indices = @transform_0, window_bounds = array<i64: 64, 128>}, {pipeline_mode = #tpu.pipeline_mode<synchronous>, transform_indices = @transform_1, window_bounds = array<i64: 2, 128, 512>}, {pipeline_mode = #tpu.pipeline_mode<synchronous>, transform_indices = @transform_2, window_bounds = array<i64: 2, 128, 512>}, {pipeline_mode = #tpu.pipeline_mode<synchronous>, transform_indices = @transform_3, window_bounds = array<i64: 2, 1, 512>}, {pipeline_mode = #tpu.pipeline_mode<synchronous>, transform_indices = @transform_4, window_bounds = array<i64: 2, 8, 128>}, {pipeline_mode = #tpu.pipeline_mode<synchronous>, transform_indices = @transform_5, window_bounds = array<i64: 2, 8, 128>}, {pipeline_mode = #tpu.pipeline_mode<synchronous>, transform_indices = @transform_6, window_bounds = array<i64: 128, 128>}, {pipeline_mode = #tpu.pipeline_mode<synchronous>, transform_indices = @transform_7, window_bounds = array<i64: 1, 128>}, {pipeline_mode = #tpu.pipeline_mode<synchronous>, transform_indices = @transform_8, window_bounds = array<i64: 8, 128>}]} {
    %c0_i32 = arith.constant 0 : i32
    %c64_i32 = arith.constant 64 : i32
    %0 = arith.muli %c0_i32, %c64_i32 : i32
    %1 = tpu.assume_multiple %0, 64 : i32
    %2 = arith.index_cast %1 : i32 to index
    %c0 = arith.constant 0 : index
    %3 = vector.load %arg1[%2, %c0] : memref<64x128xf32, #tpu.memory_space<vmem>>, vector<64x128xf32>
    %c0_0 = arith.constant 0 : index
    %c0_1 = arith.constant 0 : index
    %c0_2 = arith.constant 0 : index
    %4 = vector.load %arg2[%c0_0, %c0_1, %c0_2] : memref<2x128x512xf32, #tpu.memory_space<vmem>>, vector<1x128x512xf32>
    %5 = vector.shape_cast %4 : vector<1x128x512xf32> to vector<128x512xf32>
    %cst = arith.constant dense<0.000000e+00> : vector<64x512xf32>
    %6 = tpu.matmul %3, %5, %cst {dimension_numbers = #tpu.dot_dimension_numbers<[1], [0], [0], [1], [0, 0, 1, 1], [], []>} : vector<64x128xf32>, vector<128x512xf32>, vector<64x512xf32> -> vector<64x512xf32>
    %c0_3 = arith.constant 0 : index
    %c0_4 = arith.constant 0 : index
    %c0_5 = arith.constant 0 : index
    %7 = vector.load %arg4[%c0_3, %c0_4, %c0_5] : memref<2x1x512xf32, #tpu.memory_space<vmem>>, vector<1x1x512xf32>
    %8 = vector.shape_cast %7 : vector<1x1x512xf32> to vector<1x512xf32>
    %9 = vector.broadcast %8 : vector<1x512xf32> to vector<64x512xf32>
    %10 = arith.addf %6, %9 : vector<64x512xf32>
    %11 = arith.index_cast %1 : i32 to index
    %c0_6 = arith.constant 0 : index
    %12 = vector.load %arg10[%11, %c0_6] : memref<64x512xf32, #tpu.memory_space<vmem>>, vector<64x512xf32>
    tpu.vector_store %arg10[%11, %c0_6], %10 {strides = array<i32>} : memref<64x512xf32, #tpu.memory_space<vmem>>, vector<64x512xf32>,
    %c1_i32 = arith.constant 1 : i32
    %c0_7 = arith.constant 0 : index
    %c0_8 = arith.constant 0 : index
    %c0_9 = arith.constant 0 : index
    %13 = vector.load %arg5[%c0_7, %c0_8, %c0_9] : memref<2x8x128xf32, #tpu.memory_space<vmem>>, vector<1x8x128xf32>
    %14 = vector.shape_cast %13 : vector<1x8x128xf32> to vector<8x128xf32>
    %c0_10 = arith.constant 0 : index
    %c0_11 = arith.constant 0 : index
    %c0_12 = arith.constant 0 : index
    %15 = vector.load %arg6[%c0_10, %c0_11, %c0_12] : memref<2x8x128xf32, #tpu.memory_space<vmem>>, vector<1x8x128xf32>
    %16 = vector.shape_cast %15 : vector<1x8x128xf32> to vector<8x128xf32>
    %c0_i32_13 = arith.constant 0 : i32
    %c8_i32 = arith.constant 8 : i32
    %17 = arith.muli %c0_i32_13, %c8_i32 : i32
    %18 = tpu.assume_multiple %17, 8 : i32
    %c0_14 = arith.constant 0 : index
    %c0_15 = arith.constant 0 : index
    %c0_16 = arith.constant 0 : index
    %19 = vector.load %arg3[%c0_14, %c0_15, %c0_16] : memref<2x128x512xf32, #tpu.memory_space<vmem>>, vector<1x128x512xf32>
    %20 = vector.shape_cast %19 : vector<1x128x512xf32> to vector<128x512xf32>
    %cst_17 = arith.constant dense<0.000000e+00> : vector<8x512xf32>
    %21 = tpu.matmul %14, %20, %cst_17 {dimension_numbers = #tpu.dot_dimension_numbers<[1], [0], [0], [1], [0, 0, 1, 1], [], []>} : vector<8x128xf32>, vector<128x512xf32>, vector<8x512xf32> -> vector<8x512xf32>
    %22 = arith.index_cast %18 : i32 to index
    %c0_18 = arith.constant 0 : index
    %23 = vector.load %arg10[%22, %c0_18] : memref<64x512xf32, #tpu.memory_space<vmem>>, vector<8x512xf32>
    %24 = arith.addf %21, %23 : vector<8x512xf32>
    %25 = vector.extract_strided_slice %24 {offsets = [0, 0], sizes = [8, 128], strides = [1, 1]} : vector<8x512xf32> to vector<8x128xf32>
    %26 = arith.negf %25 : vector<8x128xf32>
    %27 = math.exp %26 : vector<8x128xf32>
    %cst_19 = arith.constant 1.000000e+00 : f32
    %28 = vector.broadcast %cst_19 : f32 to vector<8x128xf32>
    %29 = arith.addf %28, %27 : vector<8x128xf32>
    %30 = arith.divf %28, %29 : vector<8x128xf32>
    %31 = vector.extract_strided_slice %24 {offsets = [0, 128], sizes = [8, 128], strides = [1, 1]} : vector<8x512xf32> to vector<8x128xf32>
    %32 = arith.negf %31 : vector<8x128xf32>
    %33 = math.exp %32 : vector<8x128xf32>
    %cst_20 = arith.constant 1.000000e+00 : f32
    %34 = vector.broadcast %cst_20 : f32 to vector<8x128xf32>
    %35 = arith.addf %34, %33 : vector<8x128xf32>
    %36 = arith.divf %34, %35 : vector<8x128xf32>
    %37 = vector.extract_strided_slice %24 {offsets = [0, 256], sizes = [8, 128], strides = [1, 1]} : vector<8x512xf32> to vector<8x128xf32>
    %38 = math.tanh %37 : vector<8x128xf32>
    %39 = vector.extract_strided_slice %24 {offsets = [0, 384], sizes = [8, 128], strides = [1, 1]} : vector<8x512xf32> to vector<8x128xf32>
    %40 = arith.negf %39 : vector<8x128xf32>
    %41 = math.exp %40 : vector<8x128xf32>
    %cst_21 = arith.constant 1.000000e+00 : f32
    %42 = vector.broadcast %cst_21 : f32 to vector<8x128xf32>
    %43 = arith.addf %42, %41 : vector<8x128xf32>
    %44 = arith.divf %42, %43 : vector<8x128xf32>
    %45 = arith.mulf %36, %16 : vector<8x128xf32>
    %46 = arith.mulf %30, %38 : vector<8x128xf32>
    %47 = arith.addf %45, %46 : vector<8x128xf32>
    %48 = math.tanh %47 : vector<8x128xf32>
    %49 = arith.mulf %44, %48 : vector<8x128xf32>
    %50 = arith.index_cast %18 : i32 to index
    %c0_22 = arith.constant 0 : index
    %51 = vector.load %arg11[%50, %c0_22] : memref<64x128xf32, #tpu.memory_space<vmem>>, vector<8x128xf32>
    tpu.vector_store %arg11[%50, %c0_22], %49 {strides = array<i32>} : memref<64x128xf32, #tpu.memory_space<vmem>>, vector<8x128xf32>,
    %c1_i32_23 = arith.constant 1 : i32
    %c8_i32_24 = arith.constant 8 : i32
    %52 = arith.muli %c1_i32_23, %c8_i32_24 : i32
    %53 = tpu.assume_multiple %52, 8 : i32
    %c0_25 = arith.constant 0 : index
    %c0_26 = arith.constant 0 : index
    %c0_27 = arith.constant 0 : index
    %54 = vector.load %arg3[%c0_25, %c0_26, %c0_27] : memref<2x128x512xf32, #tpu.memory_space<vmem>>, vector<1x128x512xf32>
    %55 = vector.shape_cast %54 : vector<1x128x512xf32> to vector<128x512xf32>
    %cst_28 = arith.constant dense<0.000000e+00> : vector<8x512xf32>
    %56 = tpu.matmul %49, %55, %cst_28 {dimension_numbers = #tpu.dot_dimension_numbers<[1], [0], [0], [1], [0, 0, 1, 1], [], []>} : vector<8x128xf32>, vector<128x512xf32>, vector<8x512xf32> -> vector<8x512xf32>
    %57 = arith.index_cast %53 : i32 to index
    %c0_29 = arith.constant 0 : index
    %58 = vector.load %arg10[%57, %c0_29] : memref<64x512xf32, #tpu.memory_space<vmem>>, vector<8x512xf32>
    %59 = arith.addf %56, %58 : vector<8x512xf32>
    %60 = vector.extract_strided_slice %59 {offsets = [0, 0], sizes = [8, 128], strides = [1, 1]} : vector<8x512xf32> to vector<8x128xf32>
    %61 = arith.negf %60 : vector<8x128xf32>
    %62 = math.exp %61 : vector<8x128xf32>
    %cst_30 = arith.constant 1.000000e+00 : f32
    %63 = vector.broadcast %cst_30 : f32 to vector<8x128xf32>
    %64 = arith.addf %63, %62 : vector<8x128xf32>
    %65 = arith.divf %63, %64 : vector<8x128xf32>
    %66 = vector.extract_strided_slice %59 {offsets = [0, 128], sizes = [8, 128], strides = [1, 1]} : vector<8x512xf32> to vector<8x128xf32>
    %67 = arith.negf %66 : vector<8x128xf32>
    %68 = math.exp %67 : vector<8x128xf32>
    %cst_31 = arith.constant 1.000000e+00 : f32
    %69 = vector.broadcast %cst_31 : f32 to vector<8x128xf32>
    %70 = arith.addf %69, %68 : vector<8x128xf32>
    %71 = arith.divf %69, %70 : vector<8x128xf32>
    %72 = vector.extract_strided_slice %59 {offsets = [0, 256], sizes = [8, 128], strides = [1, 1]} : vector<8x512xf32> to vector<8x128xf32>
    %73 = math.tanh %72 : vector<8x128xf32>
    %74 = vector.extract_strided_slice %59 {offsets = [0, 384], sizes = [8, 128], strides = [1, 1]} : vector<8x512xf32> to vector<8x128xf32>
    %75 = arith.negf %74 : vector<8x128xf32>
    %76 = math.exp %75 : vector<8x128xf32>
    %cst_32 = arith.constant 1.000000e+00 : f32
    %77 = vector.broadcast %cst_32 : f32 to vector<8x128xf32>
    %78 = arith.addf %77, %76 : vector<8x128xf32>
    %79 = arith.divf %77, %78 : vector<8x128xf32>
    %80 = arith.mulf %71, %47 : vector<8x128xf32>
    %81 = arith.mulf %65, %73 : vector<8x128xf32>
    %82 = arith.addf %80, %81 : vector<8x128xf32>
    %83 = math.tanh %82 : vector<8x128xf32>
    %84 = arith.mulf %79, %83 : vector<8x128xf32>
    %85 = arith.index_cast %53 : i32 to index
    %c0_33 = arith.constant 0 : index
    %86 = vector.load %arg11[%85, %c0_33] : memref<64x128xf32, #tpu.memory_space<vmem>>, vector<8x128xf32>
    tpu.vector_store %arg11[%85, %c0_33], %84 {strides = array<i32>} : memref<64x128xf32, #tpu.memory_space<vmem>>, vector<8x128xf32>,
    %c2_i32 = arith.constant 2 : i32
    %c8_i32_34 = arith.constant 8 : i32
    %87 = arith.muli %c2_i32, %c8_i32_34 : i32
    %88 = tpu.assume_multiple %87, 8 : i32
    %c0_35 = arith.constant 0 : index
    %c0_36 = arith.constant 0 : index
    %c0_37 = arith.constant 0 : index
    %89 = vector.load %arg3[%c0_35, %c0_36, %c0_37] : memref<2x128x512xf32, #tpu.memory_space<vmem>>, vector<1x128x512xf32>
    %90 = vector.shape_cast %89 : vector<1x128x512xf32> to vector<128x512xf32>
    %cst_38 = arith.constant dense<0.000000e+00> : vector<8x512xf32>
    %91 = tpu.matmul %84, %90, %cst_38 {dimension_numbers = #tpu.dot_dimension_numbers<[1], [0], [0], [1], [0, 0, 1, 1], [], []>} : vector<8x128xf32>, vector<128x512xf32>, vector<8x512xf32> -> vector<8x512xf32>
    %92 = arith.index_cast %88 : i32 to index
    %c0_39 = arith.constant 0 : index
    %93 = vector.load %arg10[%92, %c0_39] : memref<64x512xf32, #tpu.memory_space<vmem>>, vector<8x512xf32>
    %94 = arith.addf %91, %93 : vector<8x512xf32>
    %95 = vector.extract_strided_slice %94 {offsets = [0, 0], sizes = [8, 128], strides = [1, 1]} : vector<8x512xf32> to vector<8x128xf32>
    %96 = arith.negf %95 : vector<8x128xf32>
    %97 = math.exp %96 : vector<8x128xf32>
    %cst_40 = arith.constant 1.000000e+00 : f32
    %98 = vector.broadcast %cst_40 : f32 to vector<8x128xf32>
    %99 = arith.addf %98, %97 : vector<8x128xf32>
    %100 = arith.divf %98, %99 : vector<8x128xf32>
    %101 = vector.extract_strided_slice %94 {offsets = [0, 128], sizes = [8, 128], strides = [1, 1]} : vector<8x512xf32> to vector<8x128xf32>
    %102 = arith.negf %101 : vector<8x128xf32>
    %103 = math.exp %102 : vector<8x128xf32>
    %cst_41 = arith.constant 1.000000e+00 : f32
    %104 = vector.broadcast %cst_41 : f32 to vector<8x128xf32>
    %105 = arith.addf %104, %103 : vector<8x128xf32>
    %106 = arith.divf %104, %105 : vector<8x128xf32>
    %107 = vector.extract_strided_slice %94 {offsets = [0, 256], sizes = [8, 128], strides = [1, 1]} : vector<8x512xf32> to vector<8x128xf32>
    %108 = math.tanh %107 : vector<8x128xf32>
    %109 = vector.extract_strided_slice %94 {offsets = [0, 384], sizes = [8, 128], strides = [1, 1]} : vector<8x512xf32> to vector<8x128xf32>
    %110 = arith.negf %109 : vector<8x128xf32>
    %111 = math.exp %110 : vector<8x128xf32>
    %cst_42 = arith.constant 1.000000e+00 : f32
    %112 = vector.broadcast %cst_42 : f32 to vector<8x128xf32>
    %113 = arith.addf %112, %111 : vector<8x128xf32>
    %114 = arith.divf %112, %113 : vector<8x128xf32>
    %115 = arith.mulf %106, %82 : vector<8x128xf32>
    %116 = arith.mulf %100, %108 : vector<8x128xf32>
    %117 = arith.addf %115, %116 : vector<8x128xf32>
    %118 = math.tanh %117 : vector<8x128xf32>
    %119 = arith.mulf %114, %118 : vector<8x128xf32>
    %120 = arith.index_cast %88 : i32 to index
    %c0_43 = arith.constant 0 : index
    %121 = vector.load %arg11[%120, %c0_43] : memref<64x128xf32, #tpu.memory_space<vmem>>, vector<8x128xf32>
    tpu.vector_store %arg11[%120, %c0_43], %119 {strides = array<i32>} : memref<64x128xf32, #tpu.memory_space<vmem>>, vector<8x128xf32>,
    %c3_i32 = arith.constant 3 : i32
    %c8_i32_44 = arith.constant 8 : i32
    %122 = arith.muli %c3_i32, %c8_i32_44 : i32
    %123 = tpu.assume_multiple %122, 8 : i32
    %c0_45 = arith.constant 0 : index
    %c0_46 = arith.constant 0 : index
    %c0_47 = arith.constant 0 : index
    %124 = vector.load %arg3[%c0_45, %c0_46, %c0_47] : memref<2x128x512xf32, #tpu.memory_space<vmem>>, vector<1x128x512xf32>
    %125 = vector.shape_cast %124 : vector<1x128x512xf32> to vector<128x512xf32>
    %cst_48 = arith.constant dense<0.000000e+00> : vector<8x512xf32>
    %126 = tpu.matmul %119, %125, %cst_48 {dimension_numbers = #tpu.dot_dimension_numbers<[1], [0], [0], [1], [0, 0, 1, 1], [], []>} : vector<8x128xf32>, vector<128x512xf32>, vector<8x512xf32> -> vector<8x512xf32>
    %127 = arith.index_cast %123 : i32 to index
    %c0_49 = arith.constant 0 : index
    %128 = vector.load %arg10[%127, %c0_49] : memref<64x512xf32, #tpu.memory_space<vmem>>, vector<8x512xf32>
    %129 = arith.addf %126, %128 : vector<8x512xf32>
    %130 = vector.extract_strided_slice %129 {offsets = [0, 0], sizes = [8, 128], strides = [1, 1]} : vector<8x512xf32> to vector<8x128xf32>
    %131 = arith.negf %130 : vector<8x128xf32>
    %132 = math.exp %131 : vector<8x128xf32>
    %cst_50 = arith.constant 1.000000e+00 : f32
    %133 = vector.broadcast %cst_50 : f32 to vector<8x128xf32>
    %134 = arith.addf %133, %132 : vector<8x128xf32>
    %135 = arith.divf %133, %134 : vector<8x128xf32>
    %136 = vector.extract_strided_slice %129 {offsets = [0, 128], sizes = [8, 128], strides = [1, 1]} : vector<8x512xf32> to vector<8x128xf32>
    %137 = arith.negf %136 : vector<8x128xf32>
    %138 = math.exp %137 : vector<8x128xf32>
    %cst_51 = arith.constant 1.000000e+00 : f32
    %139 = vector.broadcast %cst_51 : f32 to vector<8x128xf32>
    %140 = arith.addf %139, %138 : vector<8x128xf32>
    %141 = arith.divf %139, %140 : vector<8x128xf32>
    %142 = vector.extract_strided_slice %129 {offsets = [0, 256], sizes = [8, 128], strides = [1, 1]} : vector<8x512xf32> to vector<8x128xf32>
    %143 = math.tanh %142 : vector<8x128xf32>
    %144 = vector.extract_strided_slice %129 {offsets = [0, 384], sizes = [8, 128], strides = [1, 1]} : vector<8x512xf32> to vector<8x128xf32>
    %145 = arith.negf %144 : vector<8x128xf32>
    %146 = math.exp %145 : vector<8x128xf32>
    %cst_52 = arith.constant 1.000000e+00 : f32
    %147 = vector.broadcast %cst_52 : f32 to vector<8x128xf32>
    %148 = arith.addf %147, %146 : vector<8x128xf32>
    %149 = arith.divf %147, %148 : vector<8x128xf32>
    %150 = arith.mulf %141, %117 : vector<8x128xf32>
    %151 = arith.mulf %135, %143 : vector<8x128xf32>
    %152 = arith.addf %150, %151 : vector<8x128xf32>
    %153 = math.tanh %152 : vector<8x128xf32>
    %154 = arith.mulf %149, %153 : vector<8x128xf32>
    %155 = arith.index_cast %123 : i32 to index
    %c0_53 = arith.constant 0 : index
    %156 = vector.load %arg11[%155, %c0_53] : memref<64x128xf32, #tpu.memory_space<vmem>>, vector<8x128xf32>
    tpu.vector_store %arg11[%155, %c0_53], %154 {strides = array<i32>} : memref<64x128xf32, #tpu.memory_space<vmem>>, vector<8x128xf32>,
    %c4_i32 = arith.constant 4 : i32
    %c8_i32_54 = arith.constant 8 : i32
    %157 = arith.muli %c4_i32, %c8_i32_54 : i32
    %158 = tpu.assume_multiple %157, 8 : i32
    %c0_55 = arith.constant 0 : index
    %c0_56 = arith.constant 0 : index
    %c0_57 = arith.constant 0 : index
    %159 = vector.load %arg3[%c0_55, %c0_56, %c0_57] : memref<2x128x512xf32, #tpu.memory_space<vmem>>, vector<1x128x512xf32>
    %160 = vector.shape_cast %159 : vector<1x128x512xf32> to vector<128x512xf32>
    %cst_58 = arith.constant dense<0.000000e+00> : vector<8x512xf32>
    %161 = tpu.matmul %154, %160, %cst_58 {dimension_numbers = #tpu.dot_dimension_numbers<[1], [0], [0], [1], [0, 0, 1, 1], [], []>} : vector<8x128xf32>, vector<128x512xf32>, vector<8x512xf32> -> vector<8x512xf32>
    %162 = arith.index_cast %158 : i32 to index
    %c0_59 = arith.constant 0 : index
    %163 = vector.load %arg10[%162, %c0_59] : memref<64x512xf32, #tpu.memory_space<vmem>>, vector<8x512xf32>
    %164 = arith.addf %161, %163 : vector<8x512xf32>
    %165 = vector.extract_strided_slice %164 {offsets = [0, 0], sizes = [8, 128], strides = [1, 1]} : vector<8x512xf32> to vector<8x128xf32>
    %166 = arith.negf %165 : vector<8x128xf32>
    %167 = math.exp %166 : vector<8x128xf32>
    %cst_60 = arith.constant 1.000000e+00 : f32
    %168 = vector.broadcast %cst_60 : f32 to vector<8x128xf32>
    %169 = arith.addf %168, %167 : vector<8x128xf32>
    %170 = arith.divf %168, %169 : vector<8x128xf32>
    %171 = vector.extract_strided_slice %164 {offsets = [0, 128], sizes = [8, 128], strides = [1, 1]} : vector<8x512xf32> to vector<8x128xf32>
    %172 = arith.negf %171 : vector<8x128xf32>
    %173 = math.exp %172 : vector<8x128xf32>
    %cst_61 = arith.constant 1.000000e+00 : f32
    %174 = vector.broadcast %cst_61 : f32 to vector<8x128xf32>
    %175 = arith.addf %174, %173 : vector<8x128xf32>
    %176 = arith.divf %174, %175 : vector<8x128xf32>
    %177 = vector.extract_strided_slice %164 {offsets = [0, 256], sizes = [8, 128], strides = [1, 1]} : vector<8x512xf32> to vector<8x128xf32>
    %178 = math.tanh %177 : vector<8x128xf32>
    %179 = vector.extract_strided_slice %164 {offsets = [0, 384], sizes = [8, 128], strides = [1, 1]} : vector<8x512xf32> to vector<8x128xf32>
    %180 = arith.negf %179 : vector<8x128xf32>
    %181 = math.exp %180 : vector<8x128xf32>
    %cst_62 = arith.constant 1.000000e+00 : f32
    %182 = vector.broadcast %cst_62 : f32 to vector<8x128xf32>
    %183 = arith.addf %182, %181 : vector<8x128xf32>
    %184 = arith.divf %182, %183 : vector<8x128xf32>
    %185 = arith.mulf %176, %152 : vector<8x128xf32>
    %186 = arith.mulf %170, %178 : vector<8x128xf32>
    %187 = arith.addf %185, %186 : vector<8x128xf32>
    %188 = math.tanh %187 : vector<8x128xf32>
    %189 = arith.mulf %184, %188 : vector<8x128xf32>
    %190 = arith.index_cast %158 : i32 to index
    %c0_63 = arith.constant 0 : index
    %191 = vector.load %arg11[%190, %c0_63] : memref<64x128xf32, #tpu.memory_space<vmem>>, vector<8x128xf32>
    tpu.vector_store %arg11[%190, %c0_63], %189 {strides = array<i32>} : memref<64x128xf32, #tpu.memory_space<vmem>>, vector<8x128xf32>,
    %c5_i32 = arith.constant 5 : i32
    %c8_i32_64 = arith.constant 8 : i32
    %192 = arith.muli %c5_i32, %c8_i32_64 : i32
    %193 = tpu.assume_multiple %192, 8 : i32
    %c0_65 = arith.constant 0 : index
    %c0_66 = arith.constant 0 : index
    %c0_67 = arith.constant 0 : index
    %194 = vector.load %arg3[%c0_65, %c0_66, %c0_67] : memref<2x128x512xf32, #tpu.memory_space<vmem>>, vector<1x128x512xf32>
    %195 = vector.shape_cast %194 : vector<1x128x512xf32> to vector<128x512xf32>
    %cst_68 = arith.constant dense<0.000000e+00> : vector<8x512xf32>
    %196 = tpu.matmul %189, %195, %cst_68 {dimension_numbers = #tpu.dot_dimension_numbers<[1], [0], [0], [1], [0, 0, 1, 1], [], []>} : vector<8x128xf32>, vector<128x512xf32>, vector<8x512xf32> -> vector<8x512xf32>
    %197 = arith.index_cast %193 : i32 to index
    %c0_69 = arith.constant 0 : index
    %198 = vector.load %arg10[%197, %c0_69] : memref<64x512xf32, #tpu.memory_space<vmem>>, vector<8x512xf32>
    %199 = arith.addf %196, %198 : vector<8x512xf32>
    %200 = vector.extract_strided_slice %199 {offsets = [0, 0], sizes = [8, 128], strides = [1, 1]} : vector<8x512xf32> to vector<8x128xf32>
    %201 = arith.negf %200 : vector<8x128xf32>
    %202 = math.exp %201 : vector<8x128xf32>
    %cst_70 = arith.constant 1.000000e+00 : f32
    %203 = vector.broadcast %cst_70 : f32 to vector<8x128xf32>
    %204 = arith.addf %203, %202 : vector<8x128xf32>
    %205 = arith.divf %203, %204 : vector<8x128xf32>
    %206 = vector.extract_strided_slice %199 {offsets = [0, 128], sizes = [8, 128], strides = [1, 1]} : vector<8x512xf32> to vector<8x128xf32>
    %207 = arith.negf %206 : vector<8x128xf32>
    %208 = math.exp %207 : vector<8x128xf32>
    %cst_71 = arith.constant 1.000000e+00 : f32
    %209 = vector.broadcast %cst_71 : f32 to vector<8x128xf32>
    %210 = arith.addf %209, %208 : vector<8x128xf32>
    %211 = arith.divf %209, %210 : vector<8x128xf32>
    %212 = vector.extract_strided_slice %199 {offsets = [0, 256], sizes = [8, 128], strides = [1, 1]} : vector<8x512xf32> to vector<8x128xf32>
    %213 = math.tanh %212 : vector<8x128xf32>
    %214 = vector.extract_strided_slice %199 {offsets = [0, 384], sizes = [8, 128], strides = [1, 1]} : vector<8x512xf32> to vector<8x128xf32>
    %215 = arith.negf %214 : vector<8x128xf32>
    %216 = math.exp %215 : vector<8x128xf32>
    %cst_72 = arith.constant 1.000000e+00 : f32
    %217 = vector.broadcast %cst_72 : f32 to vector<8x128xf32>
    %218 = arith.addf %217, %216 : vector<8x128xf32>
    %219 = arith.divf %217, %218 : vector<8x128xf32>
    %220 = arith.mulf %211, %187 : vector<8x128xf32>
    %221 = arith.mulf %205, %213 : vector<8x128xf32>
    %222 = arith.addf %220, %221 : vector<8x128xf32>
    %223 = math.tanh %222 : vector<8x128xf32>
    %224 = arith.mulf %219, %223 : vector<8x128xf32>
    %225 = arith.index_cast %193 : i32 to index
    %c0_73 = arith.constant 0 : index
    %226 = vector.load %arg11[%225, %c0_73] : memref<64x128xf32, #tpu.memory_space<vmem>>, vector<8x128xf32>
    tpu.vector_store %arg11[%225, %c0_73], %224 {strides = array<i32>} : memref<64x128xf32, #tpu.memory_space<vmem>>, vector<8x128xf32>,
    %c6_i32 = arith.constant 6 : i32
    %c8_i32_74 = arith.constant 8 : i32
    %227 = arith.muli %c6_i32, %c8_i32_74 : i32
    %228 = tpu.assume_multiple %227, 8 : i32
    %c0_75 = arith.constant 0 : index
    %c0_76 = arith.constant 0 : index
    %c0_77 = arith.constant 0 : index
    %229 = vector.load %arg3[%c0_75, %c0_76, %c0_77] : memref<2x128x512xf32, #tpu.memory_space<vmem>>, vector<1x128x512xf32>
    %230 = vector.shape_cast %229 : vector<1x128x512xf32> to vector<128x512xf32>
    %cst_78 = arith.constant dense<0.000000e+00> : vector<8x512xf32>
    %231 = tpu.matmul %224, %230, %cst_78 {dimension_numbers = #tpu.dot_dimension_numbers<[1], [0], [0], [1], [0, 0, 1, 1], [], []>} : vector<8x128xf32>, vector<128x512xf32>, vector<8x512xf32> -> vector<8x512xf32>
    %232 = arith.index_cast %228 : i32 to index
    %c0_79 = arith.constant 0 : index
    %233 = vector.load %arg10[%232, %c0_79] : memref<64x512xf32, #tpu.memory_space<vmem>>, vector<8x512xf32>
    %234 = arith.addf %231, %233 : vector<8x512xf32>
    %235 = vector.extract_strided_slice %234 {offsets = [0, 0], sizes = [8, 128], strides = [1, 1]} : vector<8x512xf32> to vector<8x128xf32>
    %236 = arith.negf %235 : vector<8x128xf32>
    %237 = math.exp %236 : vector<8x128xf32>
    %cst_80 = arith.constant 1.000000e+00 : f32
    %238 = vector.broadcast %cst_80 : f32 to vector<8x128xf32>
    %239 = arith.addf %238, %237 : vector<8x128xf32>
    %240 = arith.divf %238, %239 : vector<8x128xf32>
    %241 = vector.extract_strided_slice %234 {offsets = [0, 128], sizes = [8, 128], strides = [1, 1]} : vector<8x512xf32> to vector<8x128xf32>
    %242 = arith.negf %241 : vector<8x128xf32>
    %243 = math.exp %242 : vector<8x128xf32>
    %cst_81 = arith.constant 1.000000e+00 : f32
    %244 = vector.broadcast %cst_81 : f32 to vector<8x128xf32>
    %245 = arith.addf %244, %243 : vector<8x128xf32>
    %246 = arith.divf %244, %245 : vector<8x128xf32>
    %247 = vector.extract_strided_slice %234 {offsets = [0, 256], sizes = [8, 128], strides = [1, 1]} : vector<8x512xf32> to vector<8x128xf32>
    %248 = math.tanh %247 : vector<8x128xf32>
    %249 = vector.extract_strided_slice %234 {offsets = [0, 384], sizes = [8, 128], strides = [1, 1]} : vector<8x512xf32> to vector<8x128xf32>
    %250 = arith.negf %249 : vector<8x128xf32>
    %251 = math.exp %250 : vector<8x128xf32>
    %cst_82 = arith.constant 1.000000e+00 : f32
    %252 = vector.broadcast %cst_82 : f32 to vector<8x128xf32>
    %253 = arith.addf %252, %251 : vector<8x128xf32>
    %254 = arith.divf %252, %253 : vector<8x128xf32>
    %255 = arith.mulf %246, %222 : vector<8x128xf32>
    %256 = arith.mulf %240, %248 : vector<8x128xf32>
    %257 = arith.addf %255, %256 : vector<8x128xf32>
    %258 = math.tanh %257 : vector<8x128xf32>
    %259 = arith.mulf %254, %258 : vector<8x128xf32>
    %260 = arith.index_cast %228 : i32 to index
    %c0_83 = arith.constant 0 : index
    %261 = vector.load %arg11[%260, %c0_83] : memref<64x128xf32, #tpu.memory_space<vmem>>, vector<8x128xf32>
    tpu.vector_store %arg11[%260, %c0_83], %259 {strides = array<i32>} : memref<64x128xf32, #tpu.memory_space<vmem>>, vector<8x128xf32>,
    %c7_i32 = arith.constant 7 : i32
    %c8_i32_84 = arith.constant 8 : i32
    %262 = arith.muli %c7_i32, %c8_i32_84 : i32
    %263 = tpu.assume_multiple %262, 8 : i32
    %c0_85 = arith.constant 0 : index
    %c0_86 = arith.constant 0 : index
    %c0_87 = arith.constant 0 : index
    %264 = vector.load %arg3[%c0_85, %c0_86, %c0_87] : memref<2x128x512xf32, #tpu.memory_space<vmem>>, vector<1x128x512xf32>
    %265 = vector.shape_cast %264 : vector<1x128x512xf32> to vector<128x512xf32>
    %cst_88 = arith.constant dense<0.000000e+00> : vector<8x512xf32>
    %266 = tpu.matmul %259, %265, %cst_88 {dimension_numbers = #tpu.dot_dimension_numbers<[1], [0], [0], [1], [0, 0, 1, 1], [], []>} : vector<8x128xf32>, vector<128x512xf32>, vector<8x512xf32> -> vector<8x512xf32>
    %267 = arith.index_cast %263 : i32 to index
    %c0_89 = arith.constant 0 : index
    %268 = vector.load %arg10[%267, %c0_89] : memref<64x512xf32, #tpu.memory_space<vmem>>, vector<8x512xf32>
    %269 = arith.addf %266, %268 : vector<8x512xf32>
    %270 = vector.extract_strided_slice %269 {offsets = [0, 0], sizes = [8, 128], strides = [1, 1]} : vector<8x512xf32> to vector<8x128xf32>
    %271 = arith.negf %270 : vector<8x128xf32>
    %272 = math.exp %271 : vector<8x128xf32>
    %cst_90 = arith.constant 1.000000e+00 : f32
    %273 = vector.broadcast %cst_90 : f32 to vector<8x128xf32>
    %274 = arith.addf %273, %272 : vector<8x128xf32>
    %275 = arith.divf %273, %274 : vector<8x128xf32>
    %276 = vector.extract_strided_slice %269 {offsets = [0, 128], sizes = [8, 128], strides = [1, 1]} : vector<8x512xf32> to vector<8x128xf32>
    %277 = arith.negf %276 : vector<8x128xf32>
    %278 = math.exp %277 : vector<8x128xf32>
    %cst_91 = arith.constant 1.000000e+00 : f32
    %279 = vector.broadcast %cst_91 : f32 to vector<8x128xf32>
    %280 = arith.addf %279, %278 : vector<8x128xf32>
    %281 = arith.divf %279, %280 : vector<8x128xf32>
    %282 = vector.extract_strided_slice %269 {offsets = [0, 256], sizes = [8, 128], strides = [1, 1]} : vector<8x512xf32> to vector<8x128xf32>
    %283 = math.tanh %282 : vector<8x128xf32>
    %284 = vector.extract_strided_slice %269 {offsets = [0, 384], sizes = [8, 128], strides = [1, 1]} : vector<8x512xf32> to vector<8x128xf32>
    %285 = arith.negf %284 : vector<8x128xf32>
    %286 = math.exp %285 : vector<8x128xf32>
    %cst_92 = arith.constant 1.000000e+00 : f32
    %287 = vector.broadcast %cst_92 : f32 to vector<8x128xf32>
    %288 = arith.addf %287, %286 : vector<8x128xf32>
    %289 = arith.divf %287, %288 : vector<8x128xf32>
    %290 = arith.mulf %281, %257 : vector<8x128xf32>
    %291 = arith.mulf %275, %283 : vector<8x128xf32>
    %292 = arith.addf %290, %291 : vector<8x128xf32>
    %293 = math.tanh %292 : vector<8x128xf32>
    %294 = arith.mulf %289, %293 : vector<8x128xf32>
    %295 = arith.index_cast %263 : i32 to index
    %c0_93 = arith.constant 0 : index
    %296 = vector.load %arg11[%295, %c0_93] : memref<64x128xf32, #tpu.memory_space<vmem>>, vector<8x128xf32>
    tpu.vector_store %arg11[%295, %c0_93], %294 {strides = array<i32>} : memref<64x128xf32, #tpu.memory_space<vmem>>, vector<8x128xf32>,
    %c8_i32_94 = arith.constant 8 : i32
    %c0_i32_95 = arith.constant 0 : i32
    %c64_i32_96 = arith.constant 64 : i32
    %297 = arith.muli %c0_i32_95, %c64_i32_96 : i32
    %298 = tpu.assume_multiple %297, 64 : i32
    %299 = arith.index_cast %298 : i32 to index
    %c0_97 = arith.constant 0 : index
    %300 = vector.load %arg11[%299, %c0_97] : memref<64x128xf32, #tpu.memory_space<vmem>>, vector<64x128xf32>
    %c1 = arith.constant 1 : index
    %c0_98 = arith.constant 0 : index
    %c0_99 = arith.constant 0 : index
    %301 = vector.load %arg2[%c1, %c0_98, %c0_99] : memref<2x128x512xf32, #tpu.memory_space<vmem>>, vector<1x128x512xf32>
    %302 = vector.shape_cast %301 : vector<1x128x512xf32> to vector<128x512xf32>
    %cst_100 = arith.constant dense<0.000000e+00> : vector<64x512xf32>
    %303 = tpu.matmul %300, %302, %cst_100 {dimension_numbers = #tpu.dot_dimension_numbers<[1], [0], [0], [1], [0, 0, 1, 1], [], []>} : vector<64x128xf32>, vector<128x512xf32>, vector<64x512xf32> -> vector<64x512xf32>
    %c1_101 = arith.constant 1 : index
    %c0_102 = arith.constant 0 : index
    %c0_103 = arith.constant 0 : index
    %304 = vector.load %arg4[%c1_101, %c0_102, %c0_103] : memref<2x1x512xf32, #tpu.memory_space<vmem>>, vector<1x1x512xf32>
    %305 = vector.shape_cast %304 : vector<1x1x512xf32> to vector<1x512xf32>
    %306 = vector.broadcast %305 : vector<1x512xf32> to vector<64x512xf32>
    %307 = arith.addf %303, %306 : vector<64x512xf32>
    %308 = arith.index_cast %298 : i32 to index
    %c0_104 = arith.constant 0 : index
    %309 = vector.load %arg10[%308, %c0_104] : memref<64x512xf32, #tpu.memory_space<vmem>>, vector<64x512xf32>
    tpu.vector_store %arg10[%308, %c0_104], %307 {strides = array<i32>} : memref<64x512xf32, #tpu.memory_space<vmem>>, vector<64x512xf32>,
    %c1_i32_105 = arith.constant 1 : i32
    %c1_106 = arith.constant 1 : index
    %c0_107 = arith.constant 0 : index
    %c0_108 = arith.constant 0 : index
    %310 = vector.load %arg5[%c1_106, %c0_107, %c0_108] : memref<2x8x128xf32, #tpu.memory_space<vmem>>, vector<1x8x128xf32>
    %311 = vector.shape_cast %310 : vector<1x8x128xf32> to vector<8x128xf32>
    %c1_109 = arith.constant 1 : index
    %c0_110 = arith.constant 0 : index
    %c0_111 = arith.constant 0 : index
    %312 = vector.load %arg6[%c1_109, %c0_110, %c0_111] : memref<2x8x128xf32, #tpu.memory_space<vmem>>, vector<1x8x128xf32>
    %313 = vector.shape_cast %312 : vector<1x8x128xf32> to vector<8x128xf32>
    %c0_i32_112 = arith.constant 0 : i32
    %c8_i32_113 = arith.constant 8 : i32
    %314 = arith.muli %c0_i32_112, %c8_i32_113 : i32
    %315 = tpu.assume_multiple %314, 8 : i32
    %c1_114 = arith.constant 1 : index
    %c0_115 = arith.constant 0 : index
    %c0_116 = arith.constant 0 : index
    %316 = vector.load %arg3[%c1_114, %c0_115, %c0_116] : memref<2x128x512xf32, #tpu.memory_space<vmem>>, vector<1x128x512xf32>
    %317 = vector.shape_cast %316 : vector<1x128x512xf32> to vector<128x512xf32>
    %cst_117 = arith.constant dense<0.000000e+00> : vector<8x512xf32>
    %318 = tpu.matmul %311, %317, %cst_117 {dimension_numbers = #tpu.dot_dimension_numbers<[1], [0], [0], [1], [0, 0, 1, 1], [], []>} : vector<8x128xf32>, vector<128x512xf32>, vector<8x512xf32> -> vector<8x512xf32>
    %319 = arith.index_cast %315 : i32 to index
    %c0_118 = arith.constant 0 : index
    %320 = vector.load %arg10[%319, %c0_118] : memref<64x512xf32, #tpu.memory_space<vmem>>, vector<8x512xf32>
    %321 = arith.addf %318, %320 : vector<8x512xf32>
    %322 = vector.extract_strided_slice %321 {offsets = [0, 0], sizes = [8, 128], strides = [1, 1]} : vector<8x512xf32> to vector<8x128xf32>
    %323 = arith.negf %322 : vector<8x128xf32>
    %324 = math.exp %323 : vector<8x128xf32>
    %cst_119 = arith.constant 1.000000e+00 : f32
    %325 = vector.broadcast %cst_119 : f32 to vector<8x128xf32>
    %326 = arith.addf %325, %324 : vector<8x128xf32>
    %327 = arith.divf %325, %326 : vector<8x128xf32>
    %328 = vector.extract_strided_slice %321 {offsets = [0, 128], sizes = [8, 128], strides = [1, 1]} : vector<8x512xf32> to vector<8x128xf32>
    %329 = arith.negf %328 : vector<8x128xf32>
    %330 = math.exp %329 : vector<8x128xf32>
    %cst_120 = arith.constant 1.000000e+00 : f32
    %331 = vector.broadcast %cst_120 : f32 to vector<8x128xf32>
    %332 = arith.addf %331, %330 : vector<8x128xf32>
    %333 = arith.divf %331, %332 : vector<8x128xf32>
    %334 = vector.extract_strided_slice %321 {offsets = [0, 256], sizes = [8, 128], strides = [1, 1]} : vector<8x512xf32> to vector<8x128xf32>
    %335 = math.tanh %334 : vector<8x128xf32>
    %336 = vector.extract_strided_slice %321 {offsets = [0, 384], sizes = [8, 128], strides = [1, 1]} : vector<8x512xf32> to vector<8x128xf32>
    %337 = arith.negf %336 : vector<8x128xf32>
    %338 = math.exp %337 : vector<8x128xf32>
    %cst_121 = arith.constant 1.000000e+00 : f32
    %339 = vector.broadcast %cst_121 : f32 to vector<8x128xf32>
    %340 = arith.addf %339, %338 : vector<8x128xf32>
    %341 = arith.divf %339, %340 : vector<8x128xf32>
    %342 = arith.mulf %333, %313 : vector<8x128xf32>
    %343 = arith.mulf %327, %335 : vector<8x128xf32>
    %344 = arith.addf %342, %343 : vector<8x128xf32>
    %345 = math.tanh %344 : vector<8x128xf32>
    %346 = arith.mulf %341, %345 : vector<8x128xf32>
    %c1_i32_122 = arith.constant 1 : i32
    %c8_i32_123 = arith.constant 8 : i32
    %347 = arith.muli %c1_i32_122, %c8_i32_123 : i32
    %348 = tpu.assume_multiple %347, 8 : i32
    %c1_124 = arith.constant 1 : index
    %c0_125 = arith.constant 0 : index
    %c0_126 = arith.constant 0 : index
    %349 = vector.load %arg3[%c1_124, %c0_125, %c0_126] : memref<2x128x512xf32, #tpu.memory_space<vmem>>, vector<1x128x512xf32>
    %350 = vector.shape_cast %349 : vector<1x128x512xf32> to vector<128x512xf32>
    %cst_127 = arith.constant dense<0.000000e+00> : vector<8x512xf32>
    %351 = tpu.matmul %346, %350, %cst_127 {dimension_numbers = #tpu.dot_dimension_numbers<[1], [0], [0], [1], [0, 0, 1, 1], [], []>} : vector<8x128xf32>, vector<128x512xf32>, vector<8x512xf32> -> vector<8x512xf32>
    %352 = arith.index_cast %348 : i32 to index
    %c0_128 = arith.constant 0 : index
    %353 = vector.load %arg10[%352, %c0_128] : memref<64x512xf32, #tpu.memory_space<vmem>>, vector<8x512xf32>
    %354 = arith.addf %351, %353 : vector<8x512xf32>
    %355 = vector.extract_strided_slice %354 {offsets = [0, 0], sizes = [8, 128], strides = [1, 1]} : vector<8x512xf32> to vector<8x128xf32>
    %356 = arith.negf %355 : vector<8x128xf32>
    %357 = math.exp %356 : vector<8x128xf32>
    %cst_129 = arith.constant 1.000000e+00 : f32
    %358 = vector.broadcast %cst_129 : f32 to vector<8x128xf32>
    %359 = arith.addf %358, %357 : vector<8x128xf32>
    %360 = arith.divf %358, %359 : vector<8x128xf32>
    %361 = vector.extract_strided_slice %354 {offsets = [0, 128], sizes = [8, 128], strides = [1, 1]} : vector<8x512xf32> to vector<8x128xf32>
    %362 = arith.negf %361 : vector<8x128xf32>
    %363 = math.exp %362 : vector<8x128xf32>
    %cst_130 = arith.constant 1.000000e+00 : f32
    %364 = vector.broadcast %cst_130 : f32 to vector<8x128xf32>
    %365 = arith.addf %364, %363 : vector<8x128xf32>
    %366 = arith.divf %364, %365 : vector<8x128xf32>
    %367 = vector.extract_strided_slice %354 {offsets = [0, 256], sizes = [8, 128], strides = [1, 1]} : vector<8x512xf32> to vector<8x128xf32>
    %368 = math.tanh %367 : vector<8x128xf32>
    %369 = vector.extract_strided_slice %354 {offsets = [0, 384], sizes = [8, 128], strides = [1, 1]} : vector<8x512xf32> to vector<8x128xf32>
    %370 = arith.negf %369 : vector<8x128xf32>
    %371 = math.exp %370 : vector<8x128xf32>
    %cst_131 = arith.constant 1.000000e+00 : f32
    %372 = vector.broadcast %cst_131 : f32 to vector<8x128xf32>
    %373 = arith.addf %372, %371 : vector<8x128xf32>
    %374 = arith.divf %372, %373 : vector<8x128xf32>
    %375 = arith.mulf %366, %344 : vector<8x128xf32>
    %376 = arith.mulf %360, %368 : vector<8x128xf32>
    %377 = arith.addf %375, %376 : vector<8x128xf32>
    %378 = math.tanh %377 : vector<8x128xf32>
    %379 = arith.mulf %374, %378 : vector<8x128xf32>
    %c2_i32_132 = arith.constant 2 : i32
    %c8_i32_133 = arith.constant 8 : i32
    %380 = arith.muli %c2_i32_132, %c8_i32_133 : i32
    %381 = tpu.assume_multiple %380, 8 : i32
    %c1_134 = arith.constant 1 : index
    %c0_135 = arith.constant 0 : index
    %c0_136 = arith.constant 0 : index
    %382 = vector.load %arg3[%c1_134, %c0_135, %c0_136] : memref<2x128x512xf32, #tpu.memory_space<vmem>>, vector<1x128x512xf32>
    %383 = vector.shape_cast %382 : vector<1x128x512xf32> to vector<128x512xf32>
    %cst_137 = arith.constant dense<0.000000e+00> : vector<8x512xf32>
    %384 = tpu.matmul %379, %383, %cst_137 {dimension_numbers = #tpu.dot_dimension_numbers<[1], [0], [0], [1], [0, 0, 1, 1], [], []>} : vector<8x128xf32>, vector<128x512xf32>, vector<8x512xf32> -> vector<8x512xf32>
    %385 = arith.index_cast %381 : i32 to index
    %c0_138 = arith.constant 0 : index
    %386 = vector.load %arg10[%385, %c0_138] : memref<64x512xf32, #tpu.memory_space<vmem>>, vector<8x512xf32>
    %387 = arith.addf %384, %386 : vector<8x512xf32>
    %388 = vector.extract_strided_slice %387 {offsets = [0, 0], sizes = [8, 128], strides = [1, 1]} : vector<8x512xf32> to vector<8x128xf32>
    %389 = arith.negf %388 : vector<8x128xf32>
    %390 = math.exp %389 : vector<8x128xf32>
    %cst_139 = arith.constant 1.000000e+00 : f32
    %391 = vector.broadcast %cst_139 : f32 to vector<8x128xf32>
    %392 = arith.addf %391, %390 : vector<8x128xf32>
    %393 = arith.divf %391, %392 : vector<8x128xf32>
    %394 = vector.extract_strided_slice %387 {offsets = [0, 128], sizes = [8, 128], strides = [1, 1]} : vector<8x512xf32> to vector<8x128xf32>
    %395 = arith.negf %394 : vector<8x128xf32>
    %396 = math.exp %395 : vector<8x128xf32>
    %cst_140 = arith.constant 1.000000e+00 : f32
    %397 = vector.broadcast %cst_140 : f32 to vector<8x128xf32>
    %398 = arith.addf %397, %396 : vector<8x128xf32>
    %399 = arith.divf %397, %398 : vector<8x128xf32>
    %400 = vector.extract_strided_slice %387 {offsets = [0, 256], sizes = [8, 128], strides = [1, 1]} : vector<8x512xf32> to vector<8x128xf32>
    %401 = math.tanh %400 : vector<8x128xf32>
    %402 = vector.extract_strided_slice %387 {offsets = [0, 384], sizes = [8, 128], strides = [1, 1]} : vector<8x512xf32> to vector<8x128xf32>
    %403 = arith.negf %402 : vector<8x128xf32>
    %404 = math.exp %403 : vector<8x128xf32>
    %cst_141 = arith.constant 1.000000e+00 : f32
    %405 = vector.broadcast %cst_141 : f32 to vector<8x128xf32>
    %406 = arith.addf %405, %404 : vector<8x128xf32>
    %407 = arith.divf %405, %406 : vector<8x128xf32>
    %408 = arith.mulf %399, %377 : vector<8x128xf32>
    %409 = arith.mulf %393, %401 : vector<8x128xf32>
    %410 = arith.addf %408, %409 : vector<8x128xf32>
    %411 = math.tanh %410 : vector<8x128xf32>
    %412 = arith.mulf %407, %411 : vector<8x128xf32>
    %c3_i32_142 = arith.constant 3 : i32
    %c8_i32_143 = arith.constant 8 : i32
    %413 = arith.muli %c3_i32_142, %c8_i32_143 : i32
    %414 = tpu.assume_multiple %413, 8 : i32
    %c1_144 = arith.constant 1 : index
    %c0_145 = arith.constant 0 : index
    %c0_146 = arith.constant 0 : index
    %415 = vector.load %arg3[%c1_144, %c0_145, %c0_146] : memref<2x128x512xf32, #tpu.memory_space<vmem>>, vector<1x128x512xf32>
    %416 = vector.shape_cast %415 : vector<1x128x512xf32> to vector<128x512xf32>
    %cst_147 = arith.constant dense<0.000000e+00> : vector<8x512xf32>
    %417 = tpu.matmul %412, %416, %cst_147 {dimension_numbers = #tpu.dot_dimension_numbers<[1], [0], [0], [1], [0, 0, 1, 1], [], []>} : vector<8x128xf32>, vector<128x512xf32>, vector<8x512xf32> -> vector<8x512xf32>
    %418 = arith.index_cast %414 : i32 to index
    %c0_148 = arith.constant 0 : index
    %419 = vector.load %arg10[%418, %c0_148] : memref<64x512xf32, #tpu.memory_space<vmem>>, vector<8x512xf32>
    %420 = arith.addf %417, %419 : vector<8x512xf32>
    %421 = vector.extract_strided_slice %420 {offsets = [0, 0], sizes = [8, 128], strides = [1, 1]} : vector<8x512xf32> to vector<8x128xf32>
    %422 = arith.negf %421 : vector<8x128xf32>
    %423 = math.exp %422 : vector<8x128xf32>
    %cst_149 = arith.constant 1.000000e+00 : f32
    %424 = vector.broadcast %cst_149 : f32 to vector<8x128xf32>
    %425 = arith.addf %424, %423 : vector<8x128xf32>
    %426 = arith.divf %424, %425 : vector<8x128xf32>
    %427 = vector.extract_strided_slice %420 {offsets = [0, 128], sizes = [8, 128], strides = [1, 1]} : vector<8x512xf32> to vector<8x128xf32>
    %428 = arith.negf %427 : vector<8x128xf32>
    %429 = math.exp %428 : vector<8x128xf32>
    %cst_150 = arith.constant 1.000000e+00 : f32
    %430 = vector.broadcast %cst_150 : f32 to vector<8x128xf32>
    %431 = arith.addf %430, %429 : vector<8x128xf32>
    %432 = arith.divf %430, %431 : vector<8x128xf32>
    %433 = vector.extract_strided_slice %420 {offsets = [0, 256], sizes = [8, 128], strides = [1, 1]} : vector<8x512xf32> to vector<8x128xf32>
    %434 = math.tanh %433 : vector<8x128xf32>
    %435 = vector.extract_strided_slice %420 {offsets = [0, 384], sizes = [8, 128], strides = [1, 1]} : vector<8x512xf32> to vector<8x128xf32>
    %436 = arith.negf %435 : vector<8x128xf32>
    %437 = math.exp %436 : vector<8x128xf32>
    %cst_151 = arith.constant 1.000000e+00 : f32
    %438 = vector.broadcast %cst_151 : f32 to vector<8x128xf32>
    %439 = arith.addf %438, %437 : vector<8x128xf32>
    %440 = arith.divf %438, %439 : vector<8x128xf32>
    %441 = arith.mulf %432, %410 : vector<8x128xf32>
    %442 = arith.mulf %426, %434 : vector<8x128xf32>
    %443 = arith.addf %441, %442 : vector<8x128xf32>
    %444 = math.tanh %443 : vector<8x128xf32>
    %445 = arith.mulf %440, %444 : vector<8x128xf32>
    %c4_i32_152 = arith.constant 4 : i32
    %c8_i32_153 = arith.constant 8 : i32
    %446 = arith.muli %c4_i32_152, %c8_i32_153 : i32
    %447 = tpu.assume_multiple %446, 8 : i32
    %c1_154 = arith.constant 1 : index
    %c0_155 = arith.constant 0 : index
    %c0_156 = arith.constant 0 : index
    %448 = vector.load %arg3[%c1_154, %c0_155, %c0_156] : memref<2x128x512xf32, #tpu.memory_space<vmem>>, vector<1x128x512xf32>
    %449 = vector.shape_cast %448 : vector<1x128x512xf32> to vector<128x512xf32>
    %cst_157 = arith.constant dense<0.000000e+00> : vector<8x512xf32>
    %450 = tpu.matmul %445, %449, %cst_157 {dimension_numbers = #tpu.dot_dimension_numbers<[1], [0], [0], [1], [0, 0, 1, 1], [], []>} : vector<8x128xf32>, vector<128x512xf32>, vector<8x512xf32> -> vector<8x512xf32>
    %451 = arith.index_cast %447 : i32 to index
    %c0_158 = arith.constant 0 : index
    %452 = vector.load %arg10[%451, %c0_158] : memref<64x512xf32, #tpu.memory_space<vmem>>, vector<8x512xf32>
    %453 = arith.addf %450, %452 : vector<8x512xf32>
    %454 = vector.extract_strided_slice %453 {offsets = [0, 0], sizes = [8, 128], strides = [1, 1]} : vector<8x512xf32> to vector<8x128xf32>
    %455 = arith.negf %454 : vector<8x128xf32>
    %456 = math.exp %455 : vector<8x128xf32>
    %cst_159 = arith.constant 1.000000e+00 : f32
    %457 = vector.broadcast %cst_159 : f32 to vector<8x128xf32>
    %458 = arith.addf %457, %456 : vector<8x128xf32>
    %459 = arith.divf %457, %458 : vector<8x128xf32>
    %460 = vector.extract_strided_slice %453 {offsets = [0, 128], sizes = [8, 128], strides = [1, 1]} : vector<8x512xf32> to vector<8x128xf32>
    %461 = arith.negf %460 : vector<8x128xf32>
    %462 = math.exp %461 : vector<8x128xf32>
    %cst_160 = arith.constant 1.000000e+00 : f32
    %463 = vector.broadcast %cst_160 : f32 to vector<8x128xf32>
    %464 = arith.addf %463, %462 : vector<8x128xf32>
    %465 = arith.divf %463, %464 : vector<8x128xf32>
    %466 = vector.extract_strided_slice %453 {offsets = [0, 256], sizes = [8, 128], strides = [1, 1]} : vector<8x512xf32> to vector<8x128xf32>
    %467 = math.tanh %466 : vector<8x128xf32>
    %468 = vector.extract_strided_slice %453 {offsets = [0, 384], sizes = [8, 128], strides = [1, 1]} : vector<8x512xf32> to vector<8x128xf32>
    %469 = arith.negf %468 : vector<8x128xf32>
    %470 = math.exp %469 : vector<8x128xf32>
    %cst_161 = arith.constant 1.000000e+00 : f32
    %471 = vector.broadcast %cst_161 : f32 to vector<8x128xf32>
    %472 = arith.addf %471, %470 : vector<8x128xf32>
    %473 = arith.divf %471, %472 : vector<8x128xf32>
    %474 = arith.mulf %465, %443 : vector<8x128xf32>
    %475 = arith.mulf %459, %467 : vector<8x128xf32>
    %476 = arith.addf %474, %475 : vector<8x128xf32>
    %477 = math.tanh %476 : vector<8x128xf32>
    %478 = arith.mulf %473, %477 : vector<8x128xf32>
    %c5_i32_162 = arith.constant 5 : i32
    %c8_i32_163 = arith.constant 8 : i32
    %479 = arith.muli %c5_i32_162, %c8_i32_163 : i32
    %480 = tpu.assume_multiple %479, 8 : i32
    %c1_164 = arith.constant 1 : index
    %c0_165 = arith.constant 0 : index
    %c0_166 = arith.constant 0 : index
    %481 = vector.load %arg3[%c1_164, %c0_165, %c0_166] : memref<2x128x512xf32, #tpu.memory_space<vmem>>, vector<1x128x512xf32>
    %482 = vector.shape_cast %481 : vector<1x128x512xf32> to vector<128x512xf32>
    %cst_167 = arith.constant dense<0.000000e+00> : vector<8x512xf32>
    %483 = tpu.matmul %478, %482, %cst_167 {dimension_numbers = #tpu.dot_dimension_numbers<[1], [0], [0], [1], [0, 0, 1, 1], [], []>} : vector<8x128xf32>, vector<128x512xf32>, vector<8x512xf32> -> vector<8x512xf32>
    %484 = arith.index_cast %480 : i32 to index
    %c0_168 = arith.constant 0 : index
    %485 = vector.load %arg10[%484, %c0_168] : memref<64x512xf32, #tpu.memory_space<vmem>>, vector<8x512xf32>
    %486 = arith.addf %483, %485 : vector<8x512xf32>
    %487 = vector.extract_strided_slice %486 {offsets = [0, 0], sizes = [8, 128], strides = [1, 1]} : vector<8x512xf32> to vector<8x128xf32>
    %488 = arith.negf %487 : vector<8x128xf32>
    %489 = math.exp %488 : vector<8x128xf32>
    %cst_169 = arith.constant 1.000000e+00 : f32
    %490 = vector.broadcast %cst_169 : f32 to vector<8x128xf32>
    %491 = arith.addf %490, %489 : vector<8x128xf32>
    %492 = arith.divf %490, %491 : vector<8x128xf32>
    %493 = vector.extract_strided_slice %486 {offsets = [0, 128], sizes = [8, 128], strides = [1, 1]} : vector<8x512xf32> to vector<8x128xf32>
    %494 = arith.negf %493 : vector<8x128xf32>
    %495 = math.exp %494 : vector<8x128xf32>
    %cst_170 = arith.constant 1.000000e+00 : f32
    %496 = vector.broadcast %cst_170 : f32 to vector<8x128xf32>
    %497 = arith.addf %496, %495 : vector<8x128xf32>
    %498 = arith.divf %496, %497 : vector<8x128xf32>
    %499 = vector.extract_strided_slice %486 {offsets = [0, 256], sizes = [8, 128], strides = [1, 1]} : vector<8x512xf32> to vector<8x128xf32>
    %500 = math.tanh %499 : vector<8x128xf32>
    %501 = vector.extract_strided_slice %486 {offsets = [0, 384], sizes = [8, 128], strides = [1, 1]} : vector<8x512xf32> to vector<8x128xf32>
    %502 = arith.negf %501 : vector<8x128xf32>
    %503 = math.exp %502 : vector<8x128xf32>
    %cst_171 = arith.constant 1.000000e+00 : f32
    %504 = vector.broadcast %cst_171 : f32 to vector<8x128xf32>
    %505 = arith.addf %504, %503 : vector<8x128xf32>
    %506 = arith.divf %504, %505 : vector<8x128xf32>
    %507 = arith.mulf %498, %476 : vector<8x128xf32>
    %508 = arith.mulf %492, %500 : vector<8x128xf32>
    %509 = arith.addf %507, %508 : vector<8x128xf32>
    %510 = math.tanh %509 : vector<8x128xf32>
    %511 = arith.mulf %506, %510 : vector<8x128xf32>
    %c6_i32_172 = arith.constant 6 : i32
    %c8_i32_173 = arith.constant 8 : i32
    %512 = arith.muli %c6_i32_172, %c8_i32_173 : i32
    %513 = tpu.assume_multiple %512, 8 : i32
    %c1_174 = arith.constant 1 : index
    %c0_175 = arith.constant 0 : index
    %c0_176 = arith.constant 0 : index
    %514 = vector.load %arg3[%c1_174, %c0_175, %c0_176] : memref<2x128x512xf32, #tpu.memory_space<vmem>>, vector<1x128x512xf32>
    %515 = vector.shape_cast %514 : vector<1x128x512xf32> to vector<128x512xf32>
    %cst_177 = arith.constant dense<0.000000e+00> : vector<8x512xf32>
    %516 = tpu.matmul %511, %515, %cst_177 {dimension_numbers = #tpu.dot_dimension_numbers<[1], [0], [0], [1], [0, 0, 1, 1], [], []>} : vector<8x128xf32>, vector<128x512xf32>, vector<8x512xf32> -> vector<8x512xf32>
    %517 = arith.index_cast %513 : i32 to index
    %c0_178 = arith.constant 0 : index
    %518 = vector.load %arg10[%517, %c0_178] : memref<64x512xf32, #tpu.memory_space<vmem>>, vector<8x512xf32>
    %519 = arith.addf %516, %518 : vector<8x512xf32>
    %520 = vector.extract_strided_slice %519 {offsets = [0, 0], sizes = [8, 128], strides = [1, 1]} : vector<8x512xf32> to vector<8x128xf32>
    %521 = arith.negf %520 : vector<8x128xf32>
    %522 = math.exp %521 : vector<8x128xf32>
    %cst_179 = arith.constant 1.000000e+00 : f32
    %523 = vector.broadcast %cst_179 : f32 to vector<8x128xf32>
    %524 = arith.addf %523, %522 : vector<8x128xf32>
    %525 = arith.divf %523, %524 : vector<8x128xf32>
    %526 = vector.extract_strided_slice %519 {offsets = [0, 128], sizes = [8, 128], strides = [1, 1]} : vector<8x512xf32> to vector<8x128xf32>
    %527 = arith.negf %526 : vector<8x128xf32>
    %528 = math.exp %527 : vector<8x128xf32>
    %cst_180 = arith.constant 1.000000e+00 : f32
    %529 = vector.broadcast %cst_180 : f32 to vector<8x128xf32>
    %530 = arith.addf %529, %528 : vector<8x128xf32>
    %531 = arith.divf %529, %530 : vector<8x128xf32>
    %532 = vector.extract_strided_slice %519 {offsets = [0, 256], sizes = [8, 128], strides = [1, 1]} : vector<8x512xf32> to vector<8x128xf32>
    %533 = math.tanh %532 : vector<8x128xf32>
    %534 = vector.extract_strided_slice %519 {offsets = [0, 384], sizes = [8, 128], strides = [1, 1]} : vector<8x512xf32> to vector<8x128xf32>
    %535 = arith.negf %534 : vector<8x128xf32>
    %536 = math.exp %535 : vector<8x128xf32>
    %cst_181 = arith.constant 1.000000e+00 : f32
    %537 = vector.broadcast %cst_181 : f32 to vector<8x128xf32>
    %538 = arith.addf %537, %536 : vector<8x128xf32>
    %539 = arith.divf %537, %538 : vector<8x128xf32>
    %540 = arith.mulf %531, %509 : vector<8x128xf32>
    %541 = arith.mulf %525, %533 : vector<8x128xf32>
    %542 = arith.addf %540, %541 : vector<8x128xf32>
    %543 = math.tanh %542 : vector<8x128xf32>
    %544 = arith.mulf %539, %543 : vector<8x128xf32>
    %c7_i32_182 = arith.constant 7 : i32
    %c8_i32_183 = arith.constant 8 : i32
    %545 = arith.muli %c7_i32_182, %c8_i32_183 : i32
    %546 = tpu.assume_multiple %545, 8 : i32
    %c1_184 = arith.constant 1 : index
    %c0_185 = arith.constant 0 : index
    %c0_186 = arith.constant 0 : index
    %547 = vector.load %arg3[%c1_184, %c0_185, %c0_186] : memref<2x128x512xf32, #tpu.memory_space<vmem>>, vector<1x128x512xf32>
    %548 = vector.shape_cast %547 : vector<1x128x512xf32> to vector<128x512xf32>
    %cst_187 = arith.constant dense<0.000000e+00> : vector<8x512xf32>
    %549 = tpu.matmul %544, %548, %cst_187 {dimension_numbers = #tpu.dot_dimension_numbers<[1], [0], [0], [1], [0, 0, 1, 1], [], []>} : vector<8x128xf32>, vector<128x512xf32>, vector<8x512xf32> -> vector<8x512xf32>
    %550 = arith.index_cast %546 : i32 to index
    %c0_188 = arith.constant 0 : index
    %551 = vector.load %arg10[%550, %c0_188] : memref<64x512xf32, #tpu.memory_space<vmem>>, vector<8x512xf32>
    %552 = arith.addf %549, %551 : vector<8x512xf32>
    %553 = vector.extract_strided_slice %552 {offsets = [0, 0], sizes = [8, 128], strides = [1, 1]} : vector<8x512xf32> to vector<8x128xf32>
    %554 = arith.negf %553 : vector<8x128xf32>
    %555 = math.exp %554 : vector<8x128xf32>
    %cst_189 = arith.constant 1.000000e+00 : f32
    %556 = vector.broadcast %cst_189 : f32 to vector<8x128xf32>
    %557 = arith.addf %556, %555 : vector<8x128xf32>
    %558 = arith.divf %556, %557 : vector<8x128xf32>
    %559 = vector.extract_strided_slice %552 {offsets = [0, 128], sizes = [8, 128], strides = [1, 1]} : vector<8x512xf32> to vector<8x128xf32>
    %560 = arith.negf %559 : vector<8x128xf32>
    %561 = math.exp %560 : vector<8x128xf32>
    %cst_190 = arith.constant 1.000000e+00 : f32
    %562 = vector.broadcast %cst_190 : f32 to vector<8x128xf32>
    %563 = arith.addf %562, %561 : vector<8x128xf32>
    %564 = arith.divf %562, %563 : vector<8x128xf32>
    %565 = vector.extract_strided_slice %552 {offsets = [0, 256], sizes = [8, 128], strides = [1, 1]} : vector<8x512xf32> to vector<8x128xf32>
    %566 = math.tanh %565 : vector<8x128xf32>
    %567 = vector.extract_strided_slice %552 {offsets = [0, 384], sizes = [8, 128], strides = [1, 1]} : vector<8x512xf32> to vector<8x128xf32>
    %568 = arith.negf %567 : vector<8x128xf32>
    %569 = math.exp %568 : vector<8x128xf32>
    %cst_191 = arith.constant 1.000000e+00 : f32
    %570 = vector.broadcast %cst_191 : f32 to vector<8x128xf32>
    %571 = arith.addf %570, %569 : vector<8x128xf32>
    %572 = arith.divf %570, %571 : vector<8x128xf32>
    %573 = arith.mulf %564, %542 : vector<8x128xf32>
    %574 = arith.mulf %558, %566 : vector<8x128xf32>
    %575 = arith.addf %573, %574 : vector<8x128xf32>
    %576 = math.tanh %575 : vector<8x128xf32>
    %577 = arith.mulf %572, %576 : vector<8x128xf32>
    %c8_i32_192 = arith.constant 8 : i32
    %c0_193 = arith.constant 0 : index
    %c0_194 = arith.constant 0 : index
    %578 = vector.load %arg7[%c0_193, %c0_194] : memref<128x128xf32, #tpu.memory_space<vmem>>, vector<128x128xf32>
    %cst_195 = arith.constant dense<0.000000e+00> : vector<8x128xf32>
    %579 = tpu.matmul %577, %578, %cst_195 {dimension_numbers = #tpu.dot_dimension_numbers<[1], [0], [0], [1], [0, 0, 1, 1], [], []>} : vector<8x128xf32>, vector<128x128xf32>, vector<8x128xf32> -> vector<8x128xf32>
    %c0_196 = arith.constant 0 : index
    %c0_197 = arith.constant 0 : index
    %580 = vector.load %arg8[%c0_196, %c0_197] : memref<1x128xf32, #tpu.memory_space<vmem>>, vector<1x128xf32>
    %581 = vector.broadcast %580 : vector<1x128xf32> to vector<8x128xf32>
    %582 = arith.addf %579, %581 : vector<8x128xf32>
    %c0_198 = arith.constant 0 : index
    %c0_199 = arith.constant 0 : index
    %583 = vector.load %arg9[%c0_198, %c0_199] : memref<8x128xf32, #tpu.memory_space<vmem>>, vector<8x128xf32>
    tpu.vector_store %arg9[%c0_198, %c0_199], %582 {strides = array<i32>} : memref<8x128xf32, #tpu.memory_space<vmem>>, vector<8x128xf32>,
    return
  }
  func.func @transform_0(%arg0: i32) -> (i32, i32) {
    %c0_i32 = arith.constant 0 : i32
    %c0_i32_0 = arith.constant 0 : i32
    %c0_i32_1 = arith.constant 0 : i32
    return %c0_i32, %c0_i32_0 : i32, i32
  }
  func.func @transform_1(%arg0: i32) -> (i32, i32, i32) {
    %c0_i32 = arith.constant 0 : i32
    %c0_i32_0 = arith.constant 0 : i32
    %c0_i32_1 = arith.constant 0 : i32
    %c0_i32_2 = arith.constant 0 : i32
    return %c0_i32, %c0_i32_0, %c0_i32_1 : i32, i32, i32
  }
  func.func @transform_2(%arg0: i32) -> (i32, i32, i32) {
    %c0_i32 = arith.constant 0 : i32
    %c0_i32_0 = arith.constant 0 : i32
    %c0_i32_1 = arith.constant 0 : i32
    %c0_i32_2 = arith.constant 0 : i32
    return %c0_i32, %c0_i32_0, %c0_i32_1 : i32, i32, i32
  }
  func.func @transform_3(%arg0: i32) -> (i32, i32, i32) {
    %c0_i32 = arith.constant 0 : i32
    %c0_i32_0 = arith.constant 0 : i32
    %c0_i32_1 = arith.constant 0 : i32
    %c0_i32_2 = arith.constant 0 : i32
    return %c0_i32, %c0_i32_0, %c0_i32_1 : i32, i32, i32
  }
  func.func @transform_4(%arg0: i32) -> (i32, i32, i32) {
    %c0_i32 = arith.constant 0 : i32
    %c0_i32_0 = arith.constant 0 : i32
    %c0_i32_1 = arith.constant 0 : i32
    %c0_i32_2 = arith.constant 0 : i32
    return %c0_i32, %c0_i32_0, %c0_i32_1 : i32, i32, i32
  }
  func.func @transform_5(%arg0: i32) -> (i32, i32, i32) {
    %c0_i32 = arith.constant 0 : i32
    %c0_i32_0 = arith.constant 0 : i32
    %c0_i32_1 = arith.constant 0 : i32
    %c0_i32_2 = arith.constant 0 : i32
    return %c0_i32, %c0_i32_0, %c0_i32_1 : i32, i32, i32
  }
  func.func @transform_6(%arg0: i32) -> (i32, i32) {
    %c0_i32 = arith.constant 0 : i32
    %c0_i32_0 = arith.constant 0 : i32
    %c0_i32_1 = arith.constant 0 : i32
    return %c0_i32, %c0_i32_0 : i32, i32
  }
  func.func @transform_7(%arg0: i32) -> (i32, i32) {
    %c0_i32 = arith.constant 0 : i32
    %c0_i32_0 = arith.constant 0 : i32
    %c0_i32_1 = arith.constant 0 : i32
    return %c0_i32, %c0_i32_0 : i32, i32
  }
  func.func @transform_8(%arg0: i32) -> (i32, i32) {
    %c0_i32 = arith.constant 0 : i32
    %c0_i32_0 = arith.constant 0 : i32
    %c0_i32_1 = arith.constant 0 : i32
    return %c0_i32, %c0_i32_0 : i32, i32
  }
}

</mosaic_0001>

<bundles_post_ra>
// kernel: lstm_forward.1
= control target key start
LH: loop header
LB: loop body
LE: loop exit
PB: predicated region body
PF: predicated region fallthrough
CT: control target
= control target key end

     0   :  { %13 = vsyncpa [#allocation5], 0  ;;  %s7067_s0 = inlined_call_operand.vmem [shape: f32[64,128], index: 0, kind: input, shape index: {}]   ;;  %s7068_s1 = inlined_call_operand.hbm [shape: f32[2,128,512], index: 1, kind: input, shape index: {}]   ;;  %s7069_s2 = inlined_call_operand.hbm [shape: f32[2,128,512], index: 2, kind: input, shape index: {}]   ;;  %s7070_s3 = inlined_call_operand.vmem [shape: f32[2,1,512], index: 3, kind: input, shape index: {}]   ;;  %s7071_s4 = inlined_call_operand.vmem [shape: f32[2,8,128], index: 4, kind: input, shape index: {}]   ;;  %s7072_s5 = inlined_call_operand.vmem [shape: f32[2,8,128], index: 5, kind: input, shape index: {}]   ;;  %s7073_s6 = inlined_call_operand.vmem [shape: f32[128,128], index: 6, kind: input, shape index: {}]   ;;  %s7074_s7 = inlined_call_operand.vmem [shape: f32[1,128], index: 7, kind: input, shape index: {}]   ;;  %s7075_s8 = inlined_call_operand.vmem [shape: f32[8,128], index: 8, kind: output, shape index: {}]  }
   0x1   :  { %14 = vsyncpa [#allocation7], 0  ;;  %s5934_s27 = smov [#allocation4]   ;;  %s5886_s9 = scalar_lea.hbm %s7068_s1, 16384 }
   0x2   :  { %s22_s28 = sshll.u32 %s5934_s27, 4  ;;  %p5887_p0 = scmp.ne.s32.totalorder %s7068_s1, %s5886_s9  ;;  %s23_s28 = int_to_ptr.vmem [resolvable:$true] %s22_s28 }
   0x3   :  { %p5890_p1 = scmp.lt.u32.totalorder %s5886_s9, %s7068_s1 }
   0x5   :  { %p5892_p2 = pnand %p5890_p1, %p5887_p0 }
   0x7   :  { %5895 = shalt.err (!%p5892_p2)
}
   0x8   :  { %s5896_s14 = scalar_lea.vmem %s23_s28, 16384  ;;  %p5901_p4 = scmp.lt.s32.totalorder %s23_s28, %s23_s28 }
   0x9   :  { %p5897_p3 = scmp.ne.s32.totalorder %s23_s28, %s5896_s14  ;;  %p5902_p5 = scmp.lt.s32.totalorder %s5896_s14, %s5896_s14 }
   0xb   :  { %p5903_p6 = por %p5902_p5, %p5901_p4 }
   0xd   :  { %p5904_p7 = pnand %p5903_p6, %p5897_p3 }
   0xf   :  { %5907 = shalt.err (!%p5904_p7)
}
  0x10   :  { %s5935_s15 = smov 512   ;;  %s5936_s16 = smov 32  }
  0x11   :  { %28 = dma.hbm_to_vmem [thread:$0]  %s7068_s1, 16384, %s23_s28, [#allocation5], %s5935_s15, %s5935_s15, %s5936_s16  }
  0x12   :  { %s5937_s19 = smov [#allocation6]   ;;  %s5908_s23 = scalar_lea.hbm %s7069_s2, 16384 }
  0x13   :  { %s34_s20 = sshll.u32 %s5937_s19, 4  ;;  %p5909_p8 = scmp.ne.s32.totalorder %s7069_s2, %s5908_s23  ;;  %s35_s20 = int_to_ptr.vmem [resolvable:$true] %s34_s20 }
  0x14   :  { %p5912_p9 = scmp.lt.u32.totalorder %s5908_s23, %s7069_s2 }
  0x16   :  { %p5914_p10 = pnand %p5912_p9, %p5909_p8 }
  0x18   :  { %5917 = shalt.err (!%p5914_p10)
}
  0x19   :  { %s5918_s29 = scalar_lea.vmem %s35_s20, 16384  ;;  %p5923_p12 = scmp.lt.s32.totalorder %s35_s20, %s35_s20 }
  0x1a   :  { %p5919_p11 = scmp.ne.s32.totalorder %s35_s20, %s5918_s29  ;;  %p5924_p13 = scmp.lt.s32.totalorder %s5918_s29, %s5918_s29 }
  0x1c   :  { %p5925_p0 = por %p5924_p13, %p5923_p12 }
  0x1e   :  { %p5926_p1 = pnand %p5925_p0, %p5919_p11 }
  0x20   :  { %5929 = shalt.err (!%p5926_p1)
}
  0x21   :  { %40 = dma.hbm_to_vmem [thread:$0]  %s7069_s2, 16384, %s35_s20, [#allocation7], %s5935_s15, %s5935_s15, %s5936_s16  }
  0x22   :  { %5930 = dma.done.wait [#allocation5], 16384  }
  0x23   :  { %5931 = vsyncadd [#allocation5], 4294950912 }
  0x24   :  { %5932 = dma.done.wait [#allocation7], 16384  }
  0x25   :  { %5933 = vsyncadd [#allocation7], 4294950912  ;;  %v5938_v0 = vmov 0.0   ;;  %v66_v1 = vld [vmem:[#allocation4 + $0x8] sm:$0xff]  ;;  %v68_v3 = vld [vmem:[#allocation4 + $0x18] sm:$0xff]  ;;  %vm5940_vm0 = vmmov 0  }
  0x26   :  { %215 = vmatprep.mubr.f32.mxu0 %v5938_v0  ;;  %328 = vmatprep.mubr.f32.mxu1 %v5938_v0  ;;  %v70_v2 = vld [vmem:[#allocation4 + $0x28] sm:$0xff]  ;;  %v72_v5 = vld [vmem:[#allocation4 + $0x38] sm:$0xff]  ;;  %v65_v6 = vld [vmem:[#allocation4] sm:$0xff] }
  0x27   :  { %v4319_v4 = vpack.c.bf16 %v70_v2, %v66_v1  ;;  %v69_v7 = vld [vmem:[#allocation4 + $0x20] sm:$0xff]  ;;  %v4351_v8 = vpack.c.bf16 %v72_v5, %v68_v3  ;;  %v67_v10 = vld [vmem:[#allocation4 + $0x10] sm:$0xff]  ;;  %v74_v12 = vld [vmem:[#allocation4 + $0x48] sm:$0xff] }
  0x28   :  { %v4321_v9 = vpack.c.bf16 %v69_v7, %v65_v6  ;;  %v71_v11 = vld [vmem:[#allocation4 + $0x30] sm:$0xff]  ;;  %v78_v14 = vld [vmem:[#allocation4 + $0x68] sm:$0xff]  ;;  %v76_v15 = vld [vmem:[#allocation4 + $0x58] sm:$0xff] }
  0x29   :  { %4320 = vmatprep.subr.bf16.mxu0 %v4319_v4  ;;  %v4353_v13 = vpack.c.bf16 %v71_v11, %v67_v10  ;;  %v80_v16 = vld [vmem:[#allocation4 + $0x78] sm:$0xff]  ;;  %4352 = vmatprep.subr.bf16.mxu1 %v4351_v8  ;;  %v4323_v17 = vpack.c.bf16 %v78_v14, %v74_v12  ;;  %v73_v19 = vld [vmem:[#allocation4 + $0x40] sm:$0xff]  ;;  %v75_v21 = vld [vmem:[#allocation4 + $0x50] sm:$0xff] }
  0x2a   :  { %4322 = vmatpush1.bf16.msra.mxu0 %v4321_v9  ;;  %v4355_v18 = vpack.c.bf16 %v80_v16, %v76_v15  ;;  %v77_v20 = vld [vmem:[#allocation4 + $0x60] sm:$0xff]  ;;  %v79_v23 = vld [vmem:[#allocation4 + $0x70] sm:$0xff]  ;;  %v82_v24 = vld [vmem:[#allocation4 + $0x88] sm:$0xff] }
  0x2b   :  { %4354 = vmatpush1.bf16.msra.mxu1 %v4353_v13  ;;  %v4325_v22 = vpack.c.bf16 %v77_v20, %v73_v19  ;;  %v86_v25 = vld [vmem:[#allocation4 + $0xa8] sm:$0xff]  ;;  %4324 = vmatprep.subr.bf16.mxu0 %v4323_v17  ;;  %v4357_v26 = vpack.c.bf16 %v79_v23, %v75_v21  ;;  %v84_v28 = vld [vmem:[#allocation4 + $0x98] sm:$0xff]  ;;  %v81_v30 = vld [vmem:[#allocation4 + $0x80] sm:$0xff] }
  0x2c   :  { %4356 = vmatprep.subr.bf16.mxu1 %v4355_v18  ;;  %v4327_v27 = vpack.c.bf16 %v86_v25, %v82_v24  ;;  %v88_v29 = vld [vmem:[#allocation4 + $0xb8] sm:$0xff]  ;;  %v85_v32 = vld [vmem:[#allocation4 + $0xa0] sm:$0xff]  ;;  %v83_v33 = vld [vmem:[#allocation4 + $0x90] sm:$0xff] }
  0x2d   :  { %v4359_v31 = vpack.c.bf16 %v88_v29, %v84_v28  ;;  %v87_v34 = vld [vmem:[#allocation4 + $0xb0] sm:$0xff]  ;;  %v4329_v35 = vpack.c.bf16 %v85_v32, %v81_v30  ;;  %v90_v36 = vld [vmem:[#allocation4 + $0xc8] sm:$0xff]  ;;  %v92_v38 = vld [vmem:[#allocation4 + $0xd8] sm:$0xff] }
  0x2e   :  { %4326 = vmatpush1.bf16.msra.mxu0 %v4325_v22  ;;  %v94_v37 = vld [vmem:[#allocation4 + $0xe8] sm:$0xff]  ;;  %v4361_v39 = vpack.c.bf16 %v87_v34, %v83_v33  ;;  %v96_v41 = vld [vmem:[#allocation4 + $0xf8] sm:$0xff]  ;;  %v89_v42 = vld [vmem:[#allocation4 + $0xc0] sm:$0xff] }
  0x2f   :  { %4358 = vmatpush1.bf16.msra.mxu1 %v4357_v26  ;;  %4328 = vmatprep.subr.bf16.mxu0 %v4327_v27  ;;  %v4331_v40 = vpack.c.bf16 %v94_v37, %v90_v36  ;;  %v93_v43 = vld [vmem:[#allocation4 + $0xe0] sm:$0xff]  ;;  %v4363_v44 = vpack.c.bf16 %v96_v41, %v92_v38  ;;  %v91_v45 = vld [vmem:[#allocation4 + $0xd0] sm:$0xff]  ;;  %v98_v47 = vld [vmem:[#allocation4 + $0x108] sm:$0xff] }
  0x30   :  { %4360 = vmatprep.subr.bf16.mxu1 %v4359_v31  ;;  %v95_v46 = vld [vmem:[#allocation4 + $0xf0] sm:$0xff]  ;;  %v102_v48 = vld [vmem:[#allocation4 + $0x128] sm:$0xff]  ;;  %v100_v49 = vld [vmem:[#allocation4 + $0x118] sm:$0xff]  ;;  %v4333_v51 = vpack.c.bf16 %v93_v43, %v89_v42 }
  0x31   :  { %v104_v50 = vld [vmem:[#allocation4 + $0x138] sm:$0xff]  ;;  %v4365_v52 = vpack.c.bf16 %v95_v46, %v91_v45  ;;  %v4335_v53 = vpack.c.bf16 %v102_v48, %v98_v47  ;;  %v97_v54 = vld [vmem:[#allocation4 + $0x100] sm:$0xff]  ;;  %v99_v56 = vld [vmem:[#allocation4 + $0x110] sm:$0xff] }
  0x32   :  { %4330 = vmatpush1.bf16.msra.mxu0 %v4329_v35  ;;  %v101_v55 = vld [vmem:[#allocation4 + $0x120] sm:$0xff]  ;;  %v4367_v57 = vpack.c.bf16 %v104_v50, %v100_v49  ;;  %v103_v58 = vld [vmem:[#allocation4 + $0x130] sm:$0xff]  ;;  %v106_v59 = vld [vmem:[#allocation4 + $0x148] sm:$0xff] }
  0x33   :  { %4362 = vmatpush1.bf16.msra.mxu1 %v4361_v39  ;;  %4332 = vmatprep.subr.bf16.mxu0 %v4331_v40  ;;  %v110_v60 = vld [vmem:[#allocation4 + $0x168] sm:$0xff]  ;;  %v108_v61 = vld [vmem:[#allocation4 + $0x158] sm:$0xff]  ;;  %v4337_v63 = vpack.c.bf16 %v101_v55, %v97_v54  ;;  %v4369_v1 = vpack.c.bf16 %v103_v58, %v99_v56  ;;  %v105_v3 = vld [vmem:[#allocation4 + $0x140] sm:$0xff] }
  0x34   :  { %4364 = vmatprep.subr.bf16.mxu1 %v4363_v44  ;;  %v112_v62 = vld [vmem:[#allocation4 + $0x178] sm:$0xff]  ;;  %v4339_v2 = vpack.c.bf16 %v110_v60, %v106_v59  ;;  %v109_v4 = vld [vmem:[#allocation4 + $0x160] sm:$0xff]  ;;  %v107_v5 = vld [vmem:[#allocation4 + $0x150] sm:$0xff] }
  0x35   :  { %v4371_v6 = vpack.c.bf16 %v112_v62, %v108_v61  ;;  %v111_v7 = vld [vmem:[#allocation4 + $0x170] sm:$0xff]  ;;  %v114_v8 = vld [vmem:[#allocation4 + $0x188] sm:$0xff]  ;;  %v116_v10 = vld [vmem:[#allocation4 + $0x198] sm:$0xff]  ;;  %v4341_v12 = vpack.c.bf16 %v109_v4, %v105_v3 }
  0x36   :  { %4334 = vmatpush1.bf16.msra.mxu0 %v4333_v51  ;;  %v118_v9 = vld [vmem:[#allocation4 + $0x1a8] sm:$0xff]  ;;  %v120_v11 = vld [vmem:[#allocation4 + $0x1b8] sm:$0xff]  ;;  %v4373_v13 = vpack.c.bf16 %v111_v7, %v107_v5  ;;  %v113_v15 = vld [vmem:[#allocation4 + $0x180] sm:$0xff] }
  0x37   :  { %4366 = vmatpush1.bf16.msra.mxu1 %v4365_v52  ;;  %4336 = vmatprep.subr.bf16.mxu0 %v4335_v53  ;;  %v4343_v14 = vpack.c.bf16 %v118_v9, %v114_v8  ;;  %v117_v16 = vld [vmem:[#allocation4 + $0x1a0] sm:$0xff]  ;;  %v115_v17 = vld [vmem:[#allocation4 + $0x190] sm:$0xff]  ;;  %v4375_v18 = vpack.c.bf16 %v120_v11, %v116_v10  ;;  %v122_v20 = vld [vmem:[#allocation4 + $0x1c8] sm:$0xff] }
  0x38   :  { %4368 = vmatprep.subr.bf16.mxu1 %v4367_v57  ;;  %v119_v19 = vld [vmem:[#allocation4 + $0x1b0] sm:$0xff]  ;;  %v126_v21 = vld [vmem:[#allocation4 + $0x1e8] sm:$0xff]  ;;  %v124_v22 = vld [vmem:[#allocation4 + $0x1d8] sm:$0xff]  ;;  %v4345_v24 = vpack.c.bf16 %v117_v16, %v113_v15 }
  0x39   :  { %v128_v23 = vld [vmem:[#allocation4 + $0x1f8] sm:$0xff]  ;;  %v4377_v25 = vpack.c.bf16 %v119_v19, %v115_v17  ;;  %v4347_v26 = vpack.c.bf16 %v126_v21, %v122_v20  ;;  %v121_v27 = vld [vmem:[#allocation4 + $0x1c0] sm:$0xff]  ;;  %v123_v29 = vld [vmem:[#allocation4 + $0x1d0] sm:$0xff] }
  0x3a   :  { %4338 = vmatpush1.bf16.msra.mxu0 %v4337_v63  ;;  %v125_v28 = vld [vmem:[#allocation4 + $0x1e0] sm:$0xff]  ;;  %v4379_v30 = vpack.c.bf16 %v128_v23, %v124_v22  ;;  %v127_v31 = vld [vmem:[#allocation4 + $0x1f0] sm:$0xff]  ;;  %v415_v32 = vld [vmem:[#allocation6 + $0x8] sm:$0xff] }
  0x3b   :  { %4370 = vmatpush1.bf16.msra.mxu1 %v4369_v1  ;;  %4340 = vmatprep.subr.bf16.mxu0 %v4339_v2  ;;  %v419_v33 = vld [vmem:[#allocation6 + $0x28] sm:$0xff]  ;;  %v417_v34 = vld [vmem:[#allocation6 + $0x18] sm:$0xff]  ;;  %v4349_v36 = vpack.c.bf16 %v125_v28, %v121_v27  ;;  %v4381_v37 = vpack.c.bf16 %v127_v31, %v123_v29  ;;  %v414_v39 = vld [vmem:[#allocation6] sm:$0xff] }
  0x3c   :  { %4372 = vmatprep.subr.bf16.mxu1 %v4371_v6  ;;  %v421_v35 = vld [vmem:[#allocation6 + $0x38] sm:$0xff]  ;;  %v6012_v38 = vpack.c.bf16 %v419_v33, %v415_v32  ;;  %v418_v40 = vld [vmem:[#allocation6 + $0x20] sm:$0xff]  ;;  %v416_v42 = vld [vmem:[#allocation6 + $0x10] sm:$0xff] }
  0x3d   :  { %v6014_v41 = vpack.c.bf16 %v421_v35, %v417_v34  ;;  %v420_v43 = vld [vmem:[#allocation6 + $0x30] sm:$0xff]  ;;  %v423_v44 = vld [vmem:[#allocation6 + $0x48] sm:$0xff]  ;;  %v57_v46 = vld [vmem:[%s7067_s0] sm:$0xff]  ;;  %v6019_v47 = vpack.c.bf16 %v418_v40, %v414_v39 }
  0x3e   :  { %4342 = vmatpush1.bf16.msra.mxu0 %v4341_v12  ;;  %v427_v45 = vld [vmem:[#allocation6 + $0x68] sm:$0xff]  ;;  %v425_v48 = vld [vmem:[#allocation6 + $0x58] sm:$0xff]  ;;  %v6022_v50 = vpack.c.bf16 %v420_v43, %v416_v42  ;;  %v422_v51 = vld [vmem:[#allocation6 + $0x40] sm:$0xff] }
  0x3f   :  { %4374 = vmatpush1.bf16.msra.mxu1 %v4373_v13  ;;  %4344 = vmatprep.subr.bf16.mxu0 %v4343_v14  ;;  %v429_v49 = vld [vmem:[#allocation6 + $0x78] sm:$0xff]  ;;  %v426_v52 = vld [vmem:[#allocation6 + $0x60] sm:$0xff]  ;;  %v6025_v53 = vpack.c.bf16 %v427_v45, %v423_v44  ;;  %v424_v54 = vld [vmem:[#allocation6 + $0x50] sm:$0xff] }
  0x40   :  { %4376 = vmatprep.subr.bf16.mxu1 %v4375_v18  ;;  %v428_v55 = vld [vmem:[#allocation6 + $0x70] sm:$0xff]  ;;  %v6027_v56 = vpack.c.bf16 %v429_v49, %v425_v48  ;;  %v431_v57 = vld [vmem:[#allocation6 + $0x88] sm:$0xff]  ;;  %v6033_v60 = vpack.c.bf16 %v426_v52, %v422_v51  ;;  %v433_v61 = vld [vmem:[#allocation6 + $0x98] sm:$0xff] }
  0x41   :  { %v435_v58 = vld [vmem:[#allocation6 + $0xa8] sm:$0xff]  ;;  %v437_v62 = vld [vmem:[#allocation6 + $0xb8] sm:$0xff]  ;;  %v6037_v63 = vpack.c.bf16 %v428_v55, %v424_v54  ;;  %v430_v1 = vld [vmem:[#allocation6 + $0x80] sm:$0xff] }
  0x42   :  { %4346 = vmatpush1.bf16.msra.mxu0 %v4345_v24  ;;  %v58_v59 = vld [vmem:[%s7067_s0 + $0x8] sm:$0xff]  ;;  %v434_v2 = vld [vmem:[#allocation6 + $0xa0] sm:$0xff]  ;;  %v6041_v3 = vpack.c.bf16 %v435_v58, %v431_v57  ;;  %v432_v4 = vld [vmem:[#allocation6 + $0x90] sm:$0xff]  ;;  %v6044_v6 = vpack.c.bf16 %v437_v62, %v433_v61 }
  0x43   :  { %4378 = vmatpush1.bf16.msra.mxu1 %v4377_v25  ;;  %4348 = vmatprep.subr.bf16.mxu0 %v4347_v26  ;;  %v436_v5 = vld [vmem:[#allocation6 + $0xb0] sm:$0xff]  ;;  %v439_v7 = vld [vmem:[#allocation6 + $0xc8] sm:$0xff]  ;;  %v6050_v10 = vpack.c.bf16 %v434_v2, %v430_v1  ;;  %v441_v11 = vld [vmem:[#allocation6 + $0xd8] sm:$0xff] }
  0x44   :  { %4380 = vmatprep.subr.bf16.mxu1 %v4379_v30  ;;  %v443_v8 = vld [vmem:[#allocation6 + $0xe8] sm:$0xff]  ;;  %v59_v9 = vld [vmem:[%s7067_s0 + $0x10] sm:$0xff]  ;;  %v445_v12 = vld [vmem:[#allocation6 + $0xf8] sm:$0xff]  ;;  %v6054_v13 = vpack.c.bf16 %v436_v5, %v432_v4 }
  0x45   :  { %v438_v14 = vld [vmem:[#allocation6 + $0xc0] sm:$0xff]  ;;  %v6058_v16 = vpack.c.bf16 %v443_v8, %v439_v7  ;;  %v440_v17 = vld [vmem:[#allocation6 + $0xd0] sm:$0xff]  ;;  %v6061_v19 = vpack.c.bf16 %v445_v12, %v441_v11  ;;  %v447_v20 = vld [vmem:[#allocation6 + $0x108] sm:$0xff] }
  0x46   :  { %4350 = vmatpush1.bf16.msra.mxu0 %v4349_v36  ;;  %v442_v15 = vld [vmem:[#allocation6 + $0xe0] sm:$0xff]  ;;  %v444_v18 = vld [vmem:[#allocation6 + $0xf0] sm:$0xff]  ;;  %v451_v21 = vld [vmem:[#allocation6 + $0x128] sm:$0xff] }
  0x47   :  { %4382 = vmatpush1.bf16.msra.mxu1 %v4381_v37  ;;  %4384 = vmatprep.subr.bf16.mxu0 %v6012_v38  ;;  %v60_v22 = vld [vmem:[%s7067_s0 + $0x18] sm:$0xff]  ;;  %v6067_v23 = vpack.c.bf16 %v442_v15, %v438_v14  ;;  %v6071_v26 = vpack.c.bf16 %v444_v18, %v440_v17  ;;  %v446_v27 = vld [vmem:[#allocation6 + $0x100] sm:$0xff]  ;;  %v6075_v29 = vpack.c.bf16 %v451_v21, %v447_v20  ;;  %v448_v30 = vld [vmem:[#allocation6 + $0x110] sm:$0xff] }
  0x48   :  { %4416 = vmatprep.subr.bf16.mxu1 %v6014_v41  ;;  %v449_v24 = vld [vmem:[#allocation6 + $0x118] sm:$0xff]  ;;  %v450_v28 = vld [vmem:[#allocation6 + $0x120] sm:$0xff]  ;;  %v452_v31 = vld [vmem:[#allocation6 + $0x130] sm:$0xff] }
  0x49   :  { %216 = vmatmul.mubr.f32.vlgmr.msra.gmra.mrb[0].mxu0 %v57_v46  ;;  %v453_v25 = vld [vmem:[#allocation6 + $0x138] sm:$0xff]  ;;  %v455_v33 = vld [vmem:[#allocation6 + $0x148] sm:$0xff]  ;;  %v61_v35 = vld [vmem:[%s7067_s0 + $0x20] sm:$0xff]  ;;  %v6084_v36 = vpack.c.bf16 %v450_v28, %v446_v27  ;;  %v6088_v40 = vpack.c.bf16 %v452_v31, %v448_v30  ;;  %v131_v30 = vlaneseq }
  0x4a   :  { %329 = vmatmul.mubr.f32.vlgmr.msra.gmra.mrb[0].mxu1 %v57_v46  ;;  %4386 = vmatpush1.bf16.msra.mxu0 %v6019_v47  ;;  %v6078_v32 = vpack.c.bf16 %v453_v25, %v449_v24  ;;  %v459_v34 = vld [vmem:[#allocation6 + $0x168] sm:$0xff]  ;;  %v457_v37 = vld [vmem:[#allocation6 + $0x158] sm:$0xff]  ;;  %v454_v42 = vld [vmem:[#allocation6 + $0x140] sm:$0xff] }
  0x4b   :  { %4418 = vmatpush1.bf16.msra.mxu1 %v6022_v50  ;;  %221 = vmatprep.mubr.f32.mxu0 %v5938_v0  ;;  %v461_v39 = vld [vmem:[#allocation6 + $0x178] sm:$0xff]  ;;  %v458_v43 = vld [vmem:[#allocation6 + $0x160] sm:$0xff]  ;;  %v6092_v44 = vpack.c.bf16 %v459_v34, %v455_v33  ;;  %v456_v45 = vld [vmem:[#allocation6 + $0x150] sm:$0xff]  ;;  %v6187_v31 = vshrl.u32 %v131_v30, 7 }
  0x4c   :  { %334 = vmatprep.mubr.f32.mxu1 %v5938_v0  ;;  %4388 = vmatprep.subr.bf16.mxu0 %v6025_v53  ;;  %v460_v46 = vld [vmem:[#allocation6 + $0x170] sm:$0xff]  ;;  %v6095_v48 = vpack.c.bf16 %v461_v39, %v457_v37  ;;  %v463_v49 = vld [vmem:[#allocation6 + $0x188] sm:$0xff]  ;;  %v6101_v54 = vpack.c.bf16 %v458_v43, %v454_v42  ;;  %v465_v55 = vld [vmem:[#allocation6 + $0x198] sm:$0xff] }
  0x4d   :  { %222 = vmatmul.mubr.f32.gmra.mrb[2].mxu0 %v58_v59  ;;  %4420 = vmatprep.subr.bf16.mxu1 %v6027_v56  ;;  %v467_v51 = vld [vmem:[#allocation6 + $0x1a8] sm:$0xff]  ;;  %v469_v57 = vld [vmem:[#allocation6 + $0x1b8] sm:$0xff]  ;;  %v6105_v58 = vpack.c.bf16 %v460_v46, %v456_v45  ;;  %v466_v61 = vld [vmem:[#allocation6 + $0x1a0] sm:$0xff]  ;;  %v133_v33 = vsub.s32 0, %v6187_v31  ;;  %v145_v39 = vsub.s32 3, %v6187_v31 }
  0x4e   :  { %335 = vmatmul.mubr.f32.gmra.mrb[2].mxu1 %v58_v59  ;;  %4390 = vmatpush1.bf16.msra.mxu0 %v6033_v60  ;;  %v62_v52 = vld [vmem:[%s7067_s0 + $0x28] sm:$0xff]  ;;  %v462_v59 = vld [vmem:[#allocation6 + $0x180] sm:$0xff]  ;;  %v6109_v62 = vpack.c.bf16 %v467_v51, %v463_v49  ;;  %v464_v1 = vld [vmem:[#allocation6 + $0x190] sm:$0xff]  ;;  %v6112_v4 = vpack.c.bf16 %v469_v57, %v465_v55  ;;  %v141_v57 = vsub.s32 2, %v6187_v31 }
  0x4f   :  { %4422 = vmatpush1.bf16.msra.mxu1 %v6037_v63  ;;  %227 = vmatprep.mubr.f32.mxu0 %v5938_v0  ;;  %v468_v2 = vld [vmem:[#allocation6 + $0x1b0] sm:$0xff]  ;;  %v471_v5 = vld [vmem:[#allocation6 + $0x1c8] sm:$0xff]  ;;  %v473_v11 = vld [vmem:[#allocation6 + $0x1d8] sm:$0xff] }
  0x50   :  { %340 = vmatprep.mubr.f32.mxu1 %v5938_v0  ;;  %4392 = vmatprep.subr.bf16.mxu0 %v6041_v3  ;;  %v475_v7 = vld [vmem:[#allocation6 + $0x1e8] sm:$0xff]  ;;  %v63_v8 = vld [vmem:[%s7067_s0 + $0x30] sm:$0xff]  ;;  %v477_v12 = vld [vmem:[#allocation6 + $0x1f8] sm:$0xff]  ;;  %v6122_v14 = vpack.c.bf16 %v468_v2, %v464_v1 }
  0x51   :  { %228 = vmatmul.mubr.f32.gmra.mrb[4].mxu0 %v59_v9  ;;  %4424 = vmatprep.subr.bf16.mxu1 %v6044_v6  ;;  %v470_v15 = vld [vmem:[#allocation6 + $0x1c0] sm:$0xff]  ;;  %v6126_v18 = vpack.c.bf16 %v475_v7, %v471_v5  ;;  %v472_v20 = vld [vmem:[#allocation6 + $0x1d0] sm:$0xff]  ;;  %v64_v24 = vld [vmem:[%s7067_s0 + $0x38] sm:$0xff] }
  0x52   :  { %341 = vmatmul.mubr.f32.gmra.mrb[4].mxu1 %v59_v9  ;;  %4394 = vmatpush1.bf16.msra.mxu0 %v6050_v10  ;;  %v6118_v9 = vpack.c.bf16 %v466_v61, %v462_v59  ;;  %v474_v17 = vld [vmem:[#allocation6 + $0x1e0] sm:$0xff]  ;;  %v476_v21 = vld [vmem:[#allocation6 + $0x1f0] sm:$0xff] }
  0x53   :  { %4426 = vmatpush1.bf16.msra.mxu1 %v6054_v13  ;;  %233 = vmatprep.mubr.f32.mxu0 %v5938_v0  ;;  %v6135_v25 = vpack.c.bf16 %v474_v17, %v470_v15  ;;  %v6139_v27 = vpack.c.bf16 %v476_v21, %v472_v20  ;;  %v412_v28 = vld [vmem:[%s7071_s4] sm:$0xff] }
  0x54   :  { %346 = vmatprep.mubr.f32.mxu1 %v5938_v0  ;;  %4396 = vmatprep.subr.bf16.mxu0 %v6058_v16  ;;  %v129_v34 = vld [vmem:[%s7070_s3] sm:$0xf] }
  0x55   :  { %234 = vmatmul.mubr.f32.gmra.mrb[6].mxu0 %v60_v22  ;;  %4428 = vmatprep.subr.bf16.mxu1 %v6061_v19  ;;  %v6196_v37 = vrot.slane %v129_v34, %v133_v33  ;;  %v6207_v55 = vrot.slane %v129_v34, %v145_v39  ;;  %v6213_v61 = vrot.slane %v129_v34, %v141_v57  ;;  %v413_v17 = vld [vmem:[%s7072_s5] sm:$0xff] }
  0x56   :  { %347 = vmatmul.mubr.f32.gmra.mrb[6].mxu1 %v60_v22  ;;  %4398 = vmatpush1.bf16.msra.mxu0 %v6067_v23  ;;  %v6129_v22 = vpack.c.bf16 %v477_v12, %v473_v11 }
  0x57   :  { %4430 = vmatpush1.bf16.msra.mxu1 %v6071_v26  ;;  %239 = vmatprep.mubr.f32.mxu0 %v5938_v0 }
  0x58   :  { %352 = vmatprep.mubr.f32.mxu1 %v5938_v0  ;;  %4400 = vmatprep.subr.bf16.mxu0 %v6075_v29 }
  0x59   :  { %240 = vmatmul.mubr.f32.gmra.mrb[8].mxu0 %v61_v35  ;;  %4432 = vmatprep.subr.bf16.mxu1 %v6078_v32 }
  0x5a   :  { %353 = vmatmul.mubr.f32.gmra.mrb[8].mxu1 %v61_v35  ;;  %4402 = vmatpush1.bf16.msra.mxu0 %v6084_v36  ;;  %v137_v35 = vsub.s32 1, %v6187_v31 }
  0x5b   :  { %4434 = vmatpush1.bf16.msra.mxu1 %v6088_v40  ;;  %245 = vmatprep.mubr.f32.mxu0 %v5938_v0 }
  0x5c   :  { %358 = vmatprep.mubr.f32.mxu1 %v5938_v0  ;;  %4404 = vmatprep.subr.bf16.mxu0 %v6092_v44 }
  0x5d   :  { %246 = vmatmul.mubr.f32.gmra.mrb[10].mxu0 %v62_v52  ;;  %4436 = vmatprep.subr.bf16.mxu1 %v6095_v48 }
  0x5e   :  { %359 = vmatmul.mubr.f32.gmra.mrb[10].mxu1 %v62_v52  ;;  %4406 = vmatpush1.bf16.msra.mxu0 %v6101_v54 }
  0x5f   :  { %4438 = vmatpush1.bf16.msra.mxu1 %v6105_v58  ;;  %251 = vmatprep.mubr.f32.mxu0 %v5938_v0 }
  0x60   :  { %364 = vmatprep.mubr.f32.mxu1 %v5938_v0  ;;  %4408 = vmatprep.subr.bf16.mxu0 %v6109_v62 }
  0x61   :  { %252 = vmatmul.mubr.f32.gmra.mrb[12].mxu0 %v63_v8  ;;  %4440 = vmatprep.subr.bf16.mxu1 %v6112_v4 }
  0x62   :  { %365 = vmatmul.mubr.f32.gmra.mrb[12].mxu1 %v63_v8  ;;  %4410 = vmatpush1.bf16.msra.mxu0 %v6118_v9 }
  0x63   :  { %4442 = vmatpush1.bf16.msra.mxu1 %v6122_v14  ;;  %257 = vmatprep.mubr.f32.mxu0 %v5938_v0 }
  0x64   :  { %370 = vmatprep.mubr.f32.mxu1 %v5938_v0  ;;  %4412 = vmatprep.subr.bf16.mxu0 %v6126_v18 }
  0x65   :  { %258 = vmatmul.mubr.f32.gmra.mrb[14].mxu0 %v64_v24  ;;  %4444 = vmatprep.subr.bf16.mxu1 %v6129_v22 }
  0x66   :  { %371 = vmatmul.mubr.f32.gmra.mrb[14].mxu1 %v64_v24  ;;  %4414 = vmatpush1.bf16.msra.mxu0 %v6135_v25 }
  0x67   :  { %4446 = vmatpush1.bf16.msra.mxu1 %v6139_v27  ;;  %549 = vmatprep.mubr.f32.mxu0 %v5938_v0 }
  0x68   :  { %620 = vmatprep.mubr.f32.mxu1 %v5938_v0  ;;  %4448 = vmatprep.subr.bf16.mxu0 %v6012_v38 }
  0x69   :  { %550 = vmatmul.mubr.f32.vlgmr.msra.gmra.mrb[0].mxu0 %v412_v28  ;;  %4480 = vmatprep.subr.bf16.mxu1 %v6014_v41 }
  0x6a   :  { %621 = vmatmul.mubr.f32.vlgmr.msra.gmra.mrb[0].mxu1 %v412_v28  ;;  %4450 = vmatpush1.bf16.msra.mxu0 %v6019_v47 }
  0x6b   :  { %4482 = vmatpush1.bf16.msra.mxu1 %v6022_v50  ;;  %4452 = vmatprep.subr.bf16.mxu0 %v6025_v53 }
  0x6c   :  { %4484 = vmatprep.subr.bf16.mxu1 %v6027_v56  ;;  %787 = vmatprep.mubr.f32.mxu0 %v5938_v0 }
  0x6d   :  { %858 = vmatprep.mubr.f32.mxu1 %v5938_v0 }
  0x6e   :  { %4454 = vmatpush1.bf16.msra.mxu0 %v6033_v60 }
  0x6f   :  { %4486 = vmatpush1.bf16.msra.mxu1 %v6037_v63  ;;  %4456 = vmatprep.subr.bf16.mxu0 %v6041_v3 }
  0x70   :  { %4488 = vmatprep.subr.bf16.mxu1 %v6044_v6 }
  0x72   :  { %4458 = vmatpush1.bf16.msra.mxu0 %v6050_v10 }
  0x73   :  { %4490 = vmatpush1.bf16.msra.mxu1 %v6054_v13  ;;  %4460 = vmatprep.subr.bf16.mxu0 %v6058_v16 }
  0x74   :  { %4492 = vmatprep.subr.bf16.mxu1 %v6061_v19 }
  0x76   :  { %4462 = vmatpush1.bf16.msra.mxu0 %v6067_v23 }
  0x77   :  { %4494 = vmatpush1.bf16.msra.mxu1 %v6071_v26  ;;  %4464 = vmatprep.subr.bf16.mxu0 %v6075_v29 }
  0x78   :  { %4496 = vmatprep.subr.bf16.mxu1 %v6078_v32 }
  0x7a   :  { %4466 = vmatpush1.bf16.msra.mxu0 %v6084_v36 }
  0x7b   :  { %4498 = vmatpush1.bf16.msra.mxu1 %v6088_v40  ;;  %4468 = vmatprep.subr.bf16.mxu0 %v6092_v44 }
  0x7c   :  { %4500 = vmatprep.subr.bf16.mxu1 %v6095_v48 }
  0x7e   :  { %4470 = vmatpush1.bf16.msra.mxu0 %v6101_v54 }
  0x7f   :  { %4502 = vmatpush1.bf16.msra.mxu1 %v6105_v58  ;;  %4472 = vmatprep.subr.bf16.mxu0 %v6109_v62 }
  0x80   :  { %4504 = vmatprep.subr.bf16.mxu1 %v6112_v4 }
  0x82   :  { %4474 = vmatpush1.bf16.msra.mxu0 %v6118_v9 }
  0x83   :  { %4506 = vmatpush1.bf16.msra.mxu1 %v6122_v14  ;;  %4476 = vmatprep.subr.bf16.mxu0 %v6126_v18 }
  0x84   :  { %4508 = vmatprep.subr.bf16.mxu1 %v6129_v22 }
  0x86   :  { %4478 = vmatpush1.bf16.msra.mxu0 %v6135_v25 }
  0x87   :  { %4510 = vmatpush1.bf16.msra.mxu1 %v6139_v27  ;;  %4512 = vmatprep.subr.bf16.mxu0 %v6012_v38  ;;  %v6200_v38 = vrot.slane %v129_v34, %v137_v35 }
  0x88   :  { %4544 = vmatprep.subr.bf16.mxu1 %v6014_v41 }
 0x13c   :  { %v551_v41 = vpop.f32.mrb[0].mxu0 }
 0x13d   :  { %v5495_v42 = vadd.f32 %v551_v41, %v6196_v37  ;;  %v622_v43 = vpop.f32.mrb[0].mxu1  ;;  %v553_v45 = vpop.f32.mrb[1].mxu0 }
 0x13e   :  { %v5496_v46 = vadd.f32 %v553_v45, %v6200_v38  ;;  %v624_v49 = vpop.f32.mrb[1].mxu1  ;;  %v5511_v2 = vadd.f32 %v622_v43, %v6213_v61 }
 0x13f   :  { %v4215_v51 = vmul.f32 -1.442695, %v5495_v42  ;;  %v5512_v59 = vadd.f32 %v624_v49, %v6207_v55 }
 0x140   :  { %v4216_v52 = vmul.f32 -1.442695, %v5496_v46 }
 0x141   :  { %5630 = vpow2.f32 %v4215_v51  ;;  %v4217_v1 = vmul.f32 -1.442695, %v5512_v59 }
 0x142   :  { %5632 = vpow2.f32 %v4216_v52 }
 0x143   :  { %5634 = vpow2.f32 %v4217_v1 }
 0x144   :  { %5636 = vtanh.f32 %v5511_v2 }
 0x14b   :  { %v5631_v5 = vpop.eup %5630 }
 0x14c   :  { %v5633_v7 = vpop.eup %5632  ;;  %v630_v8 = vadd.f32 1.0, %v5631_v5 }
 0x14d   :  { %v636_v11 = vadd.f32 1.0, %v5633_v7  ;;  %v5635_v12 = vpop.eup %5634 }
 0x14e   :  { %5638 = vrcp.f32 %v630_v8  ;;  %v5637_v15 = vpop.eup %5636  ;;  %v643_v28 = vadd.f32 1.0, %v5635_v12 }
 0x14f   :  { %5640 = vrcp.f32 %v636_v11 }
 0x150   :  { %5642 = vrcp.f32 %v643_v28 }
 0x158   :  { %v5639_v20 = vpop.eup %5638 }
 0x159   :  { %v5641_v21 = vpop.eup %5640  ;;  %v647_v24 = vmul.f32 %v5639_v20, %v5637_v15 }
 0x15a   :  { %v646_v30 = vmul.f32 %v5641_v21, %v413_v17  ;;  %v5643_v41 = vpop.eup %5642 }
 0x15c   :  { %v6219_v34 = vadd.f32 %v647_v24, %v646_v30 }
 0x15e   :  { %5644 = vtanh.f32 %v6219_v34 }
 0x168   :  { %v5645_v42 = vpop.eup %5644 }
 0x169   :  { %v6222_v43 = vmul.f32 %v5645_v42, %v5643_v41  ;;  %v1131_v41 = vld [vmem:[#allocation6 + $0x8] sm:$0xff] }
 0x16a   :  { %v1135_v42 = vld [vmem:[#allocation6 + $0x28] sm:$0xff] }
 0x16b   :  { %788 = vmatmul.mubr.f32.vlgmr.msra.gmra.mrb[2].mxu0 %v6222_v43  ;;  %859 = vmatmul.mubr.f32.vlgmr.msra.gmra.mrb[2].mxu1 %v6222_v43 }
 0x16c   :  { %4514 = vmatpush1.bf16.msra.mxu0 %v6019_v47  ;;  %4546 = vmatpush1.bf16.msra.mxu1 %v6022_v50 }
 0x16d   :  { %4516 = vmatprep.subr.bf16.mxu0 %v6025_v53  ;;  %4548 = vmatprep.subr.bf16.mxu1 %v6027_v56 }
 0x16e   :  { %1026 = vmatprep.mubr.f32.mxu0 %v5938_v0  ;;  %1097 = vmatprep.mubr.f32.mxu1 %v5938_v0 }
 0x170   :  { %4518 = vmatpush1.bf16.msra.mxu0 %v6033_v60  ;;  %4550 = vmatpush1.bf16.msra.mxu1 %v6037_v63 }
 0x171   :  { %4520 = vmatprep.subr.bf16.mxu0 %v6041_v3  ;;  %4552 = vmatprep.subr.bf16.mxu1 %v6044_v6 }
 0x174   :  { %4522 = vmatpush1.bf16.msra.mxu0 %v6050_v10  ;;  %4554 = vmatpush1.bf16.msra.mxu1 %v6054_v13 }
 0x175   :  { %4524 = vmatprep.subr.bf16.mxu0 %v6058_v16  ;;  %4556 = vmatprep.subr.bf16.mxu1 %v6061_v19 }
 0x178   :  { %4526 = vmatpush1.bf16.msra.mxu0 %v6067_v23  ;;  %4558 = vmatpush1.bf16.msra.mxu1 %v6071_v26 }
 0x179   :  { %4528 = vmatprep.subr.bf16.mxu0 %v6075_v29  ;;  %4560 = vmatprep.subr.bf16.mxu1 %v6078_v32 }
 0x17c   :  { %4530 = vmatpush1.bf16.msra.mxu0 %v6084_v36  ;;  %4562 = vmatpush1.bf16.msra.mxu1 %v6088_v40 }
 0x17d   :  { %4532 = vmatprep.subr.bf16.mxu0 %v6092_v44  ;;  %4564 = vmatprep.subr.bf16.mxu1 %v6095_v48 }
 0x180   :  { %4534 = vmatpush1.bf16.msra.mxu0 %v6101_v54  ;;  %4566 = vmatpush1.bf16.msra.mxu1 %v6105_v58 }
 0x181   :  { %4536 = vmatprep.subr.bf16.mxu0 %v6109_v62  ;;  %4568 = vmatprep.subr.bf16.mxu1 %v6112_v4 }
 0x184   :  { %4538 = vmatpush1.bf16.msra.mxu0 %v6118_v9  ;;  %4570 = vmatpush1.bf16.msra.mxu1 %v6122_v14 }
 0x185   :  { %4540 = vmatprep.subr.bf16.mxu0 %v6126_v18  ;;  %4572 = vmatprep.subr.bf16.mxu1 %v6129_v22 }
 0x188   :  { %4542 = vmatpush1.bf16.msra.mxu0 %v6135_v25  ;;  %4574 = vmatpush1.bf16.msra.mxu1 %v6139_v27 }
 0x23e   :  { %v789_v47 = vpop.f32.mrb[2].mxu0  ;;  %v860_v50 = vpop.f32.mrb[2].mxu1 }
 0x23f   :  { %v5497_v53 = vadd.f32 %v789_v47, %v6196_v37  ;;  %v791_v56 = vpop.f32.mrb[3].mxu0  ;;  %v862_v60 = vpop.f32.mrb[3].mxu1  ;;  %v5513_v52 = vadd.f32 %v860_v50, %v6213_v61  ;;  %v6272_v47 = vpack.c.bf16 %v1135_v42, %v1131_v41  ;;  %v1137_v50 = vld [vmem:[#allocation6 + $0x38] sm:$0xff] }
 0x240   :  { %v5498_v63 = vadd.f32 %v791_v56, %v6200_v38  ;;  %v5514_v49 = vadd.f32 %v862_v60, %v6207_v55  ;;  %v1134_v56 = vld [vmem:[#allocation6 + $0x20] sm:$0xff]  ;;  %v1388_v41 = vld [vmem:[#allocation6 + $0x98] sm:$0xff] }
 0x241   :  { %v4218_v45 = vmul.f32 -1.442695, %v5497_v53  ;;  %v1130_v53 = vld [vmem:[#allocation6] sm:$0xff]  ;;  %4576 = vmatprep.subr.bf16.mxu0 %v6272_v47 }
 0x242   :  { %v4219_v46 = vmul.f32 -1.442695, %v5498_v63  ;;  %v4220_v51 = vmul.f32 -1.442695, %v5514_v49  ;;  %v6276_v63 = vpack.c.bf16 %v1134_v56, %v1130_v53  ;;  %v1389_v53 = vld [vmem:[#allocation6 + $0xa0] sm:$0xff] }
 0x243   :  { %5646 = vpow2.f32 %v4218_v45  ;;  %v1132_v45 = vld [vmem:[#allocation6 + $0x10] sm:$0xff] }
 0x244   :  { %5648 = vpow2.f32 %v4219_v46  ;;  %v1136_v46 = vld [vmem:[#allocation6 + $0x30] sm:$0xff] }
 0x245   :  { %5650 = vpow2.f32 %v4220_v51  ;;  %v6279_v49 = vpack.c.bf16 %v1136_v46, %v1132_v45  ;;  %v1139_v51 = vld [vmem:[#allocation6 + $0x48] sm:$0xff]  ;;  %v1387_v46 = vld [vmem:[#allocation6 + $0x90] sm:$0xff] }
 0x246   :  { %5652 = vtanh.f32 %v5513_v52  ;;  %v1143_v52 = vld [vmem:[#allocation6 + $0x68] sm:$0xff] }
 0x24d   :  { %v5647_v59 = vpop.eup %5646 }
 0x24e   :  { %v5649_v1 = vpop.eup %5648  ;;  %v868_v2 = vadd.f32 1.0, %v5647_v59  ;;  %v1141_v59 = vld [vmem:[#allocation6 + $0x58] sm:$0xff] }
 0x24f   :  { %v874_v5 = vadd.f32 1.0, %v5649_v1  ;;  %v5651_v7 = vpop.eup %5650  ;;  %v6284_v1 = vpack.c.bf16 %v1143_v52, %v1139_v51  ;;  %v1391_v51 = vld [vmem:[#allocation6 + $0xb0] sm:$0xff] }
 0x250   :  { %5654 = vrcp.f32 %v868_v2  ;;  %v5653_v8 = vpop.eup %5652  ;;  %v881_v17 = vadd.f32 1.0, %v5651_v7  ;;  %v1145_v2 = vld [vmem:[#allocation6 + $0x78] sm:$0xff]  ;;  %v1142_v7 = vld [vmem:[#allocation6 + $0x60] sm:$0xff]  ;;  %v6349_v52 = vpack.c.bf16 %v1391_v51, %v1387_v46  ;;  %v1422_v51 = vld [vmem:[#allocation6 + $0x1a8] sm:$0xff] }
 0x251   :  { %5656 = vrcp.f32 %v874_v5  ;;  %v1138_v5 = vld [vmem:[#allocation6 + $0x40] sm:$0xff] }
 0x252   :  { %5658 = vrcp.f32 %v881_v17 }
 0x25a   :  { %v5655_v11 = vpop.eup %5654 }
 0x25b   :  { %v5657_v12 = vpop.eup %5656  ;;  %v885_v15 = vmul.f32 %v5655_v11, %v5653_v8  ;;  %v6286_v8 = vpack.c.bf16 %v1145_v2, %v1141_v59  ;;  %v6288_v11 = vpack.c.bf16 %v1142_v7, %v1138_v5  ;;  %v1394_v59 = vld [vmem:[#allocation6 + $0xc8] sm:$0xff]  ;;  %v1396_v5 = vld [vmem:[#allocation6 + $0xd8] sm:$0xff] }
 0x25c   :  { %v884_v20 = vmul.f32 %v5657_v12, %v6219_v34  ;;  %v5659_v24 = vpop.eup %5658  ;;  %v1133_v34 = vld [vmem:[#allocation6 + $0x18] sm:$0xff]  ;;  %v1140_v12 = vld [vmem:[#allocation6 + $0x50] sm:$0xff]  ;;  %v1398_v2 = vld [vmem:[#allocation6 + $0xe8] sm:$0xff] }
 0x25d   :  { %v6274_v60 = vpack.c.bf16 %v1137_v50, %v1133_v34  ;;  %v1392_v34 = vld [vmem:[#allocation6 + $0xb8] sm:$0xff]  ;;  %v1385_v50 = vld [vmem:[#allocation6 + $0x80] sm:$0xff]  ;;  %v6354_v7 = vpack.c.bf16 %v1398_v2, %v1394_v59 }
 0x25e   :  { %v6263_v21 = vadd.f32 %v885_v15, %v884_v20  ;;  %v1144_v15 = vld [vmem:[#allocation6 + $0x70] sm:$0xff]  ;;  %v6344_v56 = vpack.c.bf16 %v1392_v34, %v1388_v41  ;;  %v6346_v45 = vpack.c.bf16 %v1389_v53, %v1385_v50  ;;  %v1418_v53 = vld [vmem:[#allocation6 + $0x188] sm:$0xff]  ;;  %v1420_v59 = vld [vmem:[#allocation6 + $0x198] sm:$0xff] }
 0x25f   :  { %4608 = vmatprep.subr.bf16.mxu1 %v6274_v60  ;;  %v6291_v17 = vpack.c.bf16 %v1144_v15, %v1140_v12  ;;  %v1400_v12 = vld [vmem:[#allocation6 + $0xf8] sm:$0xff]  ;;  %v1393_v15 = vld [vmem:[#allocation6 + $0xc0] sm:$0xff]  ;;  %v1411_v34 = vld [vmem:[#allocation6 + $0x150] sm:$0xff] }
 0x260   :  { %5660 = vtanh.f32 %v6263_v21  ;;  %v1415_v50 = vld [vmem:[#allocation6 + $0x170] sm:$0xff]  ;;  %v1424_v2 = vld [vmem:[#allocation6 + $0x1b8] sm:$0xff] }
 0x261   :  { %v6385_v46 = vpack.c.bf16 %v1415_v50, %v1411_v34 }
 0x26a   :  { %v5661_v28 = vpop.eup %5660 }
 0x26b   :  { %v6266_v30 = vmul.f32 %v5661_v28, %v5659_v24  ;;  %v1390_v28 = vld [vmem:[#allocation6 + $0xa8] sm:$0xff] }
 0x26d   :  { %1027 = vmatmul.mubr.f32.vlgmr.msra.gmra.mrb[4].mxu0 %v6266_v30  ;;  %1098 = vmatmul.mubr.f32.vlgmr.msra.gmra.mrb[4].mxu1 %v6266_v30 }
 0x26e   :  { %1265 = vmatprep.mubr.f32.mxu0 %v5938_v0  ;;  %1336 = vmatprep.mubr.f32.mxu1 %v5938_v0 }
 0x26f   :  { %4578 = vmatpush1.bf16.msra.mxu0 %v6276_v63  ;;  %4610 = vmatpush1.bf16.msra.mxu1 %v6279_v49 }
 0x270   :  { %4580 = vmatprep.subr.bf16.mxu0 %v6284_v1  ;;  %4612 = vmatprep.subr.bf16.mxu1 %v6286_v8 }
 0x273   :  { %4582 = vmatpush1.bf16.msra.mxu0 %v6288_v11  ;;  %4614 = vmatpush1.bf16.msra.mxu1 %v6291_v17 }
 0x274   :  { %4584 = vmatprep.subr.bf16.mxu0 %v6041_v3  ;;  %4616 = vmatprep.subr.bf16.mxu1 %v6044_v6 }
 0x277   :  { %4586 = vmatpush1.bf16.msra.mxu0 %v6050_v10  ;;  %4618 = vmatpush1.bf16.msra.mxu1 %v6054_v13 }
 0x278   :  { %4588 = vmatprep.subr.bf16.mxu0 %v6058_v16  ;;  %4620 = vmatprep.subr.bf16.mxu1 %v6061_v19 }
 0x27b   :  { %4590 = vmatpush1.bf16.msra.mxu0 %v6067_v23  ;;  %4622 = vmatpush1.bf16.msra.mxu1 %v6071_v26 }
 0x27c   :  { %4592 = vmatprep.subr.bf16.mxu0 %v6075_v29  ;;  %4624 = vmatprep.subr.bf16.mxu1 %v6078_v32 }
 0x27f   :  { %4594 = vmatpush1.bf16.msra.mxu0 %v6084_v36  ;;  %4626 = vmatpush1.bf16.msra.mxu1 %v6088_v40 }
 0x280   :  { %4596 = vmatprep.subr.bf16.mxu0 %v6092_v44  ;;  %4628 = vmatprep.subr.bf16.mxu1 %v6095_v48 }
 0x283   :  { %4598 = vmatpush1.bf16.msra.mxu0 %v6101_v54  ;;  %4630 = vmatpush1.bf16.msra.mxu1 %v6105_v58 }
 0x284   :  { %4600 = vmatprep.subr.bf16.mxu0 %v6109_v62  ;;  %4632 = vmatprep.subr.bf16.mxu1 %v6112_v4 }
 0x287   :  { %4602 = vmatpush1.bf16.msra.mxu0 %v6118_v9  ;;  %4634 = vmatpush1.bf16.msra.mxu1 %v6122_v14 }
 0x288   :  { %4604 = vmatprep.subr.bf16.mxu0 %v6126_v18  ;;  %4636 = vmatprep.subr.bf16.mxu1 %v6129_v22 }
 0x28b   :  { %4606 = vmatpush1.bf16.msra.mxu0 %v6135_v25  ;;  %4638 = vmatpush1.bf16.msra.mxu1 %v6139_v27 }
 0x28c   :  { %4640 = vmatprep.subr.bf16.mxu0 %v6272_v47  ;;  %4672 = vmatprep.subr.bf16.mxu1 %v6274_v60 }
 0x340   :  { %v1028_v3 = vpop.f32.mrb[4].mxu0  ;;  %v1099_v6 = vpop.f32.mrb[4].mxu1 }
 0x341   :  { %v5499_v10 = vadd.f32 %v1028_v3, %v6196_v37  ;;  %v1030_v13 = vpop.f32.mrb[5].mxu0  ;;  %v1101_v16 = vpop.f32.mrb[5].mxu1  ;;  %v5515_v36 = vadd.f32 %v1099_v6, %v6213_v61  ;;  %v1397_v3 = vld [vmem:[#allocation6 + $0xe0] sm:$0xff]  ;;  %v6356_v6 = vpack.c.bf16 %v1400_v12, %v1396_v5  ;;  %v6388_v5 = vpack.c.bf16 %v1422_v51, %v1418_v53 }
 0x342   :  { %v5500_v19 = vadd.f32 %v1030_v13, %v6200_v38  ;;  %v5516_v29 = vadd.f32 %v1101_v16, %v6207_v55  ;;  %v1395_v13 = vld [vmem:[#allocation6 + $0xd0] sm:$0xff]  ;;  %v6390_v12 = vpack.c.bf16 %v1424_v2, %v1420_v59 }
 0x343   :  { %v4221_v23 = vmul.f32 -1.442695, %v5499_v10  ;;  %v6358_v10 = vpack.c.bf16 %v1397_v3, %v1393_v15  ;;  %v1399_v16 = vld [vmem:[#allocation6 + $0xf0] sm:$0xff]  ;;  %v1417_v15 = vld [vmem:[#allocation6 + $0x180] sm:$0xff] }
 0x344   :  { %v4222_v26 = vmul.f32 -1.442695, %v5500_v19  ;;  %v4223_v32 = vmul.f32 -1.442695, %v5516_v29  ;;  %v6361_v19 = vpack.c.bf16 %v1399_v16, %v1395_v13  ;;  %v1404_v29 = vld [vmem:[#allocation6 + $0x118] sm:$0xff]  ;;  %v1421_v3 = vld [vmem:[#allocation6 + $0x1a0] sm:$0xff] }
 0x345   :  { %5662 = vpow2.f32 %v4221_v23  ;;  %v1402_v23 = vld [vmem:[#allocation6 + $0x108] sm:$0xff]  ;;  %v1419_v13 = vld [vmem:[#allocation6 + $0x190] sm:$0xff]  ;;  %v6393_v16 = vpack.c.bf16 %v1421_v3, %v1417_v15 }
 0x346   :  { %5664 = vpow2.f32 %v4222_v26  ;;  %v1406_v26 = vld [vmem:[#allocation6 + $0x128] sm:$0xff] }
 0x347   :  { %5666 = vpow2.f32 %v4223_v32  ;;  %v6366_v32 = vpack.c.bf16 %v1406_v26, %v1402_v23  ;;  %v1423_v23 = vld [vmem:[#allocation6 + $0x1b0] sm:$0xff]  ;;  %v1426_v26 = vld [vmem:[#allocation6 + $0x1c8] sm:$0xff] }
 0x348   :  { %5668 = vtanh.f32 %v5515_v36  ;;  %v1408_v36 = vld [vmem:[#allocation6 + $0x138] sm:$0xff] }
 0x34f   :  { %v5663_v40 = vpop.eup %5662 }
 0x350   :  { %v5665_v44 = vpop.eup %5664  ;;  %v1107_v48 = vadd.f32 1.0, %v5663_v40  ;;  %v1401_v40 = vld [vmem:[#allocation6 + $0x100] sm:$0xff] }
 0x351   :  { %v1113_v54 = vadd.f32 1.0, %v5665_v44  ;;  %v5667_v58 = vpop.eup %5666  ;;  %v1405_v44 = vld [vmem:[#allocation6 + $0x120] sm:$0xff] }
 0x352   :  { %5670 = vrcp.f32 %v1107_v48  ;;  %v5669_v62 = vpop.eup %5668  ;;  %v1120_v18 = vadd.f32 1.0, %v5667_v58  ;;  %v6368_v48 = vpack.c.bf16 %v1408_v36, %v1404_v29  ;;  %v1403_v58 = vld [vmem:[#allocation6 + $0x110] sm:$0xff]  ;;  %v1430_v29 = vld [vmem:[#allocation6 + $0x1e8] sm:$0xff]  ;;  %v6397_v36 = vpack.c.bf16 %v1423_v23, %v1419_v13 }
 0x353   :  { %5672 = vrcp.f32 %v1113_v54  ;;  %v6370_v54 = vpack.c.bf16 %v1405_v44, %v1401_v40  ;;  %v6399_v40 = vpack.c.bf16 %v1430_v29, %v1426_v26  ;;  %v1428_v44 = vld [vmem:[#allocation6 + $0x1d8] sm:$0xff] }
 0x354   :  { %5674 = vrcp.f32 %v1120_v18  ;;  %v1412_v18 = vld [vmem:[#allocation6 + $0x158] sm:$0xff] }
 0x35c   :  { %v5671_v4 = vpop.eup %5670 }
 0x35d   :  { %v5673_v9 = vpop.eup %5672  ;;  %v1124_v14 = vmul.f32 %v5671_v4, %v5669_v62  ;;  %v1407_v62 = vld [vmem:[#allocation6 + $0x130] sm:$0xff] }
 0x35e   :  { %v1123_v22 = vmul.f32 %v5673_v9, %v6263_v21  ;;  %v5675_v27 = vpop.eup %5674  ;;  %v1386_v21 = vld [vmem:[#allocation6 + $0x88] sm:$0xff]  ;;  %v6373_v4 = vpack.c.bf16 %v1407_v62, %v1403_v58  ;;  %v1432_v58 = vld [vmem:[#allocation6 + $0x1f8] sm:$0xff]  ;;  %v1425_v62 = vld [vmem:[#allocation6 + $0x1c0] sm:$0xff] }
 0x35f   :  { %v6342_v42 = vpack.c.bf16 %v1390_v28, %v1386_v21  ;;  %v1410_v9 = vld [vmem:[#allocation6 + $0x148] sm:$0xff]  ;;  %v1413_v21 = vld [vmem:[#allocation6 + $0x160] sm:$0xff] }
 0x360   :  { %v6327_v25 = vadd.f32 %v1124_v14, %v1123_v22  ;;  %v1414_v14 = vld [vmem:[#allocation6 + $0x168] sm:$0xff] }
 0x361   :  { %v6377_v22 = vpack.c.bf16 %v1414_v14, %v1410_v9  ;;  %v6402_v9 = vpack.c.bf16 %v1432_v58, %v1428_v44  ;;  %v1429_v14 = vld [vmem:[#allocation6 + $0x1e0] sm:$0xff] }
 0x362   :  { %5676 = vtanh.f32 %v6327_v25 }
 0x36c   :  { %v5677_v20 = vpop.eup %5676 }
 0x36d   :  { %v6330_v24 = vmul.f32 %v5677_v20, %v5675_v27  ;;  %v1416_v27 = vld [vmem:[#allocation6 + $0x178] sm:$0xff]  ;;  %v1409_v20 = vld [vmem:[#allocation6 + $0x140] sm:$0xff] }
 0x36e   :  { %v6380_v28 = vpack.c.bf16 %v1416_v27, %v1412_v18  ;;  %v6382_v41 = vpack.c.bf16 %v1413_v21, %v1409_v20  ;;  %v1427_v18 = vld [vmem:[#allocation6 + $0x1d0] sm:$0xff]  ;;  %v6405_v20 = vpack.c.bf16 %v1429_v14, %v1425_v62 }
 0x36f   :  { %1266 = vmatmul.mubr.f32.vlgmr.msra.gmra.mrb[6].mxu0 %v6330_v24  ;;  %1337 = vmatmul.mubr.f32.vlgmr.msra.gmra.mrb[6].mxu1 %v6330_v24  ;;  %v1431_v27 = vld [vmem:[#allocation6 + $0x1f0] sm:$0xff] }
 0x370   :  { %4642 = vmatpush1.bf16.msra.mxu0 %v6276_v63  ;;  %4674 = vmatpush1.bf16.msra.mxu1 %v6279_v49  ;;  %v6409_v21 = vpack.c.bf16 %v1431_v27, %v1427_v18 }
 0x371   :  { %4644 = vmatprep.subr.bf16.mxu0 %v6284_v1  ;;  %4676 = vmatprep.subr.bf16.mxu1 %v6286_v8 }
 0x372   :  { %1504 = vmatprep.mubr.f32.mxu0 %v5938_v0  ;;  %1575 = vmatprep.mubr.f32.mxu1 %v5938_v0 }
 0x374   :  { %4646 = vmatpush1.bf16.msra.mxu0 %v6288_v11  ;;  %4678 = vmatpush1.bf16.msra.mxu1 %v6291_v17 }
 0x375   :  { %4648 = vmatprep.subr.bf16.mxu0 %v6342_v42  ;;  %4680 = vmatprep.subr.bf16.mxu1 %v6344_v56 }
 0x378   :  { %4650 = vmatpush1.bf16.msra.mxu0 %v6346_v45  ;;  %4682 = vmatpush1.bf16.msra.mxu1 %v6349_v52 }
 0x379   :  { %4652 = vmatprep.subr.bf16.mxu0 %v6354_v7  ;;  %4684 = vmatprep.subr.bf16.mxu1 %v6356_v6 }
 0x37c   :  { %4654 = vmatpush1.bf16.msra.mxu0 %v6358_v10  ;;  %4686 = vmatpush1.bf16.msra.mxu1 %v6361_v19 }
 0x37d   :  { %4656 = vmatprep.subr.bf16.mxu0 %v6366_v32  ;;  %4688 = vmatprep.subr.bf16.mxu1 %v6368_v48 }
 0x380   :  { %4658 = vmatpush1.bf16.msra.mxu0 %v6370_v54  ;;  %4690 = vmatpush1.bf16.msra.mxu1 %v6373_v4 }
 0x381   :  { %4660 = vmatprep.subr.bf16.mxu0 %v6377_v22  ;;  %4692 = vmatprep.subr.bf16.mxu1 %v6380_v28 }
 0x384   :  { %4662 = vmatpush1.bf16.msra.mxu0 %v6382_v41  ;;  %4694 = vmatpush1.bf16.msra.mxu1 %v6385_v46 }
 0x385   :  { %4664 = vmatprep.subr.bf16.mxu0 %v6388_v5  ;;  %4696 = vmatprep.subr.bf16.mxu1 %v6390_v12 }
 0x388   :  { %4666 = vmatpush1.bf16.msra.mxu0 %v6393_v16  ;;  %4698 = vmatpush1.bf16.msra.mxu1 %v6397_v36 }
 0x389   :  { %4668 = vmatprep.subr.bf16.mxu0 %v6399_v40  ;;  %4700 = vmatprep.subr.bf16.mxu1 %v6402_v9 }
 0x38c   :  { %4670 = vmatpush1.bf16.msra.mxu0 %v6405_v20  ;;  %4702 = vmatpush1.bf16.msra.mxu1 %v6409_v21 }
 0x38d   :  { %4704 = vmatprep.subr.bf16.mxu0 %v6272_v47  ;;  %4736 = vmatprep.subr.bf16.mxu1 %v6274_v60 }
 0x442   :  { %v1267_v34 = vpop.f32.mrb[6].mxu0  ;;  %v1338_v50 = vpop.f32.mrb[6].mxu1 }
 0x443   :  { %v5501_v53 = vadd.f32 %v1267_v34, %v6196_v37  ;;  %v1269_v51 = vpop.f32.mrb[7].mxu0  ;;  %v1340_v59 = vpop.f32.mrb[7].mxu1  ;;  %v5517_v26 = vadd.f32 %v1338_v50, %v6213_v61 }
 0x444   :  { %v5502_v2 = vadd.f32 %v1269_v51, %v6200_v38  ;;  %v5518_v13 = vadd.f32 %v1340_v59, %v6207_v55 }
 0x445   :  { %v4224_v15 = vmul.f32 -1.442695, %v5501_v53 }
 0x446   :  { %v4225_v3 = vmul.f32 -1.442695, %v5502_v2  ;;  %v4226_v23 = vmul.f32 -1.442695, %v5518_v13 }
 0x447   :  { %5678 = vpow2.f32 %v4224_v15 }
 0x448   :  { %5680 = vpow2.f32 %v4225_v3 }
 0x449   :  { %5682 = vpow2.f32 %v4226_v23 }
 0x44a   :  { %5684 = vtanh.f32 %v5517_v26 }
 0x451   :  { %v5679_v29 = vpop.eup %5678 }
 0x452   :  { %v5681_v44 = vpop.eup %5680  ;;  %v1346_v58 = vadd.f32 1.0, %v5679_v29 }
 0x453   :  { %v1352_v62 = vadd.f32 1.0, %v5681_v44  ;;  %v5683_v14 = vpop.eup %5682 }
 0x454   :  { %5686 = vrcp.f32 %v1346_v58  ;;  %v5685_v18 = vpop.eup %5684  ;;  %v1359_v51 = vadd.f32 1.0, %v5683_v14 }
 0x455   :  { %5688 = vrcp.f32 %v1352_v62 }
 0x456   :  { %5690 = vrcp.f32 %v1359_v51 }
 0x45e   :  { %v5687_v27 = vpop.eup %5686 }
 0x45f   :  { %v5689_v34 = vpop.eup %5688  ;;  %v1363_v53 = vmul.f32 %v5687_v27, %v5685_v18 }
 0x460   :  { %v1362_v2 = vmul.f32 %v5689_v34, %v6327_v25  ;;  %v5691_v50 = vpop.eup %5690 }
 0x462   :  { %v6421_v59 = vadd.f32 %v1363_v53, %v1362_v2 }
 0x464   :  { %5692 = vtanh.f32 %v6421_v59 }
 0x46e   :  { %v5693_v15 = vpop.eup %5692 }
 0x46f   :  { %v6424_v3 = vmul.f32 %v5693_v15, %v5691_v50 }
 0x471   :  { %1505 = vmatmul.mubr.f32.vlgmr.msra.gmra.mrb[8].mxu0 %v6424_v3  ;;  %1576 = vmatmul.mubr.f32.vlgmr.msra.gmra.mrb[8].mxu1 %v6424_v3 }
 0x472   :  { %4706 = vmatpush1.bf16.msra.mxu0 %v6276_v63  ;;  %4738 = vmatpush1.bf16.msra.mxu1 %v6279_v49 }
 0x473   :  { %4708 = vmatprep.subr.bf16.mxu0 %v6284_v1  ;;  %4740 = vmatprep.subr.bf16.mxu1 %v6286_v8 }
 0x474   :  { %1743 = vmatprep.mubr.f32.mxu0 %v5938_v0  ;;  %1814 = vmatprep.mubr.f32.mxu1 %v5938_v0 }
 0x476   :  { %4710 = vmatpush1.bf16.msra.mxu0 %v6288_v11  ;;  %4742 = vmatpush1.bf16.msra.mxu1 %v6291_v17 }
 0x477   :  { %4712 = vmatprep.subr.bf16.mxu0 %v6342_v42  ;;  %4744 = vmatprep.subr.bf16.mxu1 %v6344_v56 }
 0x47a   :  { %4714 = vmatpush1.bf16.msra.mxu0 %v6346_v45  ;;  %4746 = vmatpush1.bf16.msra.mxu1 %v6349_v52 }
 0x47b   :  { %4716 = vmatprep.subr.bf16.mxu0 %v6354_v7  ;;  %4748 = vmatprep.subr.bf16.mxu1 %v6356_v6 }
 0x47e   :  { %4718 = vmatpush1.bf16.msra.mxu0 %v6358_v10  ;;  %4750 = vmatpush1.bf16.msra.mxu1 %v6361_v19 }
 0x47f   :  { %4720 = vmatprep.subr.bf16.mxu0 %v6366_v32  ;;  %4752 = vmatprep.subr.bf16.mxu1 %v6368_v48 }
 0x482   :  { %4722 = vmatpush1.bf16.msra.mxu0 %v6370_v54  ;;  %4754 = vmatpush1.bf16.msra.mxu1 %v6373_v4 }
 0x483   :  { %4724 = vmatprep.subr.bf16.mxu0 %v6377_v22  ;;  %4756 = vmatprep.subr.bf16.mxu1 %v6380_v28 }
 0x486   :  { %4726 = vmatpush1.bf16.msra.mxu0 %v6382_v41  ;;  %4758 = vmatpush1.bf16.msra.mxu1 %v6385_v46 }
 0x487   :  { %4728 = vmatprep.subr.bf16.mxu0 %v6388_v5  ;;  %4760 = vmatprep.subr.bf16.mxu1 %v6390_v12 }
 0x48a   :  { %4730 = vmatpush1.bf16.msra.mxu0 %v6393_v16  ;;  %4762 = vmatpush1.bf16.msra.mxu1 %v6397_v36 }
 0x48b   :  { %4732 = vmatprep.subr.bf16.mxu0 %v6399_v40  ;;  %4764 = vmatprep.subr.bf16.mxu1 %v6402_v9 }
 0x48e   :  { %4734 = vmatpush1.bf16.msra.mxu0 %v6405_v20  ;;  %4766 = vmatpush1.bf16.msra.mxu1 %v6409_v21 }
 0x48f   :  { %4768 = vmatprep.subr.bf16.mxu0 %v6272_v47  ;;  %4800 = vmatprep.subr.bf16.mxu1 %v6274_v60 }
 0x544   :  { %v1506_v25 = vpop.f32.mrb[8].mxu0  ;;  %v1577_v13 = vpop.f32.mrb[8].mxu1 }
 0x545   :  { %v5503_v23 = vadd.f32 %v1506_v25, %v6196_v37  ;;  %v1508_v26 = vpop.f32.mrb[9].mxu0  ;;  %v1579_v29 = vpop.f32.mrb[9].mxu1  ;;  %v5519_v27 = vadd.f32 %v1577_v13, %v6213_v61 }
 0x546   :  { %v5504_v44 = vadd.f32 %v1508_v26, %v6200_v38  ;;  %v5520_v14 = vadd.f32 %v1579_v29, %v6207_v55 }
 0x547   :  { %v4227_v58 = vmul.f32 -1.442695, %v5503_v23 }
 0x548   :  { %v4228_v62 = vmul.f32 -1.442695, %v5504_v44  ;;  %v4229_v18 = vmul.f32 -1.442695, %v5520_v14 }
 0x549   :  { %5694 = vpow2.f32 %v4227_v58 }
 0x54a   :  { %5696 = vpow2.f32 %v4228_v62 }
 0x54b   :  { %5698 = vpow2.f32 %v4229_v18 }
 0x54c   :  { %5700 = vtanh.f32 %v5519_v27 }
 0x553   :  { %v5695_v47 = vpop.eup %5694 }
 0x554   :  { %v5697_v34 = vpop.eup %5696  ;;  %v1585_v60 = vadd.f32 1.0, %v5695_v47 }
 0x555   :  { %v1591_v53 = vadd.f32 1.0, %v5697_v34  ;;  %v5699_v51 = vpop.eup %5698 }
 0x556   :  { %5702 = vrcp.f32 %v1585_v60  ;;  %v5701_v2 = vpop.eup %5700  ;;  %v1598_v23 = vadd.f32 1.0, %v5699_v51 }
 0x557   :  { %5704 = vrcp.f32 %v1591_v53 }
 0x558   :  { %5706 = vrcp.f32 %v1598_v23 }
 0x560   :  { %v5703_v50 = vpop.eup %5702 }
 0x561   :  { %v5705_v15 = vpop.eup %5704  ;;  %v1602_v25 = vmul.f32 %v5703_v50, %v5701_v2 }
 0x562   :  { %v1601_v26 = vmul.f32 %v5705_v15, %v6421_v59  ;;  %v5707_v13 = vpop.eup %5706 }
 0x564   :  { %v6467_v29 = vadd.f32 %v1602_v25, %v1601_v26 }
 0x566   :  { %5708 = vtanh.f32 %v6467_v29 }
 0x570   :  { %v5709_v44 = vpop.eup %5708 }
 0x571   :  { %v6470_v58 = vmul.f32 %v5709_v44, %v5707_v13 }
 0x573   :  { %1744 = vmatmul.mubr.f32.vlgmr.msra.gmra.mrb[10].mxu0 %v6470_v58  ;;  %1815 = vmatmul.mubr.f32.vlgmr.msra.gmra.mrb[10].mxu1 %v6470_v58 }
 0x574   :  { %4770 = vmatpush1.bf16.msra.mxu0 %v6276_v63  ;;  %4802 = vmatpush1.bf16.msra.mxu1 %v6279_v49 }
 0x575   :  { %4772 = vmatprep.subr.bf16.mxu0 %v6284_v1  ;;  %4804 = vmatprep.subr.bf16.mxu1 %v6286_v8 }
 0x576   :  { %1982 = vmatprep.mubr.f32.mxu0 %v5938_v0  ;;  %2053 = vmatprep.mubr.f32.mxu1 %v5938_v0 }
 0x578   :  { %4774 = vmatpush1.bf16.msra.mxu0 %v6288_v11  ;;  %4806 = vmatpush1.bf16.msra.mxu1 %v6291_v17 }
 0x579   :  { %4776 = vmatprep.subr.bf16.mxu0 %v6342_v42  ;;  %4808 = vmatprep.subr.bf16.mxu1 %v6344_v56 }
 0x57c   :  { %4778 = vmatpush1.bf16.msra.mxu0 %v6346_v45  ;;  %4810 = vmatpush1.bf16.msra.mxu1 %v6349_v52 }
 0x57d   :  { %4780 = vmatprep.subr.bf16.mxu0 %v6354_v7  ;;  %4812 = vmatprep.subr.bf16.mxu1 %v6356_v6 }
 0x580   :  { %4782 = vmatpush1.bf16.msra.mxu0 %v6358_v10  ;;  %4814 = vmatpush1.bf16.msra.mxu1 %v6361_v19 }
 0x581   :  { %4784 = vmatprep.subr.bf16.mxu0 %v6366_v32  ;;  %4816 = vmatprep.subr.bf16.mxu1 %v6368_v48 }
 0x584   :  { %4786 = vmatpush1.bf16.msra.mxu0 %v6370_v54  ;;  %4818 = vmatpush1.bf16.msra.mxu1 %v6373_v4 }
 0x585   :  { %4788 = vmatprep.subr.bf16.mxu0 %v6377_v22  ;;  %4820 = vmatprep.subr.bf16.mxu1 %v6380_v28 }
 0x588   :  { %4790 = vmatpush1.bf16.msra.mxu0 %v6382_v41  ;;  %4822 = vmatpush1.bf16.msra.mxu1 %v6385_v46 }
 0x589   :  { %4792 = vmatprep.subr.bf16.mxu0 %v6388_v5  ;;  %4824 = vmatprep.subr.bf16.mxu1 %v6390_v12 }
 0x58c   :  { %4794 = vmatpush1.bf16.msra.mxu0 %v6393_v16  ;;  %4826 = vmatpush1.bf16.msra.mxu1 %v6397_v36 }
 0x58d   :  { %4796 = vmatprep.subr.bf16.mxu0 %v6399_v40  ;;  %4828 = vmatprep.subr.bf16.mxu1 %v6402_v9 }
 0x590   :  { %4798 = vmatpush1.bf16.msra.mxu0 %v6405_v20  ;;  %4830 = vmatpush1.bf16.msra.mxu1 %v6409_v21 }
 0x646   :  { %v1745_v63 = vpop.f32.mrb[10].mxu0  ;;  %v1816_v49 = vpop.f32.mrb[10].mxu1 }
 0x647   :  { %v5505_v1 = vadd.f32 %v1745_v63, %v6196_v37  ;;  %v1747_v8 = vpop.f32.mrb[11].mxu0  ;;  %v1818_v11 = vpop.f32.mrb[11].mxu1  ;;  %v5521_v27 = vadd.f32 %v1816_v49, %v6213_v61 }
 0x648   :  { %v5506_v17 = vadd.f32 %v1747_v8, %v6200_v38  ;;  %v5522_v14 = vadd.f32 %v1818_v11, %v6207_v55  ;;  %v2091_v8 = vld [vmem:[#allocation6 + $0x28] sm:$0xff] }
 0x649   :  { %v4230_v59 = vmul.f32 -1.442695, %v5505_v1  ;;  %v2087_v1 = vld [vmem:[#allocation6 + $0x8] sm:$0xff] }
 0x64a   :  { %v4231_v62 = vmul.f32 -1.442695, %v5506_v17  ;;  %v4232_v18 = vmul.f32 -1.442695, %v5522_v14  ;;  %v4831_v11 = vpack.c.bf16 %v2091_v8, %v2087_v1  ;;  %v2093_v17 = vld [vmem:[#allocation6 + $0x38] sm:$0xff] }
 0x64b   :  { %5710 = vpow2.f32 %v4230_v59  ;;  %v2086_v59 = vld [vmem:[#allocation6] sm:$0xff] }
 0x64c   :  { %5712 = vpow2.f32 %v4231_v62  ;;  %v2090_v62 = vld [vmem:[#allocation6 + $0x20] sm:$0xff]  ;;  %4832 = vmatprep.subr.bf16.mxu0 %v4831_v11 }
 0x64d   :  { %5714 = vpow2.f32 %v4232_v18  ;;  %v4833_v18 = vpack.c.bf16 %v2090_v62, %v2086_v59  ;;  %v2334_v62 = vld [vmem:[#allocation4 + $0x200] sm:$0xff] }
 0x64e   :  { %5716 = vtanh.f32 %v5521_v27  ;;  %v2088_v27 = vld [vmem:[#allocation6 + $0x10] sm:$0xff] }
 0x655   :  { %v5711_v47 = vpop.eup %5710 }
 0x656   :  { %v5713_v34 = vpop.eup %5712  ;;  %v1824_v60 = vadd.f32 1.0, %v5711_v47  ;;  %v2092_v47 = vld [vmem:[#allocation6 + $0x30] sm:$0xff] }
 0x657   :  { %v1830_v53 = vadd.f32 1.0, %v5713_v34  ;;  %v5715_v51 = vpop.eup %5714  ;;  %v4865_v34 = vpack.c.bf16 %v2092_v47, %v2088_v27  ;;  %v2340_v27 = vld [vmem:[#allocation4 + $0x230] sm:$0xff]  ;;  %v2343_v47 = vld [vmem:[#allocation4 + $0x248] sm:$0xff] }
 0x658   :  { %5718 = vrcp.f32 %v1824_v60  ;;  %v5717_v2 = vpop.eup %5716  ;;  %v1837_v23 = vadd.f32 1.0, %v5715_v51  ;;  %v2095_v60 = vld [vmem:[#allocation6 + $0x48] sm:$0xff]  ;;  %v2097_v51 = vld [vmem:[#allocation6 + $0x58] sm:$0xff] }
 0x659   :  { %5720 = vrcp.f32 %v1830_v53  ;;  %v2099_v53 = vld [vmem:[#allocation6 + $0x68] sm:$0xff] }
 0x65a   :  { %5722 = vrcp.f32 %v1837_v23 }
 0x662   :  { %v5719_v50 = vpop.eup %5718 }
 0x663   :  { %v5721_v15 = vpop.eup %5720  ;;  %v1841_v25 = vmul.f32 %v5719_v50, %v5717_v2  ;;  %v4835_v2 = vpack.c.bf16 %v2099_v53, %v2095_v60  ;;  %v2101_v50 = vld [vmem:[#allocation6 + $0x78] sm:$0xff] }
 0x664   :  { %v1840_v26 = vmul.f32 %v5721_v15, %v6467_v29  ;;  %v5723_v44 = vpop.eup %5722  ;;  %v2089_v29 = vld [vmem:[#allocation6 + $0x18] sm:$0xff]  ;;  %v2094_v15 = vld [vmem:[#allocation6 + $0x40] sm:$0xff]  ;;  %v4867_v23 = vpack.c.bf16 %v2101_v50, %v2097_v51 }
 0x665   :  { %v4863_v14 = vpack.c.bf16 %v2093_v17, %v2089_v29  ;;  %v2345_v60 = vld [vmem:[#allocation4 + $0x258] sm:$0xff] }
 0x666   :  { %v6511_v13 = vadd.f32 %v1841_v25, %v1840_v26  ;;  %v2098_v25 = vld [vmem:[#allocation6 + $0x60] sm:$0xff]  ;;  %v2349_v53 = vld [vmem:[#allocation4 + $0x278] sm:$0xff] }
 0x667   :  { %4864 = vmatprep.subr.bf16.mxu1 %v4863_v14  ;;  %v4837_v26 = vpack.c.bf16 %v2098_v25, %v2094_v15  ;;  %v2338_v14 = vld [vmem:[#allocation4 + $0x220] sm:$0xff] }
 0x668   :  { %5724 = vtanh.f32 %v6511_v13  ;;  %v4897_v50 = vpack.c.bf16 %v2338_v14, %v2334_v62  ;;  %v2342_v25 = vld [vmem:[#allocation4 + $0x240] sm:$0xff] }
 0x672   :  { %v5725_v63 = vpop.eup %5724 }
 0x673   :  { %v6514_v49 = vmul.f32 %v5725_v63, %v5723_v44  ;;  %v2096_v44 = vld [vmem:[#allocation6 + $0x50] sm:$0xff] }
 0x674   :  { %v2100_v63 = vld [vmem:[#allocation6 + $0x70] sm:$0xff] }
 0x675   :  { %1983 = vmatmul.mubr.f32.vlgmr.msra.gmra.mrb[12].mxu0 %v6514_v49  ;;  %2054 = vmatmul.mubr.f32.vlgmr.msra.gmra.mrb[12].mxu1 %v6514_v49  ;;  %v4869_v1 = vpack.c.bf16 %v2100_v63, %v2096_v44  ;;  %v4931_v44 = vpack.c.bf16 %v2349_v53, %v2345_v60  ;;  %v2344_v63 = vld [vmem:[#allocation4 + $0x250] sm:$0xff] }
 0x676   :  { %2221 = vmatprep.mubr.f32.mxu0 %v5938_v0  ;;  %2292 = vmatprep.mubr.f32.mxu1 %v5938_v0  ;;  %v2368_v60 = vld [vmem:[#allocation4 + $0x310] sm:$0xff] }
 0x677   :  { %4834 = vmatpush1.bf16.msra.mxu0 %v4833_v18  ;;  %4866 = vmatpush1.bf16.msra.mxu1 %v4865_v34  ;;  %v2336_v18 = vld [vmem:[#allocation4 + $0x210] sm:$0xff]  ;;  %v2347_v34 = vld [vmem:[#allocation4 + $0x268] sm:$0xff] }
 0x678   :  { %4836 = vmatprep.subr.bf16.mxu0 %v4835_v2  ;;  %4868 = vmatprep.subr.bf16.mxu1 %v4867_v23  ;;  %v4929_v15 = vpack.c.bf16 %v2340_v27, %v2336_v18  ;;  %v2346_v23 = vld [vmem:[#allocation4 + $0x260] sm:$0xff]  ;;  %v2372_v53 = vld [vmem:[#allocation4 + $0x330] sm:$0xff] }
 0x679   :  { %v2366_v18 = vld [vmem:[#allocation4 + $0x300] sm:$0xff] }
 0x67a   :  { %v2370_v27 = vld [vmem:[#allocation4 + $0x320] sm:$0xff] }
 0x67b   :  { %4838 = vmatpush1.bf16.msra.mxu0 %v4837_v26  ;;  %4870 = vmatpush1.bf16.msra.mxu1 %v4869_v1  ;;  %v4899_v26 = vpack.c.bf16 %v2347_v34, %v2343_v47  ;;  %v2348_v1 = vld [vmem:[#allocation4 + $0x270] sm:$0xff] }
 0x67c   :  { %4840 = vmatprep.subr.bf16.mxu0 %v6342_v42  ;;  %4872 = vmatprep.subr.bf16.mxu1 %v6344_v56  ;;  %v2335_v42 = vld [vmem:[#allocation4 + $0x208] sm:$0xff] }
 0x67d   :  { %v2339_v56 = vld [vmem:[#allocation4 + $0x228] sm:$0xff] }
 0x67f   :  { %4842 = vmatpush1.bf16.msra.mxu0 %v6346_v45  ;;  %4874 = vmatpush1.bf16.msra.mxu1 %v6349_v52  ;;  %v2337_v45 = vld [vmem:[#allocation4 + $0x218] sm:$0xff] }
 0x680   :  { %4844 = vmatprep.subr.bf16.mxu0 %v6354_v7  ;;  %4876 = vmatprep.subr.bf16.mxu1 %v6356_v6  ;;  %v2341_v52 = vld [vmem:[#allocation4 + $0x238] sm:$0xff]  ;;  %v4895_v7 = vpack.c.bf16 %v2339_v56, %v2335_v42  ;;  %v2351_v42 = vld [vmem:[#allocation4 + $0x288] sm:$0xff] }
 0x681   :  { %v4927_v6 = vpack.c.bf16 %v2341_v52, %v2337_v45  ;;  %v2355_v56 = vld [vmem:[#allocation4 + $0x2a8] sm:$0xff]  ;;  %v2353_v45 = vld [vmem:[#allocation4 + $0x298] sm:$0xff] }
 0x682   :  { %v2357_v52 = vld [vmem:[#allocation4 + $0x2b8] sm:$0xff] }
 0x683   :  { %4846 = vmatpush1.bf16.msra.mxu0 %v6358_v10  ;;  %4878 = vmatpush1.bf16.msra.mxu1 %v6361_v19 }
 0x684   :  { %4848 = vmatprep.subr.bf16.mxu0 %v6366_v32  ;;  %4880 = vmatprep.subr.bf16.mxu1 %v6368_v48 }
 0x687   :  { %4850 = vmatpush1.bf16.msra.mxu0 %v6370_v54  ;;  %4882 = vmatpush1.bf16.msra.mxu1 %v6373_v4 }
 0x688   :  { %4852 = vmatprep.subr.bf16.mxu0 %v6377_v22  ;;  %4884 = vmatprep.subr.bf16.mxu1 %v6380_v28 }
 0x68b   :  { %4854 = vmatpush1.bf16.msra.mxu0 %v6382_v41  ;;  %4886 = vmatpush1.bf16.msra.mxu1 %v6385_v46 }
 0x68c   :  { %4856 = vmatprep.subr.bf16.mxu0 %v6388_v5  ;;  %4888 = vmatprep.subr.bf16.mxu1 %v6390_v12 }
 0x68f   :  { %4858 = vmatpush1.bf16.msra.mxu0 %v6393_v16  ;;  %4890 = vmatpush1.bf16.msra.mxu1 %v6397_v36 }
 0x690   :  { %4860 = vmatprep.subr.bf16.mxu0 %v6399_v40  ;;  %4892 = vmatprep.subr.bf16.mxu1 %v6402_v9 }
 0x693   :  { %4862 = vmatpush1.bf16.msra.mxu0 %v6405_v20  ;;  %4894 = vmatpush1.bf16.msra.mxu1 %v6409_v21 }
 0x694   :  { %4896 = vmatprep.subr.bf16.mxu0 %v4895_v7  ;;  %4928 = vmatprep.subr.bf16.mxu1 %v4927_v6  ;;  %v4901_v7 = vpack.c.bf16 %v2346_v23, %v2342_v25  ;;  %v4933_v6 = vpack.c.bf16 %v2348_v1, %v2344_v63  ;;  %v4913_v25 = vpack.c.bf16 %v2370_v27, %v2366_v18  ;;  %v2686_v27 = vld [vmem:[#allocation6 + $0x210] sm:$0xff] }
 0x695   :  { %v4945_v23 = vpack.c.bf16 %v2372_v53, %v2368_v60  ;;  %v2697_v60 = vld [vmem:[#allocation6 + $0x268] sm:$0xff]  ;;  %v2695_v53 = vld [vmem:[#allocation6 + $0x258] sm:$0xff] }
 0x748   :  { %v1984_v10 = vpop.f32.mrb[12].mxu0  ;;  %v2055_v19 = vpop.f32.mrb[12].mxu1 }
 0x749   :  { %v5507_v32 = vadd.f32 %v1984_v10, %v6196_v37  ;;  %v1986_v48 = vpop.f32.mrb[13].mxu0  ;;  %v2057_v54 = vpop.f32.mrb[13].mxu1  ;;  %v5523_v5 = vadd.f32 %v2055_v19, %v6213_v61  ;;  %v2350_v10 = vld [vmem:[#allocation4 + $0x280] sm:$0xff] }
 0x74a   :  { %v5508_v4 = vadd.f32 %v1986_v48, %v6200_v38  ;;  %v5524_v41 = vadd.f32 %v2057_v54, %v6207_v55  ;;  %v2354_v19 = vld [vmem:[#allocation4 + $0x2a0] sm:$0xff]  ;;  %v4935_v48 = vpack.c.bf16 %v2357_v52, %v2353_v45  ;;  %v2352_v54 = vld [vmem:[#allocation4 + $0x290] sm:$0xff]  ;;  %v2383_v45 = vld [vmem:[#allocation4 + $0x388] sm:$0xff] }
 0x74b   :  { %v4233_v22 = vmul.f32 -1.442695, %v5507_v32  ;;  %v4903_v32 = vpack.c.bf16 %v2355_v56, %v2351_v42  ;;  %v2376_v42 = vld [vmem:[#allocation4 + $0x350] sm:$0xff]  ;;  %v2387_v52 = vld [vmem:[#allocation4 + $0x3a8] sm:$0xff] }
 0x74c   :  { %v4234_v28 = vmul.f32 -1.442695, %v5508_v4  ;;  %v4235_v46 = vmul.f32 -1.442695, %v5524_v41  ;;  %v2356_v4 = vld [vmem:[#allocation4 + $0x2b0] sm:$0xff]  ;;  %v2361_v41 = vld [vmem:[#allocation4 + $0x2d8] sm:$0xff] }
 0x74d   :  { %5726 = vpow2.f32 %v4233_v22  ;;  %v2359_v22 = vld [vmem:[#allocation4 + $0x2c8] sm:$0xff]  ;;  %v2380_v56 = vld [vmem:[#allocation4 + $0x370] sm:$0xff] }
 0x74e   :  { %5728 = vpow2.f32 %v4234_v28  ;;  %v2363_v28 = vld [vmem:[#allocation4 + $0x2e8] sm:$0xff] }
 0x74f   :  { %5730 = vpow2.f32 %v4235_v46  ;;  %v2365_v46 = vld [vmem:[#allocation4 + $0x2f8] sm:$0xff] }
 0x750   :  { %5732 = vtanh.f32 %v5523_v5  ;;  %v4905_v5 = vpack.c.bf16 %v2354_v19, %v2350_v10  ;;  %v4949_v19 = vpack.c.bf16 %v2380_v56, %v2376_v42  ;;  %v2705_v42 = vld [vmem:[#allocation6 + $0x2a8] sm:$0xff]  ;;  %v2703_v56 = vld [vmem:[#allocation6 + $0x298] sm:$0xff] }
 0x757   :  { %v5727_v12 = vpop.eup %5726 }
 0x758   :  { %v5729_v16 = vpop.eup %5728  ;;  %v2063_v36 = vadd.f32 1.0, %v5727_v12  ;;  %v4937_v12 = vpack.c.bf16 %v2356_v4, %v2352_v54  ;;  %v4919_v54 = vpack.c.bf16 %v2387_v52, %v2383_v45  ;;  %v2707_v52 = vld [vmem:[#allocation6 + $0x2b8] sm:$0xff] }
 0x759   :  { %v2069_v40 = vadd.f32 1.0, %v5729_v16  ;;  %v5731_v9 = vpop.eup %5730  ;;  %v2358_v16 = vld [vmem:[#allocation4 + $0x2c0] sm:$0xff] }
 0x75a   :  { %5734 = vrcp.f32 %v2063_v36  ;;  %v5733_v20 = vpop.eup %5732  ;;  %v2076_v11 = vadd.f32 1.0, %v5731_v9  ;;  %v2362_v36 = vld [vmem:[#allocation4 + $0x2e0] sm:$0xff]  ;;  %v4939_v9 = vpack.c.bf16 %v2365_v46, %v2361_v41  ;;  %v2391_v41 = vld [vmem:[#allocation4 + $0x3c8] sm:$0xff] }
 0x75b   :  { %5736 = vrcp.f32 %v2069_v40  ;;  %v4907_v40 = vpack.c.bf16 %v2363_v28, %v2359_v22  ;;  %v4909_v62 = vpack.c.bf16 %v2362_v36, %v2358_v16  ;;  %v2384_v22 = vld [vmem:[#allocation4 + $0x390] sm:$0xff]  ;;  %v2395_v46 = vld [vmem:[#allocation4 + $0x3e8] sm:$0xff] }
 0x75c   :  { %5738 = vrcp.f32 %v2076_v11  ;;  %v2369_v11 = vld [vmem:[#allocation4 + $0x318] sm:$0xff]  ;;  %v2388_v28 = vld [vmem:[#allocation4 + $0x3b0] sm:$0xff] }
 0x75d   :  { %v4953_v36 = vpack.c.bf16 %v2388_v28, %v2384_v22  ;;  %v2713_v22 = vld [vmem:[#allocation6 + $0x2e8] sm:$0xff]  ;;  %v2711_v28 = vld [vmem:[#allocation6 + $0x2d8] sm:$0xff] }
 0x764   :  { %v5735_v21 = vpop.eup %5734 }
 0x765   :  { %v5737_v8 = vpop.eup %5736  ;;  %v2080_v29 = vmul.f32 %v5735_v21, %v5733_v20  ;;  %v2360_v20 = vld [vmem:[#allocation4 + $0x2d0] sm:$0xff] }
 0x766   :  { %v2079_v17 = vmul.f32 %v5737_v8, %v6511_v13  ;;  %v5739_v51 = vpop.eup %5738  ;;  %v2364_v21 = vld [vmem:[#allocation4 + $0x2f0] sm:$0xff]  ;;  %v2367_v8 = vld [vmem:[#allocation4 + $0x308] sm:$0xff] }
 0x767   :  { %v4941_v14 = vpack.c.bf16 %v2364_v21, %v2360_v20  ;;  %v2394_v21 = vld [vmem:[#allocation4 + $0x3e0] sm:$0xff] }
 0x768   :  { %v6549_v59 = vadd.f32 %v2080_v29, %v2079_v17  ;;  %v2371_v29 = vld [vmem:[#allocation4 + $0x328] sm:$0xff]  ;;  %v2373_v17 = vld [vmem:[#allocation4 + $0x338] sm:$0xff] }
 0x769   :  { %v4911_v47 = vpack.c.bf16 %v2371_v29, %v2367_v8  ;;  %v4943_v34 = vpack.c.bf16 %v2373_v17, %v2369_v11  ;;  %v2392_v8 = vld [vmem:[#allocation4 + $0x3d0] sm:$0xff] }
 0x76a   :  { %5740 = vtanh.f32 %v6549_v59  ;;  %v2396_v29 = vld [vmem:[#allocation4 + $0x3f0] sm:$0xff] }
 0x76b   :  { %v4957_v17 = vpack.c.bf16 %v2396_v29, %v2392_v8  ;;  %v2721_v8 = vld [vmem:[#allocation6 + $0x328] sm:$0xff]  ;;  %v2719_v29 = vld [vmem:[#allocation6 + $0x318] sm:$0xff] }
 0x774   :  { %v5741_v2 = vpop.eup %5740 }
 0x775   :  { %v6552_v13 = vmul.f32 %v5741_v2, %v5739_v51  ;;  %v2375_v51 = vld [vmem:[#allocation4 + $0x348] sm:$0xff] }
 0x776   :  { %v2379_v2 = vld [vmem:[#allocation4 + $0x368] sm:$0xff] }
 0x777   :  { %2222 = vmatmul.mubr.f32.vlgmr.msra.gmra.mrb[14].mxu0 %v6552_v13  ;;  %2293 = vmatmul.mubr.f32.vlgmr.msra.gmra.mrb[14].mxu1 %v6552_v13  ;;  %v4915_v63 = vpack.c.bf16 %v2379_v2, %v2375_v51  ;;  %v2699_v2 = vld [vmem:[#allocation6 + $0x278] sm:$0xff] }
 0x778   :  { %4898 = vmatpush1.bf16.msra.mxu0 %v4897_v50  ;;  %4930 = vmatpush1.bf16.msra.mxu1 %v4929_v15  ;;  %v2377_v50 = vld [vmem:[#allocation4 + $0x358] sm:$0xff] }
 0x779   :  { %4900 = vmatprep.subr.bf16.mxu0 %v4899_v26  ;;  %4932 = vmatprep.subr.bf16.mxu1 %v4931_v44  ;;  %v2381_v15 = vld [vmem:[#allocation4 + $0x378] sm:$0xff]  ;;  %v2374_v26 = vld [vmem:[#allocation4 + $0x340] sm:$0xff] }
 0x77a   :  { %2485 = vmatprep.mubr.f32.mxu0 %v5938_v0  ;;  %2598 = vmatprep.mubr.f32.mxu1 %v5938_v0  ;;  %v2378_v44 = vld [vmem:[#allocation4 + $0x360] sm:$0xff]  ;;  %v4947_v1 = vpack.c.bf16 %v2381_v15, %v2377_v50 }
 0x77b   :  { %v4917_v10 = vpack.c.bf16 %v2378_v44, %v2374_v26  ;;  %v2692_v50 = vld [vmem:[#allocation6 + $0x240] sm:$0xff]  ;;  %v2694_v26 = vld [vmem:[#allocation6 + $0x250] sm:$0xff] }
 0x77c   :  { %4902 = vmatpush1.bf16.msra.mxu0 %v4901_v7  ;;  %4934 = vmatpush1.bf16.msra.mxu1 %v4933_v6  ;;  %v2385_v7 = vld [vmem:[#allocation4 + $0x398] sm:$0xff]  ;;  %v2696_v15 = vld [vmem:[#allocation6 + $0x260] sm:$0xff]  ;;  %v2698_v44 = vld [vmem:[#allocation6 + $0x270] sm:$0xff] }
 0x77d   :  { %4904 = vmatprep.subr.bf16.mxu0 %v4903_v32  ;;  %4936 = vmatprep.subr.bf16.mxu1 %v4935_v48  ;;  %v2389_v6 = vld [vmem:[#allocation4 + $0x3b8] sm:$0xff]  ;;  %v2382_v32 = vld [vmem:[#allocation4 + $0x380] sm:$0xff] }
 0x77e   :  { %v2386_v48 = vld [vmem:[#allocation4 + $0x3a0] sm:$0xff]  ;;  %v4951_v4 = vpack.c.bf16 %v2389_v6, %v2385_v7 }
 0x77f   :  { %v4921_v16 = vpack.c.bf16 %v2386_v48, %v2382_v32  ;;  %v2700_v7 = vld [vmem:[#allocation6 + $0x280] sm:$0xff]  ;;  %v2702_v32 = vld [vmem:[#allocation6 + $0x290] sm:$0xff] }
 0x780   :  { %4906 = vmatpush1.bf16.msra.mxu0 %v4905_v5  ;;  %4938 = vmatpush1.bf16.msra.mxu1 %v4937_v12  ;;  %v2393_v5 = vld [vmem:[#allocation4 + $0x3d8] sm:$0xff]  ;;  %v2704_v6 = vld [vmem:[#allocation6 + $0x2a0] sm:$0xff]  ;;  %v2706_v48 = vld [vmem:[#allocation6 + $0x2b0] sm:$0xff] }
 0x781   :  { %4908 = vmatprep.subr.bf16.mxu0 %v4907_v40  ;;  %4940 = vmatprep.subr.bf16.mxu1 %v4939_v9  ;;  %v2397_v12 = vld [vmem:[#allocation4 + $0x3f8] sm:$0xff]  ;;  %v2390_v40 = vld [vmem:[#allocation4 + $0x3c0] sm:$0xff]  ;;  %v4923_v9 = vpack.c.bf16 %v2395_v46, %v2391_v41 }
 0x782   :  { %v4955_v20 = vpack.c.bf16 %v2397_v12, %v2393_v5  ;;  %v4925_v11 = vpack.c.bf16 %v2394_v21, %v2390_v40  ;;  %v2715_v46 = vld [vmem:[#allocation6 + $0x2f8] sm:$0xff]  ;;  %v2708_v5 = vld [vmem:[#allocation6 + $0x2c0] sm:$0xff]  ;;  %v2710_v40 = vld [vmem:[#allocation6 + $0x2d0] sm:$0xff] }
 0x783   :  { %v2712_v12 = vld [vmem:[#allocation6 + $0x2e0] sm:$0xff] }
 0x784   :  { %4910 = vmatpush1.bf16.msra.mxu0 %v4909_v62  ;;  %4942 = vmatpush1.bf16.msra.mxu1 %v4941_v14  ;;  %v2684_v62 = vld [vmem:[#allocation6 + $0x200] sm:$0xff] }
 0x785   :  { %4912 = vmatprep.subr.bf16.mxu0 %v4911_v47  ;;  %4944 = vmatprep.subr.bf16.mxu1 %v4943_v34  ;;  %v2690_v47 = vld [vmem:[#allocation6 + $0x230] sm:$0xff]  ;;  %v2693_v34 = vld [vmem:[#allocation6 + $0x248] sm:$0xff] }
 0x786   :  { %v6598_v51 = vpack.c.bf16 %v2697_v60, %v2693_v34 }
 0x788   :  { %4914 = vmatpush1.bf16.msra.mxu0 %v4913_v25  ;;  %4946 = vmatpush1.bf16.msra.mxu1 %v4945_v23  ;;  %v6600_v25 = vpack.c.bf16 %v2699_v2, %v2695_v53  ;;  %v6602_v23 = vpack.c.bf16 %v2696_v15, %v2692_v50  ;;  %v2727_v53 = vld [vmem:[#allocation6 + $0x358] sm:$0xff]  ;;  %v2724_v50 = vld [vmem:[#allocation6 + $0x340] sm:$0xff] }
 0x789   :  { %4916 = vmatprep.subr.bf16.mxu0 %v4915_v63  ;;  %4948 = vmatprep.subr.bf16.mxu1 %v4947_v1  ;;  %v6605_v63 = vpack.c.bf16 %v2698_v44, %v2694_v26  ;;  %v2701_v1 = vld [vmem:[#allocation6 + $0x288] sm:$0xff]  ;;  %v2731_v2 = vld [vmem:[#allocation6 + $0x378] sm:$0xff]  ;;  %v2728_v26 = vld [vmem:[#allocation6 + $0x360] sm:$0xff] }
 0x78a   :  { %v6610_v45 = vpack.c.bf16 %v2705_v42, %v2701_v1  ;;  %v6646_v15 = vpack.c.bf16 %v2731_v2, %v2727_v53  ;;  %v2726_v44 = vld [vmem:[#allocation6 + $0x350] sm:$0xff]  ;;  %v6649_v42 = vpack.c.bf16 %v2728_v26, %v2724_v50 }
 0x78b   :  { %v2730_v1 = vld [vmem:[#allocation6 + $0x370] sm:$0xff] }
 0x78c   :  { %4918 = vmatpush1.bf16.msra.mxu0 %v4917_v10  ;;  %4950 = vmatpush1.bf16.msra.mxu1 %v4949_v19  ;;  %v6612_v10 = vpack.c.bf16 %v2707_v52, %v2703_v56  ;;  %v6614_v19 = vpack.c.bf16 %v2704_v6, %v2700_v7  ;;  %v2733_v56 = vld [vmem:[#allocation6 + $0x388] sm:$0xff]  ;;  %v2735_v7 = vld [vmem:[#allocation6 + $0x398] sm:$0xff]  ;;  %v6653_v6 = vpack.c.bf16 %v2730_v1, %v2726_v44 }
 0x78d   :  { %4920 = vmatprep.subr.bf16.mxu0 %v4919_v54  ;;  %4952 = vmatprep.subr.bf16.mxu1 %v4951_v4  ;;  %v6617_v54 = vpack.c.bf16 %v2706_v48, %v2702_v32  ;;  %v2709_v4 = vld [vmem:[#allocation6 + $0x2c8] sm:$0xff]  ;;  %v2739_v48 = vld [vmem:[#allocation6 + $0x3b8] sm:$0xff] }
 0x78e   :  { %v6622_v41 = vpack.c.bf16 %v2713_v22, %v2709_v4  ;;  %v2737_v52 = vld [vmem:[#allocation6 + $0x3a8] sm:$0xff]  ;;  %v2732_v4 = vld [vmem:[#allocation6 + $0x380] sm:$0xff] }
 0x78f   :  { %v6655_v32 = vpack.c.bf16 %v2737_v52, %v2733_v56  ;;  %v2736_v22 = vld [vmem:[#allocation6 + $0x3a0] sm:$0xff] }
 0x790   :  { %4922 = vmatpush1.bf16.msra.mxu0 %v4921_v16  ;;  %4954 = vmatpush1.bf16.msra.mxu1 %v4953_v36  ;;  %v6624_v16 = vpack.c.bf16 %v2715_v46, %v2711_v28  ;;  %v6626_v36 = vpack.c.bf16 %v2712_v12, %v2708_v5  ;;  %v6658_v28 = vpack.c.bf16 %v2739_v48, %v2735_v7  ;;  %v2734_v46 = vld [vmem:[#allocation6 + $0x390] sm:$0xff] }
 0x791   :  { %4924 = vmatprep.subr.bf16.mxu0 %v4923_v9  ;;  %4956 = vmatprep.subr.bf16.mxu1 %v4955_v20  ;;  %v2714_v9 = vld [vmem:[#allocation6 + $0x2f0] sm:$0xff]  ;;  %v2717_v20 = vld [vmem:[#allocation6 + $0x308] sm:$0xff]  ;;  %v6661_v12 = vpack.c.bf16 %v2736_v22, %v2732_v4 }
 0x792   :  { %v6629_v21 = vpack.c.bf16 %v2714_v9, %v2710_v40  ;;  %v2738_v5 = vld [vmem:[#allocation6 + $0x3b0] sm:$0xff]  ;;  %v2741_v9 = vld [vmem:[#allocation6 + $0x3c8] sm:$0xff] }
 0x793   :  { %v6665_v40 = vpack.c.bf16 %v2738_v5, %v2734_v46 }
 0x794   :  { %4926 = vmatpush1.bf16.msra.mxu0 %v4925_v11  ;;  %4958 = vmatpush1.bf16.msra.mxu1 %v4957_v17  ;;  %v2723_v11 = vld [vmem:[#allocation6 + $0x338] sm:$0xff]  ;;  %v6633_v17 = vpack.c.bf16 %v2721_v8, %v2717_v20  ;;  %v2745_v20 = vld [vmem:[#allocation6 + $0x3e8] sm:$0xff] }
 0x795   :  { %v2743_v8 = vld [vmem:[#allocation6 + $0x3d8] sm:$0xff] }
 0x797   :  { %2486 = vmatmul.mubr.f32.vlgmr.msra.gmra.mrb[16].mxu0 %v6222_v43  ;;  %2599 = vmatmul.mubr.f32.vlgmr.msra.gmra.mrb[16].mxu1 %v6222_v43  ;;  %v2685_v43 = vld [vmem:[#allocation6 + $0x208] sm:$0xff] }
 0x798   :  { %2491 = vmatprep.mubr.f32.mxu0 %v5938_v0  ;;  %2604 = vmatprep.mubr.f32.mxu1 %v5938_v0 }
 0x79b   :  { %2492 = vmatmul.mubr.f32.gmra.mrb[18].mxu0 %v6266_v30  ;;  %2605 = vmatmul.mubr.f32.gmra.mrb[18].mxu1 %v6266_v30  ;;  %v2689_v30 = vld [vmem:[#allocation6 + $0x228] sm:$0xff] }
 0x79c   :  { %2497 = vmatprep.mubr.f32.mxu0 %v5938_v0  ;;  %2610 = vmatprep.mubr.f32.mxu1 %v5938_v0 }
 0x79f   :  { %2498 = vmatmul.mubr.f32.gmra.mrb[20].mxu0 %v6330_v24  ;;  %2611 = vmatmul.mubr.f32.gmra.mrb[20].mxu1 %v6330_v24  ;;  %v2687_v24 = vld [vmem:[#allocation6 + $0x218] sm:$0xff] }
 0x7a0   :  { %2503 = vmatprep.mubr.f32.mxu0 %v5938_v0  ;;  %2616 = vmatprep.mubr.f32.mxu1 %v5938_v0 }
 0x7a3   :  { %2504 = vmatmul.mubr.f32.gmra.mrb[22].mxu0 %v6424_v3  ;;  %2617 = vmatmul.mubr.f32.gmra.mrb[22].mxu1 %v6424_v3  ;;  %v6586_v3 = vpack.c.bf16 %v2689_v30, %v2685_v43  ;;  %v6635_v43 = vpack.c.bf16 %v2723_v11, %v2719_v29  ;;  %v2716_v30 = vld [vmem:[#allocation6 + $0x300] sm:$0xff]  ;;  %v6670_v29 = vpack.c.bf16 %v2745_v20, %v2741_v9  ;;  %v2747_v11 = vld [vmem:[#allocation6 + $0x3f8] sm:$0xff] }
 0x7a4   :  { %2509 = vmatprep.mubr.f32.mxu0 %v5938_v0  ;;  %2622 = vmatprep.mubr.f32.mxu1 %v5938_v0 }
 0x7a5   :  { %4960 = vmatprep.subr.bf16.mxu0 %v6586_v3 }
 0x7a7   :  { %2510 = vmatmul.mubr.f32.gmra.mrb[24].mxu0 %v6470_v58  ;;  %2623 = vmatmul.mubr.f32.gmra.mrb[24].mxu1 %v6470_v58  ;;  %v2691_v58 = vld [vmem:[#allocation6 + $0x238] sm:$0xff] }
 0x7a8   :  { %2515 = vmatprep.mubr.f32.mxu0 %v5938_v0  ;;  %2628 = vmatprep.mubr.f32.mxu1 %v5938_v0  ;;  %v6588_v14 = vpack.c.bf16 %v2691_v58, %v2687_v24  ;;  %v2720_v24 = vld [vmem:[#allocation6 + $0x320] sm:$0xff]  ;;  %v2718_v58 = vld [vmem:[#allocation6 + $0x310] sm:$0xff] }
 0x7aa   :  { %4992 = vmatprep.subr.bf16.mxu1 %v6588_v14 }
 0x7ab   :  { %2516 = vmatmul.mubr.f32.gmra.mrb[26].mxu0 %v6514_v49  ;;  %2629 = vmatmul.mubr.f32.gmra.mrb[26].mxu1 %v6514_v49  ;;  %v2688_v49 = vld [vmem:[#allocation6 + $0x220] sm:$0xff] }
 0x7ac   :  { %2521 = vmatprep.mubr.f32.mxu0 %v5938_v0  ;;  %2634 = vmatprep.mubr.f32.mxu1 %v5938_v0  ;;  %v6590_v18 = vpack.c.bf16 %v2688_v49, %v2684_v62  ;;  %v6638_v62 = vpack.c.bf16 %v2720_v24, %v2716_v30  ;;  %v2722_v49 = vld [vmem:[#allocation6 + $0x330] sm:$0xff]  ;;  %v2740_v30 = vld [vmem:[#allocation6 + $0x3c0] sm:$0xff] }
 0x7ad   :  { %v6642_v34 = vpack.c.bf16 %v2722_v49, %v2718_v58  ;;  %v2744_v24 = vld [vmem:[#allocation6 + $0x3e0] sm:$0xff]  ;;  %v6672_v58 = vpack.c.bf16 %v2747_v11, %v2743_v8 }
 0x7ae   :  { %4962 = vmatpush1.bf16.msra.mxu0 %v6590_v18  ;;  %v6674_v49 = vpack.c.bf16 %v2744_v24, %v2740_v30 }
 0x7af   :  { %2522 = vmatmul.mubr.f32.gmra.mrb[28].mxu0 %v6552_v13  ;;  %2635 = vmatmul.mubr.f32.gmra.mrb[28].mxu1 %v6552_v13  ;;  %v6593_v13 = vpack.c.bf16 %v2690_v47, %v2686_v27  ;;  %v2725_v27 = vld [vmem:[#allocation6 + $0x348] sm:$0xff] }
 0x7b0   :  { %2527 = vmatprep.mubr.f32.mxu0 %v5938_v0  ;;  %2640 = vmatprep.mubr.f32.mxu1 %v5938_v0  ;;  %v2729_v47 = vld [vmem:[#allocation6 + $0x368] sm:$0xff] }
 0x7b1   :  { %4994 = vmatpush1.bf16.msra.mxu1 %v6593_v13  ;;  %4964 = vmatprep.subr.bf16.mxu0 %v6598_v51  ;;  %v6644_v60 = vpack.c.bf16 %v2729_v47, %v2725_v27  ;;  %v2742_v27 = vld [vmem:[#allocation6 + $0x3d0] sm:$0xff] }
 0x7b2   :  { %4996 = vmatprep.subr.bf16.mxu1 %v6600_v25  ;;  %4966 = vmatpush1.bf16.msra.mxu0 %v6602_v23  ;;  %v2746_v47 = vld [vmem:[#allocation6 + $0x3f0] sm:$0xff] }
 0x7b3   :  { %4968 = vmatprep.subr.bf16.mxu0 %v6610_v45  ;;  %v6677_v53 = vpack.c.bf16 %v2746_v47, %v2742_v27 }
 0x7b5   :  { %4998 = vmatpush1.bf16.msra.mxu1 %v6605_v63 }
 0x7b6   :  { %5000 = vmatprep.subr.bf16.mxu1 %v6612_v10  ;;  %4970 = vmatpush1.bf16.msra.mxu0 %v6614_v19 }
 0x7b7   :  { %4972 = vmatprep.subr.bf16.mxu0 %v6622_v41 }
 0x7b9   :  { %5002 = vmatpush1.bf16.msra.mxu1 %v6617_v54 }
 0x7ba   :  { %5004 = vmatprep.subr.bf16.mxu1 %v6624_v16  ;;  %4974 = vmatpush1.bf16.msra.mxu0 %v6626_v36 }
 0x7bb   :  { %4976 = vmatprep.subr.bf16.mxu0 %v6633_v17 }
 0x7bd   :  { %5006 = vmatpush1.bf16.msra.mxu1 %v6629_v21 }
 0x7be   :  { %5008 = vmatprep.subr.bf16.mxu1 %v6635_v43  ;;  %4978 = vmatpush1.bf16.msra.mxu0 %v6638_v62 }
 0x7bf   :  { %4980 = vmatprep.subr.bf16.mxu0 %v6644_v60 }
 0x7c1   :  { %5010 = vmatpush1.bf16.msra.mxu1 %v6642_v34 }
 0x7c2   :  { %5012 = vmatprep.subr.bf16.mxu1 %v6646_v15  ;;  %4982 = vmatpush1.bf16.msra.mxu0 %v6649_v42 }
 0x7c3   :  { %4984 = vmatprep.subr.bf16.mxu0 %v6655_v32 }
 0x7c5   :  { %5014 = vmatpush1.bf16.msra.mxu1 %v6653_v6 }
 0x7c6   :  { %5016 = vmatprep.subr.bf16.mxu1 %v6658_v28  ;;  %4986 = vmatpush1.bf16.msra.mxu0 %v6661_v12 }
 0x7c7   :  { %4988 = vmatprep.subr.bf16.mxu0 %v6670_v29 }
 0x7c9   :  { %5018 = vmatpush1.bf16.msra.mxu1 %v6665_v40 }
 0x7ca   :  { %5020 = vmatprep.subr.bf16.mxu1 %v6672_v58  ;;  %4990 = vmatpush1.bf16.msra.mxu0 %v6674_v49 }
 0x7cb   :  { %5024 = vmatprep.subr.bf16.mxu0 %v6586_v3 }
 0x7cd   :  { %5022 = vmatpush1.bf16.msra.mxu1 %v6677_v53 }
 0x7ce   :  { %5056 = vmatprep.subr.bf16.mxu1 %v6588_v14 }
 0x84a   :  { %v2223_v2 = vpop.f32.mrb[14].mxu0  ;;  %v2294_v50 = vpop.f32.mrb[14].mxu1 }
 0x84b   :  { %v5509_v26 = vadd.f32 %v2223_v2, %v6196_v37  ;;  %v2225_v44 = vpop.f32.mrb[15].mxu0  ;;  %v2296_v1 = vpop.f32.mrb[15].mxu1  ;;  %v5525_v22 = vadd.f32 %v2294_v50, %v6213_v61  ;;  %v4240_v50 = vld [vmem:[%s7071_s4 + $0x8] sm:$0xff] }
 0x84c   :  { %v5510_v56 = vadd.f32 %v2225_v44, %v6200_v38  ;;  %v5526_v48 = vadd.f32 %v2296_v1, %v6207_v55 }
 0x84d   :  { %v4236_v52 = vmul.f32 -1.442695, %v5509_v26 }
 0x84e   :  { %v4237_v7 = vmul.f32 -1.442695, %v5510_v56  ;;  %v4238_v4 = vmul.f32 -1.442695, %v5526_v48 }
 0x84f   :  { %5742 = vpow2.f32 %v4236_v52 }
 0x850   :  { %5744 = vpow2.f32 %v4237_v7 }
 0x851   :  { %5746 = vpow2.f32 %v4238_v4 }
 0x852   :  { %5748 = vtanh.f32 %v5525_v22 }
 0x859   :  { %v5743_v46 = vpop.eup %5742 }
 0x85a   :  { %v5745_v5 = vpop.eup %5744  ;;  %v2302_v9 = vadd.f32 1.0, %v5743_v46 }
 0x85b   :  { %v2308_v20 = vadd.f32 1.0, %v5745_v5  ;;  %v5747_v37 = vpop.eup %5746 }
 0x85c   :  { %5750 = vrcp.f32 %v2302_v9  ;;  %v5749_v8 = vpop.eup %5748  ;;  %v2315_v24 = vadd.f32 1.0, %v5747_v37 }
 0x85d   :  { %5752 = vrcp.f32 %v2308_v20 }
 0x85e   :  { %5754 = vrcp.f32 %v2315_v24  ;;  %v4241_v24 = vld [vmem:[%s7072_s5 + $0x8] sm:$0xff] }
 0x866   :  { %v5751_v38 = vpop.eup %5750 }
 0x867   :  { %v5753_v11 = vpop.eup %5752  ;;  %v2319_v30 = vmul.f32 %v5751_v38, %v5749_v8 }
 0x868   :  { %v2318_v27 = vmul.f32 %v5753_v11, %v6549_v59  ;;  %v5755_v61 = vpop.eup %5754  ;;  %v4239_v59 = vld [vmem:[%s7070_s3 + $0x4] sm:$0xf] }
 0x869   :  { %v6733_v26 = vrot.slane %v4239_v59, %v133_v33  ;;  %v6737_v44 = vrot.slane %v4239_v59, %v137_v35  ;;  %v6743_v5 = vrot.slane %v4239_v59, %v145_v39  ;;  %v6748_v35 = vrot.slane %v4239_v59, %v141_v57 }
 0x86a   :  { %v2320_v55 = vadd.f32 %v2319_v30, %v2318_v27 }
 0x86c   :  { %5756 = vtanh.f32 %v2320_v55 }
 0x876   :  { %v5757_v47 = vpop.eup %5756 }
 0x877   :  { %v2322_v2 = vmul.f32 %v5757_v47, %v5755_v61 }
 0x879   :  { %2528 = vmatmul.mubr.f32.gmra.mrb[30].mxu0 %v2322_v2  ;;  %2641 = vmatmul.mubr.f32.gmra.mrb[30].mxu1 %v2322_v2 }
 0x87a   :  { %2816 = vmatprep.mubr.f32.mxu0 %v5938_v0  ;;  %2887 = vmatprep.mubr.f32.mxu1 %v5938_v0 }
 0x87d   :  { %2817 = vmatmul.mubr.f32.vlgmr.msra.gmra.mrb[16].mxu0 %v4240_v50  ;;  %2888 = vmatmul.mubr.f32.vlgmr.msra.gmra.mrb[16].mxu1 %v4240_v50 }
 0x87e   :  { %5026 = vmatpush1.bf16.msra.mxu0 %v6590_v18  ;;  %5058 = vmatpush1.bf16.msra.mxu1 %v6593_v13 }
 0x87f   :  { %5028 = vmatprep.subr.bf16.mxu0 %v6598_v51  ;;  %5060 = vmatprep.subr.bf16.mxu1 %v6600_v25 }
 0x880   :  { %2986 = vmatprep.mubr.f32.mxu0 %v5938_v0  ;;  %3057 = vmatprep.mubr.f32.mxu1 %v5938_v0 }
 0x882   :  { %5030 = vmatpush1.bf16.msra.mxu0 %v6602_v23  ;;  %5062 = vmatpush1.bf16.msra.mxu1 %v6605_v63 }
 0x883   :  { %5032 = vmatprep.subr.bf16.mxu0 %v6610_v45  ;;  %5064 = vmatprep.subr.bf16.mxu1 %v6612_v10 }
 0x886   :  { %5034 = vmatpush1.bf16.msra.mxu0 %v6614_v19  ;;  %5066 = vmatpush1.bf16.msra.mxu1 %v6617_v54 }
 0x887   :  { %5036 = vmatprep.subr.bf16.mxu0 %v6622_v41  ;;  %5068 = vmatprep.subr.bf16.mxu1 %v6624_v16 }
 0x88a   :  { %5038 = vmatpush1.bf16.msra.mxu0 %v6626_v36  ;;  %5070 = vmatpush1.bf16.msra.mxu1 %v6629_v21 }
 0x88b   :  { %5040 = vmatprep.subr.bf16.mxu0 %v6633_v17  ;;  %5072 = vmatprep.subr.bf16.mxu1 %v6635_v43 }
 0x88e   :  { %5042 = vmatpush1.bf16.msra.mxu0 %v6638_v62  ;;  %5074 = vmatpush1.bf16.msra.mxu1 %v6642_v34 }
 0x88f   :  { %5044 = vmatprep.subr.bf16.mxu0 %v6644_v60  ;;  %5076 = vmatprep.subr.bf16.mxu1 %v6646_v15 }
 0x892   :  { %5046 = vmatpush1.bf16.msra.mxu0 %v6649_v42  ;;  %5078 = vmatpush1.bf16.msra.mxu1 %v6653_v6 }
 0x893   :  { %5048 = vmatprep.subr.bf16.mxu0 %v6655_v32  ;;  %5080 = vmatprep.subr.bf16.mxu1 %v6658_v28 }
 0x896   :  { %5050 = vmatpush1.bf16.msra.mxu0 %v6661_v12  ;;  %5082 = vmatpush1.bf16.msra.mxu1 %v6665_v40 }
 0x897   :  { %5052 = vmatprep.subr.bf16.mxu0 %v6670_v29  ;;  %5084 = vmatprep.subr.bf16.mxu1 %v6672_v58 }
 0x89a   :  { %5054 = vmatpush1.bf16.msra.mxu0 %v6674_v49  ;;  %5086 = vmatpush1.bf16.msra.mxu1 %v6677_v53 }
 0x89b   :  { %5088 = vmatprep.subr.bf16.mxu0 %v6586_v3  ;;  %5120 = vmatprep.subr.bf16.mxu1 %v6588_v14 }
 0x950   :  { %v2818_v1 = vpop.f32.mrb[16].mxu0  ;;  %v2889_v56 = vpop.f32.mrb[16].mxu1 }
 0x951   :  { %v5527_v52 = vadd.f32 %v2818_v1, %v6733_v26  ;;  %v2820_v7 = vpop.f32.mrb[17].mxu0  ;;  %v2891_v48 = vpop.f32.mrb[17].mxu1  ;;  %v5543_v20 = vadd.f32 %v2889_v56, %v6748_v35 }
 0x952   :  { %v5528_v4 = vadd.f32 %v2820_v7, %v6737_v44  ;;  %v5544_v33 = vadd.f32 %v2891_v48, %v6743_v5 }
 0x953   :  { %v4242_v22 = vmul.f32 -1.442695, %v5527_v52 }
 0x954   :  { %v4243_v46 = vmul.f32 -1.442695, %v5528_v4  ;;  %v4244_v9 = vmul.f32 -1.442695, %v5544_v33 }
 0x955   :  { %5758 = vpow2.f32 %v4242_v22 }
 0x956   :  { %5760 = vpow2.f32 %v4243_v46 }
 0x957   :  { %5762 = vpow2.f32 %v4244_v9 }
 0x958   :  { %5764 = vtanh.f32 %v5543_v20 }
 0x95f   :  { %v5759_v37 = vpop.eup %5758 }
 0x960   :  { %v5761_v8 = vpop.eup %5760  ;;  %v2897_v38 = vadd.f32 1.0, %v5759_v37 }
 0x961   :  { %v2903_v11 = vadd.f32 1.0, %v5761_v8  ;;  %v5763_v39 = vpop.eup %5762 }
 0x962   :  { %5766 = vrcp.f32 %v2897_v38  ;;  %v5765_v30 = vpop.eup %5764  ;;  %v2910_v55 = vadd.f32 1.0, %v5763_v39 }
 0x963   :  { %5768 = vrcp.f32 %v2903_v11 }
 0x964   :  { %5770 = vrcp.f32 %v2910_v55 }
 0x96c   :  { %v5767_v31 = vpop.eup %5766 }
 0x96d   :  { %v5769_v57 = vpop.eup %5768  ;;  %v2914_v27 = vmul.f32 %v5767_v31, %v5765_v30 }
 0x96e   :  { %v2913_v61 = vmul.f32 %v5769_v57, %v4241_v24  ;;  %v5771_v2 = vpop.eup %5770 }
 0x970   :  { %v6754_v47 = vadd.f32 %v2914_v27, %v2913_v61 }
 0x972   :  { %5772 = vtanh.f32 %v6754_v47 }
 0x97c   :  { %v5773_v50 = vpop.eup %5772 }
 0x97d   :  { %v2917_v59 = vmul.f32 %v5773_v50, %v5771_v2 }
 0x97f   :  { %2987 = vmatmul.mubr.f32.vlgmr.msra.gmra.mrb[18].mxu0 %v2917_v59  ;;  %3058 = vmatmul.mubr.f32.vlgmr.msra.gmra.mrb[18].mxu1 %v2917_v59 }
 0x980   :  { %5090 = vmatpush1.bf16.msra.mxu0 %v6590_v18  ;;  %5122 = vmatpush1.bf16.msra.mxu1 %v6593_v13 }
 0x981   :  { %5092 = vmatprep.subr.bf16.mxu0 %v6598_v51  ;;  %5124 = vmatprep.subr.bf16.mxu1 %v6600_v25 }
 0x982   :  { %3156 = vmatprep.mubr.f32.mxu0 %v5938_v0  ;;  %3227 = vmatprep.mubr.f32.mxu1 %v5938_v0 }
 0x984   :  { %5094 = vmatpush1.bf16.msra.mxu0 %v6602_v23  ;;  %5126 = vmatpush1.bf16.msra.mxu1 %v6605_v63 }
 0x985   :  { %5096 = vmatprep.subr.bf16.mxu0 %v6610_v45  ;;  %5128 = vmatprep.subr.bf16.mxu1 %v6612_v10 }
 0x988   :  { %5098 = vmatpush1.bf16.msra.mxu0 %v6614_v19  ;;  %5130 = vmatpush1.bf16.msra.mxu1 %v6617_v54 }
 0x989   :  { %5100 = vmatprep.subr.bf16.mxu0 %v6622_v41  ;;  %5132 = vmatprep.subr.bf16.mxu1 %v6624_v16 }
 0x98c   :  { %5102 = vmatpush1.bf16.msra.mxu0 %v6626_v36  ;;  %5134 = vmatpush1.bf16.msra.mxu1 %v6629_v21 }
 0x98d   :  { %5104 = vmatprep.subr.bf16.mxu0 %v6633_v17  ;;  %5136 = vmatprep.subr.bf16.mxu1 %v6635_v43 }
 0x990   :  { %5106 = vmatpush1.bf16.msra.mxu0 %v6638_v62  ;;  %5138 = vmatpush1.bf16.msra.mxu1 %v6642_v34 }
 0x991   :  { %5108 = vmatprep.subr.bf16.mxu0 %v6644_v60  ;;  %5140 = vmatprep.subr.bf16.mxu1 %v6646_v15 }
 0x994   :  { %5110 = vmatpush1.bf16.msra.mxu0 %v6649_v42  ;;  %5142 = vmatpush1.bf16.msra.mxu1 %v6653_v6 }
 0x995   :  { %5112 = vmatprep.subr.bf16.mxu0 %v6655_v32  ;;  %5144 = vmatprep.subr.bf16.mxu1 %v6658_v28 }
 0x998   :  { %5114 = vmatpush1.bf16.msra.mxu0 %v6661_v12  ;;  %5146 = vmatpush1.bf16.msra.mxu1 %v6665_v40 }
 0x999   :  { %5116 = vmatprep.subr.bf16.mxu0 %v6670_v29  ;;  %5148 = vmatprep.subr.bf16.mxu1 %v6672_v58 }
 0x99c   :  { %5118 = vmatpush1.bf16.msra.mxu0 %v6674_v49  ;;  %5150 = vmatpush1.bf16.msra.mxu1 %v6677_v53 }
 0x99d   :  { %5152 = vmatprep.subr.bf16.mxu0 %v6586_v3  ;;  %5184 = vmatprep.subr.bf16.mxu1 %v6588_v14 }
 0xa52   :  { %v2988_v1 = vpop.f32.mrb[18].mxu0  ;;  %v3059_v56 = vpop.f32.mrb[18].mxu1 }
 0xa53   :  { %v5529_v52 = vadd.f32 %v2988_v1, %v6733_v26  ;;  %v2990_v7 = vpop.f32.mrb[19].mxu0  ;;  %v3061_v48 = vpop.f32.mrb[19].mxu1  ;;  %v5545_v20 = vadd.f32 %v3059_v56, %v6748_v35 }
 0xa54   :  { %v5530_v4 = vadd.f32 %v2990_v7, %v6737_v44  ;;  %v5546_v33 = vadd.f32 %v3061_v48, %v6743_v5 }
 0xa55   :  { %v4245_v22 = vmul.f32 -1.442695, %v5529_v52 }
 0xa56   :  { %v4246_v46 = vmul.f32 -1.442695, %v5530_v4  ;;  %v4247_v9 = vmul.f32 -1.442695, %v5546_v33 }
 0xa57   :  { %5774 = vpow2.f32 %v4245_v22 }
 0xa58   :  { %5776 = vpow2.f32 %v4246_v46 }
 0xa59   :  { %5778 = vpow2.f32 %v4247_v9 }
 0xa5a   :  { %5780 = vtanh.f32 %v5545_v20 }
 0xa61   :  { %v5775_v37 = vpop.eup %5774 }
 0xa62   :  { %v5777_v8 = vpop.eup %5776  ;;  %v3067_v38 = vadd.f32 1.0, %v5775_v37 }
 0xa63   :  { %v3073_v11 = vadd.f32 1.0, %v5777_v8  ;;  %v5779_v39 = vpop.eup %5778 }
 0xa64   :  { %5782 = vrcp.f32 %v3067_v38  ;;  %v5781_v30 = vpop.eup %5780  ;;  %v3080_v27 = vadd.f32 1.0, %v5779_v39 }
 0xa65   :  { %5784 = vrcp.f32 %v3073_v11 }
 0xa66   :  { %5786 = vrcp.f32 %v3080_v27 }
 0xa6e   :  { %v5783_v24 = vpop.eup %5782 }
 0xa6f   :  { %v5785_v31 = vpop.eup %5784  ;;  %v3084_v57 = vmul.f32 %v5783_v24, %v5781_v30 }
 0xa70   :  { %v3083_v55 = vmul.f32 %v5785_v31, %v6754_v47  ;;  %v5787_v2 = vpop.eup %5786 }
 0xa72   :  { %v6796_v61 = vadd.f32 %v3084_v57, %v3083_v55 }
 0xa74   :  { %5788 = vtanh.f32 %v6796_v61 }
 0xa7e   :  { %v5789_v50 = vpop.eup %5788 }
 0xa7f   :  { %v3087_v59 = vmul.f32 %v5789_v50, %v5787_v2 }
 0xa81   :  { %3157 = vmatmul.mubr.f32.vlgmr.msra.gmra.mrb[20].mxu0 %v3087_v59  ;;  %3228 = vmatmul.mubr.f32.vlgmr.msra.gmra.mrb[20].mxu1 %v3087_v59 }
 0xa82   :  { %5154 = vmatpush1.bf16.msra.mxu0 %v6590_v18  ;;  %5186 = vmatpush1.bf16.msra.mxu1 %v6593_v13 }
 0xa83   :  { %5156 = vmatprep.subr.bf16.mxu0 %v6598_v51  ;;  %5188 = vmatprep.subr.bf16.mxu1 %v6600_v25 }
 0xa84   :  { %3326 = vmatprep.mubr.f32.mxu0 %v5938_v0  ;;  %3397 = vmatprep.mubr.f32.mxu1 %v5938_v0 }
 0xa86   :  { %5158 = vmatpush1.bf16.msra.mxu0 %v6602_v23  ;;  %5190 = vmatpush1.bf16.msra.mxu1 %v6605_v63 }
 0xa87   :  { %5160 = vmatprep.subr.bf16.mxu0 %v6610_v45  ;;  %5192 = vmatprep.subr.bf16.mxu1 %v6612_v10 }
 0xa8a   :  { %5162 = vmatpush1.bf16.msra.mxu0 %v6614_v19  ;;  %5194 = vmatpush1.bf16.msra.mxu1 %v6617_v54 }
 0xa8b   :  { %5164 = vmatprep.subr.bf16.mxu0 %v6622_v41  ;;  %5196 = vmatprep.subr.bf16.mxu1 %v6624_v16 }
 0xa8e   :  { %5166 = vmatpush1.bf16.msra.mxu0 %v6626_v36  ;;  %5198 = vmatpush1.bf16.msra.mxu1 %v6629_v21 }
 0xa8f   :  { %5168 = vmatprep.subr.bf16.mxu0 %v6633_v17  ;;  %5200 = vmatprep.subr.bf16.mxu1 %v6635_v43 }
 0xa92   :  { %5170 = vmatpush1.bf16.msra.mxu0 %v6638_v62  ;;  %5202 = vmatpush1.bf16.msra.mxu1 %v6642_v34 }
 0xa93   :  { %5172 = vmatprep.subr.bf16.mxu0 %v6644_v60  ;;  %5204 = vmatprep.subr.bf16.mxu1 %v6646_v15 }
 0xa96   :  { %5174 = vmatpush1.bf16.msra.mxu0 %v6649_v42  ;;  %5206 = vmatpush1.bf16.msra.mxu1 %v6653_v6 }
 0xa97   :  { %5176 = vmatprep.subr.bf16.mxu0 %v6655_v32  ;;  %5208 = vmatprep.subr.bf16.mxu1 %v6658_v28 }
 0xa9a   :  { %5178 = vmatpush1.bf16.msra.mxu0 %v6661_v12  ;;  %5210 = vmatpush1.bf16.msra.mxu1 %v6665_v40 }
 0xa9b   :  { %5180 = vmatprep.subr.bf16.mxu0 %v6670_v29  ;;  %5212 = vmatprep.subr.bf16.mxu1 %v6672_v58 }
 0xa9e   :  { %5182 = vmatpush1.bf16.msra.mxu0 %v6674_v49  ;;  %5214 = vmatpush1.bf16.msra.mxu1 %v6677_v53 }
 0xa9f   :  { %5216 = vmatprep.subr.bf16.mxu0 %v6586_v3  ;;  %5248 = vmatprep.subr.bf16.mxu1 %v6588_v14 }
 0xb54   :  { %v3158_v47 = vpop.f32.mrb[20].mxu0  ;;  %v3229_v1 = vpop.f32.mrb[20].mxu1 }
 0xb55   :  { %v5531_v56 = vadd.f32 %v3158_v47, %v6733_v26  ;;  %v3160_v52 = vpop.f32.mrb[21].mxu0  ;;  %v3231_v7 = vpop.f32.mrb[21].mxu1  ;;  %v5547_v9 = vadd.f32 %v3229_v1, %v6748_v35 }
 0xb56   :  { %v5532_v48 = vadd.f32 %v3160_v52, %v6737_v44  ;;  %v5548_v46 = vadd.f32 %v3231_v7, %v6743_v5 }
 0xb57   :  { %v4248_v4 = vmul.f32 -1.442695, %v5531_v56 }
 0xb58   :  { %v4249_v22 = vmul.f32 -1.442695, %v5532_v48  ;;  %v4250_v33 = vmul.f32 -1.442695, %v5548_v46 }
 0xb59   :  { %5790 = vpow2.f32 %v4248_v4 }
 0xb5a   :  { %5792 = vpow2.f32 %v4249_v22 }
 0xb5b   :  { %5794 = vpow2.f32 %v4250_v33 }
 0xb5c   :  { %5796 = vtanh.f32 %v5547_v9 }
 0xb63   :  { %v5791_v20 = vpop.eup %5790 }
 0xb64   :  { %v5793_v37 = vpop.eup %5792  ;;  %v3237_v8 = vadd.f32 1.0, %v5791_v20 }
 0xb65   :  { %v3243_v38 = vadd.f32 1.0, %v5793_v37  ;;  %v5795_v11 = vpop.eup %5794 }
 0xb66   :  { %5798 = vrcp.f32 %v3237_v8  ;;  %v5797_v39 = vpop.eup %5796  ;;  %v3250_v57 = vadd.f32 1.0, %v5795_v11 }
 0xb67   :  { %5800 = vrcp.f32 %v3243_v38 }
 0xb68   :  { %5802 = vrcp.f32 %v3250_v57 }
 0xb70   :  { %v5799_v30 = vpop.eup %5798 }
 0xb71   :  { %v5801_v24 = vpop.eup %5800  ;;  %v3254_v31 = vmul.f32 %v5799_v30, %v5797_v39 }
 0xb72   :  { %v3253_v27 = vmul.f32 %v5801_v24, %v6796_v61  ;;  %v5803_v2 = vpop.eup %5802 }
 0xb74   :  { %v6838_v55 = vadd.f32 %v3254_v31, %v3253_v27 }
 0xb76   :  { %5804 = vtanh.f32 %v6838_v55 }
 0xb80   :  { %v5805_v50 = vpop.eup %5804 }
 0xb81   :  { %v3257_v59 = vmul.f32 %v5805_v50, %v5803_v2 }
 0xb83   :  { %3327 = vmatmul.mubr.f32.vlgmr.msra.gmra.mrb[22].mxu0 %v3257_v59  ;;  %3398 = vmatmul.mubr.f32.vlgmr.msra.gmra.mrb[22].mxu1 %v3257_v59 }
 0xb84   :  { %5218 = vmatpush1.bf16.msra.mxu0 %v6590_v18  ;;  %5250 = vmatpush1.bf16.msra.mxu1 %v6593_v13 }
 0xb85   :  { %5220 = vmatprep.subr.bf16.mxu0 %v6598_v51  ;;  %5252 = vmatprep.subr.bf16.mxu1 %v6600_v25 }
 0xb86   :  { %3496 = vmatprep.mubr.f32.mxu0 %v5938_v0  ;;  %3567 = vmatprep.mubr.f32.mxu1 %v5938_v0 }
 0xb88   :  { %5222 = vmatpush1.bf16.msra.mxu0 %v6602_v23  ;;  %5254 = vmatpush1.bf16.msra.mxu1 %v6605_v63 }
 0xb89   :  { %5224 = vmatprep.subr.bf16.mxu0 %v6610_v45  ;;  %5256 = vmatprep.subr.bf16.mxu1 %v6612_v10 }
 0xb8c   :  { %5226 = vmatpush1.bf16.msra.mxu0 %v6614_v19  ;;  %5258 = vmatpush1.bf16.msra.mxu1 %v6617_v54 }
 0xb8d   :  { %5228 = vmatprep.subr.bf16.mxu0 %v6622_v41  ;;  %5260 = vmatprep.subr.bf16.mxu1 %v6624_v16 }
 0xb90   :  { %5230 = vmatpush1.bf16.msra.mxu0 %v6626_v36  ;;  %5262 = vmatpush1.bf16.msra.mxu1 %v6629_v21 }
 0xb91   :  { %5232 = vmatprep.subr.bf16.mxu0 %v6633_v17  ;;  %5264 = vmatprep.subr.bf16.mxu1 %v6635_v43 }
 0xb94   :  { %5234 = vmatpush1.bf16.msra.mxu0 %v6638_v62  ;;  %5266 = vmatpush1.bf16.msra.mxu1 %v6642_v34 }
 0xb95   :  { %5236 = vmatprep.subr.bf16.mxu0 %v6644_v60  ;;  %5268 = vmatprep.subr.bf16.mxu1 %v6646_v15 }
 0xb98   :  { %5238 = vmatpush1.bf16.msra.mxu0 %v6649_v42  ;;  %5270 = vmatpush1.bf16.msra.mxu1 %v6653_v6 }
 0xb99   :  { %5240 = vmatprep.subr.bf16.mxu0 %v6655_v32  ;;  %5272 = vmatprep.subr.bf16.mxu1 %v6658_v28 }
 0xb9c   :  { %5242 = vmatpush1.bf16.msra.mxu0 %v6661_v12  ;;  %5274 = vmatpush1.bf16.msra.mxu1 %v6665_v40 }
 0xb9d   :  { %5244 = vmatprep.subr.bf16.mxu0 %v6670_v29  ;;  %5276 = vmatprep.subr.bf16.mxu1 %v6672_v58 }
 0xba0   :  { %5246 = vmatpush1.bf16.msra.mxu0 %v6674_v49  ;;  %5278 = vmatpush1.bf16.msra.mxu1 %v6677_v53 }
 0xba1   :  { %5280 = vmatprep.subr.bf16.mxu0 %v6586_v3  ;;  %5312 = vmatprep.subr.bf16.mxu1 %v6588_v14 }
 0xc56   :  { %v3328_v61 = vpop.f32.mrb[22].mxu0  ;;  %v3399_v47 = vpop.f32.mrb[22].mxu1 }
 0xc57   :  { %v5533_v1 = vadd.f32 %v3328_v61, %v6733_v26  ;;  %v3330_v56 = vpop.f32.mrb[23].mxu0  ;;  %v3401_v52 = vpop.f32.mrb[23].mxu1  ;;  %v5549_v33 = vadd.f32 %v3399_v47, %v6748_v35 }
 0xc58   :  { %v5534_v7 = vadd.f32 %v3330_v56, %v6737_v44  ;;  %v5550_v22 = vadd.f32 %v3401_v52, %v6743_v5 }
 0xc59   :  { %v4251_v48 = vmul.f32 -1.442695, %v5533_v1 }
 0xc5a   :  { %v4252_v4 = vmul.f32 -1.442695, %v5534_v7  ;;  %v4253_v46 = vmul.f32 -1.442695, %v5550_v22 }
 0xc5b   :  { %5806 = vpow2.f32 %v4251_v48 }
 0xc5c   :  { %5808 = vpow2.f32 %v4252_v4 }
 0xc5d   :  { %5810 = vpow2.f32 %v4253_v46 }
 0xc5e   :  { %5812 = vtanh.f32 %v5549_v33 }
 0xc65   :  { %v5807_v9 = vpop.eup %5806 }
 0xc66   :  { %v5809_v20 = vpop.eup %5808  ;;  %v3407_v37 = vadd.f32 1.0, %v5807_v9 }
 0xc67   :  { %v3413_v8 = vadd.f32 1.0, %v5809_v20  ;;  %v5811_v38 = vpop.eup %5810 }
 0xc68   :  { %5814 = vrcp.f32 %v3407_v37  ;;  %v5813_v11 = vpop.eup %5812  ;;  %v3420_v31 = vadd.f32 1.0, %v5811_v38 }
 0xc69   :  { %5816 = vrcp.f32 %v3413_v8 }
 0xc6a   :  { %5818 = vrcp.f32 %v3420_v31 }
 0xc72   :  { %v5815_v39 = vpop.eup %5814 }
 0xc73   :  { %v5817_v30 = vpop.eup %5816  ;;  %v3424_v24 = vmul.f32 %v5815_v39, %v5813_v11 }
 0xc74   :  { %v3423_v57 = vmul.f32 %v5817_v30, %v6838_v55  ;;  %v5819_v2 = vpop.eup %5818 }
 0xc76   :  { %v6880_v27 = vadd.f32 %v3424_v24, %v3423_v57 }
 0xc78   :  { %5820 = vtanh.f32 %v6880_v27 }
 0xc82   :  { %v5821_v50 = vpop.eup %5820 }
 0xc83   :  { %v3427_v59 = vmul.f32 %v5821_v50, %v5819_v2 }
 0xc85   :  { %3497 = vmatmul.mubr.f32.vlgmr.msra.gmra.mrb[24].mxu0 %v3427_v59  ;;  %3568 = vmatmul.mubr.f32.vlgmr.msra.gmra.mrb[24].mxu1 %v3427_v59 }
 0xc86   :  { %5282 = vmatpush1.bf16.msra.mxu0 %v6590_v18  ;;  %5314 = vmatpush1.bf16.msra.mxu1 %v6593_v13 }
 0xc87   :  { %5284 = vmatprep.subr.bf16.mxu0 %v6598_v51  ;;  %5316 = vmatprep.subr.bf16.mxu1 %v6600_v25 }
 0xc88   :  { %3666 = vmatprep.mubr.f32.mxu0 %v5938_v0  ;;  %3737 = vmatprep.mubr.f32.mxu1 %v5938_v0 }
 0xc8a   :  { %5286 = vmatpush1.bf16.msra.mxu0 %v6602_v23  ;;  %5318 = vmatpush1.bf16.msra.mxu1 %v6605_v63 }
 0xc8b   :  { %5288 = vmatprep.subr.bf16.mxu0 %v6610_v45  ;;  %5320 = vmatprep.subr.bf16.mxu1 %v6612_v10 }
 0xc8e   :  { %5290 = vmatpush1.bf16.msra.mxu0 %v6614_v19  ;;  %5322 = vmatpush1.bf16.msra.mxu1 %v6617_v54 }
 0xc8f   :  { %5292 = vmatprep.subr.bf16.mxu0 %v6622_v41  ;;  %5324 = vmatprep.subr.bf16.mxu1 %v6624_v16 }
 0xc92   :  { %5294 = vmatpush1.bf16.msra.mxu0 %v6626_v36  ;;  %5326 = vmatpush1.bf16.msra.mxu1 %v6629_v21 }
 0xc93   :  { %5296 = vmatprep.subr.bf16.mxu0 %v6633_v17  ;;  %5328 = vmatprep.subr.bf16.mxu1 %v6635_v43 }
 0xc96   :  { %5298 = vmatpush1.bf16.msra.mxu0 %v6638_v62  ;;  %5330 = vmatpush1.bf16.msra.mxu1 %v6642_v34 }
 0xc97   :  { %5300 = vmatprep.subr.bf16.mxu0 %v6644_v60  ;;  %5332 = vmatprep.subr.bf16.mxu1 %v6646_v15 }
 0xc9a   :  { %5302 = vmatpush1.bf16.msra.mxu0 %v6649_v42  ;;  %5334 = vmatpush1.bf16.msra.mxu1 %v6653_v6 }
 0xc9b   :  { %5304 = vmatprep.subr.bf16.mxu0 %v6655_v32  ;;  %5336 = vmatprep.subr.bf16.mxu1 %v6658_v28 }
 0xc9e   :  { %5306 = vmatpush1.bf16.msra.mxu0 %v6661_v12  ;;  %5338 = vmatpush1.bf16.msra.mxu1 %v6665_v40 }
 0xc9f   :  { %5308 = vmatprep.subr.bf16.mxu0 %v6670_v29  ;;  %5340 = vmatprep.subr.bf16.mxu1 %v6672_v58 }
 0xca2   :  { %5310 = vmatpush1.bf16.msra.mxu0 %v6674_v49  ;;  %5342 = vmatpush1.bf16.msra.mxu1 %v6677_v53 }
 0xca3   :  { %5344 = vmatprep.subr.bf16.mxu0 %v6586_v3  ;;  %5376 = vmatprep.subr.bf16.mxu1 %v6588_v14 }
 0xd58   :  { %v3498_v55 = vpop.f32.mrb[24].mxu0  ;;  %v3569_v61 = vpop.f32.mrb[24].mxu1 }
 0xd59   :  { %v5535_v47 = vadd.f32 %v3498_v55, %v6733_v26  ;;  %v3500_v1 = vpop.f32.mrb[25].mxu0  ;;  %v3571_v56 = vpop.f32.mrb[25].mxu1  ;;  %v5551_v46 = vadd.f32 %v3569_v61, %v6748_v35 }
 0xd5a   :  { %v5536_v52 = vadd.f32 %v3500_v1, %v6737_v44  ;;  %v5552_v4 = vadd.f32 %v3571_v56, %v6743_v5 }
 0xd5b   :  { %v4254_v7 = vmul.f32 -1.442695, %v5535_v47 }
 0xd5c   :  { %v4255_v48 = vmul.f32 -1.442695, %v5536_v52  ;;  %v4256_v22 = vmul.f32 -1.442695, %v5552_v4 }
 0xd5d   :  { %5822 = vpow2.f32 %v4254_v7 }
 0xd5e   :  { %5824 = vpow2.f32 %v4255_v48 }
 0xd5f   :  { %5826 = vpow2.f32 %v4256_v22 }
 0xd60   :  { %5828 = vtanh.f32 %v5551_v46 }
 0xd67   :  { %v5823_v33 = vpop.eup %5822 }
 0xd68   :  { %v5825_v9 = vpop.eup %5824  ;;  %v3577_v20 = vadd.f32 1.0, %v5823_v33 }
 0xd69   :  { %v3583_v37 = vadd.f32 1.0, %v5825_v9  ;;  %v5827_v8 = vpop.eup %5826 }
 0xd6a   :  { %5830 = vrcp.f32 %v3577_v20  ;;  %v5829_v38 = vpop.eup %5828  ;;  %v3590_v24 = vadd.f32 1.0, %v5827_v8 }
 0xd6b   :  { %5832 = vrcp.f32 %v3583_v37 }
 0xd6c   :  { %5834 = vrcp.f32 %v3590_v24 }
 0xd74   :  { %v5831_v11 = vpop.eup %5830 }
 0xd75   :  { %v5833_v39 = vpop.eup %5832  ;;  %v3594_v30 = vmul.f32 %v5831_v11, %v5829_v38 }
 0xd76   :  { %v3593_v31 = vmul.f32 %v5833_v39, %v6880_v27  ;;  %v5835_v2 = vpop.eup %5834 }
 0xd78   :  { %v6922_v57 = vadd.f32 %v3594_v30, %v3593_v31 }
 0xd7a   :  { %5836 = vtanh.f32 %v6922_v57 }
 0xd84   :  { %v5837_v50 = vpop.eup %5836 }
 0xd85   :  { %v3597_v59 = vmul.f32 %v5837_v50, %v5835_v2  ;;  %v4111_v50 = vld [vmem:[%s7073_s6 + $0x18] sm:$0xff] }
 0xd87   :  { %3667 = vmatmul.mubr.f32.vlgmr.msra.gmra.mrb[26].mxu0 %v3597_v59  ;;  %3738 = vmatmul.mubr.f32.vlgmr.msra.gmra.mrb[26].mxu1 %v3597_v59 }
 0xd88   :  { %5346 = vmatpush1.bf16.msra.mxu0 %v6590_v18  ;;  %5378 = vmatpush1.bf16.msra.mxu1 %v6593_v13 }
 0xd89   :  { %5348 = vmatprep.subr.bf16.mxu0 %v6598_v51  ;;  %5380 = vmatprep.subr.bf16.mxu1 %v6600_v25 }
 0xd8a   :  { %3836 = vmatprep.mubr.f32.mxu0 %v5938_v0  ;;  %3907 = vmatprep.mubr.f32.mxu1 %v5938_v0 }
 0xd8c   :  { %5350 = vmatpush1.bf16.msra.mxu0 %v6602_v23  ;;  %5382 = vmatpush1.bf16.msra.mxu1 %v6605_v63 }
 0xd8d   :  { %5352 = vmatprep.subr.bf16.mxu0 %v6610_v45  ;;  %5384 = vmatprep.subr.bf16.mxu1 %v6612_v10 }
 0xd90   :  { %5354 = vmatpush1.bf16.msra.mxu0 %v6614_v19  ;;  %5386 = vmatpush1.bf16.msra.mxu1 %v6617_v54 }
 0xd91   :  { %5356 = vmatprep.subr.bf16.mxu0 %v6622_v41  ;;  %5388 = vmatprep.subr.bf16.mxu1 %v6624_v16 }
 0xd94   :  { %5358 = vmatpush1.bf16.msra.mxu0 %v6626_v36  ;;  %5390 = vmatpush1.bf16.msra.mxu1 %v6629_v21 }
 0xd95   :  { %5360 = vmatprep.subr.bf16.mxu0 %v6633_v17  ;;  %5392 = vmatprep.subr.bf16.mxu1 %v6635_v43 }
 0xd98   :  { %5362 = vmatpush1.bf16.msra.mxu0 %v6638_v62  ;;  %5394 = vmatpush1.bf16.msra.mxu1 %v6642_v34 }
 0xd99   :  { %5364 = vmatprep.subr.bf16.mxu0 %v6644_v60  ;;  %5396 = vmatprep.subr.bf16.mxu1 %v6646_v15 }
 0xd9c   :  { %5366 = vmatpush1.bf16.msra.mxu0 %v6649_v42  ;;  %5398 = vmatpush1.bf16.msra.mxu1 %v6653_v6 }
 0xd9d   :  { %5368 = vmatprep.subr.bf16.mxu0 %v6655_v32  ;;  %5400 = vmatprep.subr.bf16.mxu1 %v6658_v28 }
 0xda0   :  { %5370 = vmatpush1.bf16.msra.mxu0 %v6661_v12  ;;  %5402 = vmatpush1.bf16.msra.mxu1 %v6665_v40 }
 0xda1   :  { %5372 = vmatprep.subr.bf16.mxu0 %v6670_v29  ;;  %5404 = vmatprep.subr.bf16.mxu1 %v6672_v58 }
 0xda4   :  { %5374 = vmatpush1.bf16.msra.mxu0 %v6674_v49  ;;  %5406 = vmatpush1.bf16.msra.mxu1 %v6677_v53 }
 0xda5   :  { %5408 = vmatprep.subr.bf16.mxu0 %v6586_v3  ;;  %5440 = vmatprep.subr.bf16.mxu1 %v6588_v14 }
 0xe5a   :  { %v3668_v27 = vpop.f32.mrb[26].mxu0  ;;  %v3739_v55 = vpop.f32.mrb[26].mxu1 }
 0xe5b   :  { %v5537_v61 = vadd.f32 %v3668_v27, %v6733_v26  ;;  %v3670_v47 = vpop.f32.mrb[27].mxu0  ;;  %v3741_v1 = vpop.f32.mrb[27].mxu1  ;;  %v5553_v22 = vadd.f32 %v3739_v55, %v6748_v35  ;;  %v4112_v27 = vld [vmem:[%s7073_s6 + $0x20] sm:$0xff]  ;;  %v4113_v55 = vld [vmem:[%s7073_s6 + $0x28] sm:$0xff] }
 0xe5c   :  { %v5538_v56 = vadd.f32 %v3670_v47, %v6737_v44  ;;  %v5554_v48 = vadd.f32 %v3741_v1, %v6743_v5  ;;  %v4114_v47 = vld [vmem:[%s7073_s6 + $0x30] sm:$0xff]  ;;  %v4115_v1 = vld [vmem:[%s7073_s6 + $0x38] sm:$0xff] }
 0xe5d   :  { %v4257_v52 = vmul.f32 -1.442695, %v5537_v61  ;;  %v5478_v61 = vpack.c.bf16 %v4113_v55, %v4112_v27 }
 0xe5e   :  { %v4258_v7 = vmul.f32 -1.442695, %v5538_v56  ;;  %v4259_v4 = vmul.f32 -1.442695, %v5554_v48  ;;  %v5481_v56 = vpack.c.bf16 %v4115_v1, %v4114_v47 }
 0xe5f   :  { %5838 = vpow2.f32 %v4257_v52  ;;  %v4116_v52 = vld [vmem:[%s7073_s6 + $0x40] sm:$0xff] }
 0xe60   :  { %5840 = vpow2.f32 %v4258_v7  ;;  %v4117_v7 = vld [vmem:[%s7073_s6 + $0x48] sm:$0xff] }
 0xe61   :  { %5842 = vpow2.f32 %v4259_v4  ;;  %v5484_v48 = vpack.c.bf16 %v4117_v7, %v4116_v52  ;;  %v4118_v4 = vld [vmem:[%s7073_s6 + $0x50] sm:$0xff] }
 0xe62   :  { %5844 = vtanh.f32 %v5553_v22  ;;  %v4119_v22 = vld [vmem:[%s7073_s6 + $0x58] sm:$0xff] }
 0xe69   :  { %v5839_v3 = vpop.eup %5838 }
 0xe6a   :  { %v5841_v46 = vpop.eup %5840  ;;  %v3747_v14 = vadd.f32 1.0, %v5839_v3  ;;  %v4120_v3 = vld [vmem:[%s7073_s6 + $0x60] sm:$0xff] }
 0xe6b   :  { %v3753_v33 = vadd.f32 1.0, %v5841_v46  ;;  %v5843_v9 = vpop.eup %5842  ;;  %v5487_v46 = vpack.c.bf16 %v4119_v22, %v4118_v4 }
 0xe6c   :  { %5846 = vrcp.f32 %v3747_v14  ;;  %v5845_v20 = vpop.eup %5844  ;;  %v3760_v11 = vadd.f32 1.0, %v5843_v9  ;;  %v4121_v14 = vld [vmem:[%s7073_s6 + $0x68] sm:$0xff]  ;;  %v4122_v9 = vld [vmem:[%s7073_s6 + $0x70] sm:$0xff] }
 0xe6d   :  { %5848 = vrcp.f32 %v3753_v33  ;;  %v5490_v33 = vpack.c.bf16 %v4121_v14, %v4120_v3 }
 0xe6e   :  { %5850 = vrcp.f32 %v3760_v11 }
 0xe76   :  { %v5847_v37 = vpop.eup %5846 }
 0xe77   :  { %v5849_v8 = vpop.eup %5848  ;;  %v3764_v38 = vmul.f32 %v5847_v37, %v5845_v20  ;;  %v4123_v20 = vld [vmem:[%s7073_s6 + $0x78] sm:$0xff] }
 0xe78   :  { %v3763_v39 = vmul.f32 %v5849_v8, %v6922_v57  ;;  %v5851_v24 = vpop.eup %5850  ;;  %v4110_v57 = vld [vmem:[%s7073_s6 + $0x10] sm:$0xff]  ;;  %v5493_v37 = vpack.c.bf16 %v4123_v20, %v4122_v9 }
 0xe79   :  { %v5475_v59 = vpack.c.bf16 %v4111_v50, %v4110_v57 }
 0xe7a   :  { %v6964_v30 = vadd.f32 %v3764_v38, %v3763_v39 }
 0xe7c   :  { %5852 = vtanh.f32 %v6964_v30 }
 0xe86   :  { %v5853_v31 = vpop.eup %5852 }
 0xe87   :  { %v3767_v2 = vmul.f32 %v5853_v31, %v5851_v24 }
 0xe89   :  { %3837 = vmatmul.mubr.f32.vlgmr.msra.gmra.mrb[28].mxu0 %v3767_v2  ;;  %3908 = vmatmul.mubr.f32.vlgmr.msra.gmra.mrb[28].mxu1 %v3767_v2 }
 0xe8a   :  { %5410 = vmatpush1.bf16.msra.mxu0 %v6590_v18  ;;  %5442 = vmatpush1.bf16.msra.mxu1 %v6593_v13 }
 0xe8b   :  { %5412 = vmatprep.subr.bf16.mxu0 %v6598_v51  ;;  %5444 = vmatprep.subr.bf16.mxu1 %v6600_v25 }
 0xe8c   :  { %4006 = vmatprep.mubr.f32.mxu0 %v5938_v0  ;;  %4077 = vmatprep.mubr.f32.mxu1 %v5938_v0 }
 0xe8e   :  { %5414 = vmatpush1.bf16.msra.mxu0 %v6602_v23  ;;  %5446 = vmatpush1.bf16.msra.mxu1 %v6605_v63 }
 0xe8f   :  { %5416 = vmatprep.subr.bf16.mxu0 %v6610_v45  ;;  %5448 = vmatprep.subr.bf16.mxu1 %v6612_v10 }
 0xe92   :  { %5418 = vmatpush1.bf16.msra.mxu0 %v6614_v19  ;;  %5450 = vmatpush1.bf16.msra.mxu1 %v6617_v54 }
 0xe93   :  { %5420 = vmatprep.subr.bf16.mxu0 %v6622_v41  ;;  %5452 = vmatprep.subr.bf16.mxu1 %v6624_v16 }
 0xe96   :  { %5422 = vmatpush1.bf16.msra.mxu0 %v6626_v36  ;;  %5454 = vmatpush1.bf16.msra.mxu1 %v6629_v21 }
 0xe97   :  { %5424 = vmatprep.subr.bf16.mxu0 %v6633_v17  ;;  %5456 = vmatprep.subr.bf16.mxu1 %v6635_v43 }
 0xe9a   :  { %5426 = vmatpush1.bf16.msra.mxu0 %v6638_v62  ;;  %5458 = vmatpush1.bf16.msra.mxu1 %v6642_v34 }
 0xe9b   :  { %5428 = vmatprep.subr.bf16.mxu0 %v6644_v60  ;;  %5460 = vmatprep.subr.bf16.mxu1 %v6646_v15 }
 0xe9e   :  { %5430 = vmatpush1.bf16.msra.mxu0 %v6649_v42  ;;  %5462 = vmatpush1.bf16.msra.mxu1 %v6653_v6 }
 0xe9f   :  { %5432 = vmatprep.subr.bf16.mxu0 %v6655_v32  ;;  %5464 = vmatprep.subr.bf16.mxu1 %v6658_v28 }
 0xea2   :  { %5434 = vmatpush1.bf16.msra.mxu0 %v6661_v12  ;;  %5466 = vmatpush1.bf16.msra.mxu1 %v6665_v40 }
 0xea3   :  { %5436 = vmatprep.subr.bf16.mxu0 %v6670_v29  ;;  %5468 = vmatprep.subr.bf16.mxu1 %v6672_v58  ;;  %v4108_v29 = vld [vmem:[%s7073_s6] sm:$0xff]  ;;  %v4109_v58 = vld [vmem:[%s7073_s6 + $0x8] sm:$0xff] }
 0xea6   :  { %5438 = vmatpush1.bf16.msra.mxu0 %v6674_v49  ;;  %5470 = vmatpush1.bf16.msra.mxu1 %v6677_v53  ;;  %v5472_v49 = vpack.c.bf16 %v4109_v58, %v4108_v29  ;;  %v5939_v53 = vmov 0.0|0.0  }
 0xea7   :  { %5471 = vmatprep.subr.bf16.mxu0 %v5939_v53 }
 0xf5c   :  { %v3838_v18 = vpop.f32.mrb[28].mxu0  ;;  %v3909_v13 = vpop.f32.mrb[28].mxu1 }
 0xf5d   :  { %v5539_v51 = vadd.f32 %v3838_v18, %v6733_v26  ;;  %v3840_v25 = vpop.f32.mrb[29].mxu0  ;;  %v3911_v23 = vpop.f32.mrb[29].mxu1  ;;  %v5555_v41 = vadd.f32 %v3909_v13, %v6748_v35 }
 0xf5e   :  { %v5540_v63 = vadd.f32 %v3840_v25, %v6737_v44  ;;  %v5556_v19 = vadd.f32 %v3911_v23, %v6743_v5 }
 0xf5f   :  { %v4260_v45 = vmul.f32 -1.442695, %v5539_v51 }
 0xf60   :  { %v4261_v10 = vmul.f32 -1.442695, %v5540_v63  ;;  %v4262_v54 = vmul.f32 -1.442695, %v5556_v19 }
 0xf61   :  { %5854 = vpow2.f32 %v4260_v45 }
 0xf62   :  { %5856 = vpow2.f32 %v4261_v10 }
 0xf63   :  { %5858 = vpow2.f32 %v4262_v54 }
 0xf64   :  { %5860 = vtanh.f32 %v5555_v41 }
 0xf6b   :  { %v5855_v16 = vpop.eup %5854 }
 0xf6c   :  { %v5857_v36 = vpop.eup %5856  ;;  %v3917_v21 = vadd.f32 1.0, %v5855_v16 }
 0xf6d   :  { %v3923_v17 = vadd.f32 1.0, %v5857_v36  ;;  %v5859_v43 = vpop.eup %5858 }
 0xf6e   :  { %5862 = vrcp.f32 %v3917_v21  ;;  %v5861_v62 = vpop.eup %5860  ;;  %v3930_v42 = vadd.f32 1.0, %v5859_v43  ;;  %v4266_v21 = vld [vmem:[%s7074_s7] ss:$0 sm:$0xff] }
 0xf6f   :  { %5864 = vrcp.f32 %v3923_v17 }
 0xf70   :  { %5866 = vrcp.f32 %v3930_v42 }
 0xf78   :  { %v5863_v34 = vpop.eup %5862 }
 0xf79   :  { %v5865_v60 = vpop.eup %5864  ;;  %v3934_v15 = vmul.f32 %v5863_v34, %v5861_v62 }
 0xf7a   :  { %v3933_v6 = vmul.f32 %v5865_v60, %v6964_v30  ;;  %v5867_v28 = vpop.eup %5866 }
 0xf7c   :  { %v7004_v32 = vadd.f32 %v3934_v15, %v3933_v6 }
 0xf7e   :  { %5868 = vtanh.f32 %v7004_v32 }
 0xf88   :  { %v5869_v12 = vpop.eup %5868 }
 0xf89   :  { %v3937_v40 = vmul.f32 %v5869_v12, %v5867_v28 }
 0xf8b   :  { %4007 = vmatmul.mubr.f32.vlgmr.msra.gmra.mrb[30].mxu0 %v3937_v40  ;;  %4078 = vmatmul.mubr.f32.vlgmr.msra.gmra.mrb[30].mxu1 %v3937_v40 }
 0xf8c   :  { %5473 = vmatpush3.bf16.msra.mxu0 %v5472_v49  ;;  %4316 = vmatprep.mubr.msk.f32.mxu0 %vm5940_vm0, %v5938_v0 }
 0xf8d   :  { %5474 = vmatprep.subr.bf16.mxu0 %v5939_v53 }
 0xf90   :  { %5476 = vmatpush3.bf16.msra.mxu0 %v5475_v59 }
 0xf91   :  { %5477 = vmatprep.subr.bf16.mxu0 %v5939_v53 }
 0xf94   :  { %5479 = vmatpush3.bf16.msra.mxu0 %v5478_v61 }
 0xf95   :  { %5480 = vmatprep.subr.bf16.mxu0 %v5939_v53 }
 0xf98   :  { %5482 = vmatpush3.bf16.msra.mxu0 %v5481_v56 }
 0xf99   :  { %5483 = vmatprep.subr.bf16.mxu0 %v5939_v53 }
 0xf9c   :  { %5485 = vmatpush3.bf16.msra.mxu0 %v5484_v48 }
 0xf9d   :  { %5486 = vmatprep.subr.bf16.mxu0 %v5939_v53 }
 0xfa0   :  { %5488 = vmatpush3.bf16.msra.mxu0 %v5487_v46 }
 0xfa1   :  { %5489 = vmatprep.subr.bf16.mxu0 %v5939_v53 }
 0xfa4   :  { %5491 = vmatpush3.bf16.msra.mxu0 %v5490_v33 }
 0xfa5   :  { %5492 = vmatprep.subr.bf16.mxu0 %v5939_v53 }
 0xfa8   :  { %5494 = vmatpush3.bf16.msra.mxu0 %v5493_v37 }
0x105e   :  { %v4008_v8 = vpop.f32.mrb[30].mxu0  ;;  %v4079_v38 = vpop.f32.mrb[30].mxu1 }
0x105f   :  { %v5541_v11 = vadd.f32 %v4008_v8, %v6733_v26  ;;  %v4010_v0 = vpop.f32.mrb[31].mxu0  ;;  %v4081_v39 = vpop.f32.mrb[31].mxu1  ;;  %v5557_v13 = vadd.f32 %v4079_v38, %v6748_v35 }
0x1060   :  { %v5542_v30 = vadd.f32 %v4010_v0, %v6737_v44  ;;  %v5558_v2 = vadd.f32 %v4081_v39, %v6743_v5 }
0x1061   :  { %v4263_v24 = vmul.f32 -1.442695, %v5541_v11 }
0x1062   :  { %v4264_v31 = vmul.f32 -1.442695, %v5542_v30  ;;  %v4265_v18 = vmul.f32 -1.442695, %v5558_v2 }
0x1063   :  { %5870 = vpow2.f32 %v4263_v24 }
0x1064   :  { %5872 = vpow2.f32 %v4264_v31 }
0x1065   :  { %5874 = vpow2.f32 %v4265_v18 }
0x1066   :  { %5876 = vtanh.f32 %v5557_v13 }
0x106d   :  { %v5871_v51 = vpop.eup %5870 }
0x106e   :  { %v5873_v25 = vpop.eup %5872  ;;  %v4087_v23 = vadd.f32 1.0, %v5871_v51 }
0x106f   :  { %v4093_v63 = vadd.f32 1.0, %v5873_v25  ;;  %v5875_v26 = vpop.eup %5874 }
0x1070   :  { %5878 = vrcp.f32 %v4087_v23  ;;  %v5877_v45 = vpop.eup %5876  ;;  %v4100_v54 = vadd.f32 1.0, %v5875_v26 }
0x1071   :  { %5880 = vrcp.f32 %v4093_v63 }
0x1072   :  { %5882 = vrcp.f32 %v4100_v54 }
0x107a   :  { %v5879_v44 = vpop.eup %5878 }
0x107b   :  { %v5881_v10 = vpop.eup %5880  ;;  %v4104_v19 = vmul.f32 %v5879_v44, %v5877_v45 }
0x107c   :  { %v4103_v41 = vmul.f32 %v5881_v10, %v7004_v32  ;;  %v5883_v35 = vpop.eup %5882 }
0x107e   :  { %v4105_v5 = vadd.f32 %v4104_v19, %v4103_v41 }
0x1080   :  { %5884 = vtanh.f32 %v4105_v5 }
0x108a   :  { %v5885_v16 = vpop.eup %5884 }
0x108b   :  { %v4107_v36 = vmul.f32 %v5885_v16, %v5883_v35 }
0x108d   :  { %4317 = vmatmul.mubr.f32.vlgmr.msra.gmra.mrb[32].mxu0 %v4107_v36 }
0x1160   :  { %v4197_v17 = vpop.f32.mrb[32].mxu0 }
0x1161   :  { %v4198_v43 = vadd.f32 %v4266_v21, %v4197_v17  ;;  %v4318_v62 = vpop.f32.mrb[33].mxu0 }
0x1163   :  { %4201 = vst [vmem:[%s7075_s8] sm:$0xff] %v4198_v43 }
0x1164   :  { %4206 = vsyncpa [#allocation5], 1 }
0x1165   :  { %4207 = vsyncpa [#allocation7], 1 }

</bundles_post_ra>
